<compile_context>
chip_gen: v7x
topology: tpu7x:2x2x1
jax: 0.10.0
libtpu: 0.0.40
codegen_flags: <defaults>
</compile_context>

<pallas_src>
import functools
import math

import jax
import jax.numpy as jnp
from jax.experimental import pallas as pl
from jax.experimental.pallas import tpu as pltpu

# ---- problem sizes (hard-coded by the PyTorch module: 32*32*3 features) ----
C, H, W = 3, 32, 32
D = C * H * W          # 3072 input / output features
S = 128                # starting_size (hidden width)
EPS = 1e-5             # nn.BatchNorm1d default eps

_INV_SQRT2 = 0.7071067811865476


def _gelu_exact(x):
    # nn.GELU() default: exact erf-based GELU (f32 on the VPU).
    return 0.5 * x * (1.0 + jax.lax.erf(x * _INV_SQRT2))


# --------------------------------------------------------------------------- kernels
def encoder_stage1_kernel(x_ref, win_ref, bin_ref, h_ref, stat_ref, *, b_total, tm):
    """h = gelu(x @ Win + bin); also emit masked per-tile sum(h) / sum(h^2)."""
    i = pl.program_id(0)
    # bf16 x bf16 -> f32 accumulate: native MXU path on v5e/v6e/v7x.
    x_bf16 = x_ref[...].astype(jnp.bfloat16)
    h = jnp.dot(x_bf16, win_ref[...], preferred_element_type=jnp.float32)
    h = _gelu_exact(h + bin_ref[...])
    h_ref[...] = h

    # Partial BN statistics, masking rows past the true batch (zero-padded tail tile).
    valid = b_total - i * tm
    row_ids = jax.lax.broadcasted_iota(jnp.int32, (tm, 1), 0)
    hm = jnp.where(row_ids < valid, h, 0.0)
    ps = jnp.sum(hm, axis=0, keepdims=True)        # (1, S)
    pq = jnp.sum(hm * hm, axis=0, keepdims=True)   # (1, S)
    stat_ref[0, :, :] = jnp.concatenate([ps, pq], axis=0)


def encoder_stage2_kernel(h_ref, vecs_ref, wstk_ref, w6_ref, b6_ref, out_ref):
    """BN (as precomputed scale/shift) -> 5 x (Linear + gelu) -> d6."""
    scale = vecs_ref[0:1, :]
    shift = vecs_ref[1:2, :]
    h = h_ref[...] * scale + shift                  # f32 activations
    for k in range(5):
        h = jnp.dot(h.astype(jnp.bfloat16), wstk_ref[k],
                    preferred_element_type=jnp.float32) + vecs_ref[2 + k:3 + k, :]
        h = _gelu_exact(h)
    out = jnp.dot(h.astype(jnp.bfloat16), w6_ref[...],
                  preferred_element_type=jnp.float32) + b6_ref[...]
    out_ref[...] = out.astype(out_ref.dtype)


# --------------------------------------------------------------------------- params
def make_params(key):
    """Weights as (in_features, out_features) bf16; biases / BN affine in f32.
    Init mirrors PyTorch's U(-1/sqrt(fan_in), +1/sqrt(fan_in))."""
    def linear(k, fan_in, fan_out):
        kw, kb = jax.random.split(k)
        bound = 1.0 / math.sqrt(fan_in)
        w = jax.random.uniform(kw, (fan_in, fan_out), jnp.float32, -bound, bound)
        b = jax.random.uniform(kb, (1, fan_out), jnp.float32, -bound, bound)
        return w.astype(jnp.bfloat16), b

    keys = jax.random.split(key, 7)
    win, bin_ = linear(keys[0], D, S)               # input_transform
    ws, bs = [], []
    for i in range(5):                              # dense_layers[0..4]
        w, b_ = linear(keys[1 + i], S, S)
        ws.append(w)
        bs.append(b_)
    w_stack = jnp.stack(ws, axis=0)                 # (5, S, S) bf16
    b_stack = jnp.concatenate(bs, axis=0)           # (5, S)    f32
    w6, b6 = linear(keys[6], S, D)                  # d6
    gamma = jnp.ones((1, S), jnp.float32)           # bn1.weight
    beta = jnp.zeros((1, S), jnp.float32)           # bn1.bias
    return (win, bin_, w_stack, b_stack, w6, b6, gamma, beta)


# --------------------------------------------------------------------------- tiling
def _round_up(x, m):
    return ((x + m - 1) // m) * m


def _pick_tile(b, pref):
    """Batch tile: multiple of 8, <= pref, and guaranteeing >= 2 grid steps when
    b >= 16 so a v7x megacore can shard the 'parallel' batch axis."""
    pref = max(8, (pref // 8) * 8)
    if b <= 8:
        return 8
    tm = min(pref, _round_up(b, 8))
    if b >= 16:
        tm = min(tm, _round_up((b + 1) // 2, 8))
    return max(8, tm)


# --------------------------------------------------------------------------- forward
@functools.partial(jax.jit, static_argnames=("tm_pref",))
def fc_encoder_forward(x_nchw, params, tm_pref=512):
    win, bin_, w_stack, b_stack, w6, b6, gamma, beta = params
    b = x_nchw.shape[0]
    x = x_nchw.reshape(b, -1).astype(jnp.float32)    # torch.flatten(start_dim=1)

    tm = _pick_tile(b, tm_pref)
    nt = -(-b // tm)
    b_pad = nt * tm
    if b_pad != b:                                   # pad to a tile multiple; padded
        x = jnp.pad(x, ((0, b_pad - b), (0, 0)))     # rows are masked / sliced away.

    tile_map = lambda i: (i, 0)    # batch-tiled arrays
    const_map = lambda i: (0, 0)   # weights: VMEM-resident, DMAed once
    cparams = pltpu.CompilerParams(
        dimension_semantics=("parallel",),
        vmem_limit_bytes=32 * 1024 * 1024)

    # ---- stage 1: h = gelu(x @ Win + bin) + per-tile BN partial sums ------------
    cost1 = pl.CostEstimate(
        flops=2 * b_pad * D * S,
        transcendentals=b_pad * S,
        bytes_accessed=b_pad * D * 4 + D * S * 2 + S * 4 + b_pad * S * 4 + nt * 2 * S * 4)
    h, stats = pl.pallas_call(
        functools.partial(encoder_stage1_kernel, b_total=b, tm=tm),
        out_shape=(jax.ShapeDtypeStruct((b_pad, S), jnp.float32),
                   jax.ShapeDtypeStruct((nt, 2, S), jnp.float32)),
        grid=(nt,),
        in_specs=[pl.BlockSpec((tm, D), tile_map),
                  pl.BlockSpec((D, S), const_map),
                  pl.BlockSpec((1, S), const_map)],
        out_specs=(pl.BlockSpec((tm, S), tile_map),
                   pl.BlockSpec((1, 2, S), lambda i: (i, 0, 0))),
        compiler_params=cparams,
        cost_estimate=cost1,
    )(x, win, bin_)

    # ---- BatchNorm1d training statistics (tiny (nt,2,S) reduction), folded ------
    mean = jnp.sum(stats[:, 0, :], axis=0, keepdims=True) / b
    var = jnp.maximum(jnp.sum(stats[:, 1, :], axis=0, keepdims=True) / b - mean * mean, 0.0)
    scale = gamma * jax.lax.rsqrt(var + EPS)
    shift = beta - mean * scale
    vecs = jnp.concatenate([scale, shift, b_stack], axis=0)   # (7, S)

    # ---- stage 2: BN(scale/shift) -> 5 x (Linear + gelu) -> d6 ------------------
    cost2 = pl.CostEstimate(
        flops=2 * b_pad * S * S * 5 + 2 * b_pad * S * D,
        transcendentals=5 * b_pad * S,
        bytes_accessed=(b_pad * S * 4 + 7 * S * 4 + 5 * S * S * 2
                        + S * D * 2 + D * 4 + b_pad * D * 4))
    out = pl.pallas_call(
        encoder_stage2_kernel,
        out_shape=jax.ShapeDtypeStruct((b_pad, D), jnp.float32),
        grid=(nt,),
        in_specs=[pl.BlockSpec((tm, S), tile_map),
                  pl.BlockSpec((7, S), const_map),
                  pl.BlockSpec((5, S, S), lambda i: (0, 0, 0)),
                  pl.BlockSpec((S, D), const_map),
                  pl.BlockSpec((1, D), const_map)],
        out_specs=pl.BlockSpec((tm, D), tile_map),
        compiler_params=cparams,
        cost_estimate=cost2,
    )(h, vecs, w_stack, w6, b6)

    return out[:b].reshape(b, C, H, W)               # back to NCHW


# --------------------------------------------------------------------------- reference
def _reference_forward(x_nchw, params):
    """Pure-JAX reference mirroring the kernel's mixed precision (bf16 matmul operands,
    f32 accumulation, f32 GELU/BN)."""
    win, bin_, w_stack, b_stack, w6, b6, gamma, beta = params
    b = x_nchw.shape[0]
    x = x_nchw.reshape(b, -1).astype(jnp.float32)
    h = _gelu_exact(jnp.dot(x.astype(jnp.bfloat16), win,
                            preferred_element_type=jnp.float32) + bin_)
    mean = jnp.sum(h, axis=0, keepdims=True) / b
    var = jnp.maximum(jnp.sum(h * h, axis=0, keepdims=True) / b - mean * mean, 0.0)
    scale = gamma * jax.lax.rsqrt(var + EPS)
    shift = beta - mean * scale
    h = h * scale + shift
    for k in range(5):
        h = _gelu_exact(jnp.dot(h.astype(jnp.bfloat16), w_stack[k],
                                preferred_element_type=jnp.float32) + b_stack[k:k + 1])
    out = jnp.dot(h.astype(jnp.bfloat16), w6,
                  preferred_element_type=jnp.float32) + b6
    return out.reshape(b, C, H, W)


if __name__ == "__main__":
    key = jax.random.PRNGKey(0)
    k_x, k_p = jax.random.split(key)

    # Small batch that is NOT a tile multiple: exercises the 2-step grid, the padded
    # last tile and the masked BN statistics.  Feature dims are fixed by the module.
    B = 40
    x = jax.random.normal(k_x, (B, C, H, W), jnp.float32)
    params = make_params(k_p)

    out = jax.block_until_ready(fc_encoder_forward(x, params))
    ref = _reference_forward(x, params)

    assert out.shape == (B, C, H, W), out.shape
    max_err = float(jnp.max(jnp.abs(out - ref)))
    assert jnp.allclose(out, ref, atol=1e-3, rtol=1e-3), max_err
    print("KERNEL_OK")
</pallas_src>

<mosaic_0001>
module attributes {stable_mosaic.version = 11 : i64} {
  func.func @encoder_stage1_kernel(%arg0: i32, %arg1: memref<24x3072xf32, #tpu.memory_space<vmem>>, %arg2: memref<3072x128xbf16, #tpu.memory_space<vmem>>, %arg3: memref<1x128xf32, #tpu.memory_space<vmem>>, %arg4: memref<24x128xf32, #tpu.memory_space<vmem>>, %arg5: memref<1x2x128xf32, #tpu.memory_space<vmem>>) attributes {dimension_semantics = [#tpu.dimension_semantics<parallel>], iteration_bounds = array<i64: 2>, scalar_prefetch = 0 : i64, scratch_operands = 0 : i64, tpu.core_type = #tpu.core_type<tc>, window_params = [{transform_indices = @transform_0, window_bounds = array<i64: 24, 3072>}, {pipeline_mode = #tpu.pipeline_mode<synchronous>, transform_indices = @transform_1, window_bounds = array<i64: 3072, 128>}, {pipeline_mode = #tpu.pipeline_mode<synchronous>, transform_indices = @transform_2, window_bounds = array<i64: 1, 128>}, {transform_indices = @transform_3, window_bounds = array<i64: 24, 128>}, {transform_indices = @transform_4, window_bounds = array<i64: 1, 2, 128>}]} {
    %c0 = arith.constant 0 : index
    %c0_0 = arith.constant 0 : index
    %0 = vector.load %arg1[%c0, %c0_0] : memref<24x3072xf32, #tpu.memory_space<vmem>>, vector<24x3072xf32>
    %1 = arith.truncf %0 : vector<24x3072xf32> to vector<24x3072xbf16>
    %c0_1 = arith.constant 0 : index
    %c0_2 = arith.constant 0 : index
    %2 = vector.load %arg2[%c0_1, %c0_2] : memref<3072x128xbf16, #tpu.memory_space<vmem>>, vector<3072x128xbf16>
    %cst = arith.constant dense<0.000000e+00> : vector<24x128xf32>
    %3 = tpu.matmul %1, %2, %cst {dimension_numbers = #tpu.dot_dimension_numbers<[1], [0], [0], [1], [0, 0, 1, 1], [], []>} : vector<24x3072xbf16>, vector<3072x128xbf16>, vector<24x128xf32> -> vector<24x128xf32>
    %c0_3 = arith.constant 0 : index
    %c0_4 = arith.constant 0 : index
    %4 = vector.load %arg3[%c0_3, %c0_4] : memref<1x128xf32, #tpu.memory_space<vmem>>, vector<1x128xf32>
    %5 = vector.broadcast %4 : vector<1x128xf32> to vector<24x128xf32>
    %6 = arith.addf %3, %5 : vector<24x128xf32>
    %cst_5 = arith.constant 5.000000e-01 : f32
    %7 = vector.broadcast %cst_5 : f32 to vector<24x128xf32>
    %8 = arith.mulf %7, %6 : vector<24x128xf32>
    %cst_6 = arith.constant 0.707106769 : f32
    %9 = vector.broadcast %cst_6 : f32 to vector<24x128xf32>
    %10 = arith.mulf %6, %9 : vector<24x128xf32>
    %11 = math.erf %10 : vector<24x128xf32>
    %cst_7 = arith.constant 1.000000e+00 : f32
    %12 = vector.broadcast %cst_7 : f32 to vector<24x128xf32>
    %13 = arith.addf %12, %11 : vector<24x128xf32>
    %14 = arith.mulf %8, %13 : vector<24x128xf32>
    %c0_8 = arith.constant 0 : index
    %c0_9 = arith.constant 0 : index
    %15 = vector.load %arg4[%c0_8, %c0_9] : memref<24x128xf32, #tpu.memory_space<vmem>>, vector<24x128xf32>
    tpu.vector_store %arg4[%c0_8, %c0_9], %14 {strides = array<i32>} : memref<24x128xf32, #tpu.memory_space<vmem>>, vector<24x128xf32>,
    %c24_i32 = arith.constant 24 : i32
    %16 = arith.muli %arg0, %c24_i32 : i32
    %c40_i32 = arith.constant 40 : i32
    %17 = arith.subi %c40_i32, %16 : i32
    %18 = tpu.iota {dimensions = array<i32: 0>} : vector<24x1xi32>
    %19 = vector.broadcast %17 : i32 to vector<24x1xi32>
    %20 = arith.cmpi slt, %18, %19 : vector<24x1xi32>
    %cst_10 = arith.constant 0.000000e+00 : f32
    %21 = vector.shape_cast %20 : vector<24x1xi1> to vector<24x1xi1>
    %22 = vector.broadcast %21 : vector<24x1xi1> to vector<24x128xi1>
    %23 = vector.broadcast %cst_10 : f32 to vector<24x128xf32>
    %24 = arith.select %22, %14, %23 : vector<24x128xi1>, vector<24x128xf32>
    %cst_11 = arith.constant dense<0.000000e+00> : vector<128xf32>
    %25 = vector.multi_reduction <add>, %24, %cst_11 [0] : vector<24x128xf32> to vector<128xf32>
    %26 = vector.shape_cast %25 : vector<128xf32> to vector<1x128xf32>
    %27 = arith.mulf %24, %24 : vector<24x128xf32>
    %cst_12 = arith.constant dense<0.000000e+00> : vector<128xf32>
    %28 = vector.multi_reduction <add>, %27, %cst_12 [0] : vector<24x128xf32> to vector<128xf32>
    %29 = vector.shape_cast %28 : vector<128xf32> to vector<1x128xf32>
    %30 = tpu.concatenate %26, %29 in 0 : vector<1x128xf32>, vector<1x128xf32> -> vector<2x128xf32>
    %c0_13 = arith.constant 0 : index
    %c0_14 = arith.constant 0 : index
    %c0_15 = arith.constant 0 : index
    %31 = vector.load %arg5[%c0_13, %c0_14, %c0_15] : memref<1x2x128xf32, #tpu.memory_space<vmem>>, vector<1x2x128xf32>
    %32 = vector.shape_cast %31 : vector<1x2x128xf32> to vector<2x128xf32>
    %33 = vector.shape_cast %30 : vector<2x128xf32> to vector<1x2x128xf32>
    tpu.vector_store %arg5[%c0_13, %c0_14, %c0_15], %33 {strides = array<i32>} : memref<1x2x128xf32, #tpu.memory_space<vmem>>, vector<1x2x128xf32>,
    return
  }
  func.func @transform_0(%arg0: i32) -> (i32, i32) {
    %c0_i32 = arith.constant 0 : i32
    %c0_i32_0 = arith.constant 0 : i32
    return %arg0, %c0_i32 : i32, i32
  }
  func.func @transform_1(%arg0: i32) -> (i32, i32) {
    %c0_i32 = arith.constant 0 : i32
    %c0_i32_0 = arith.constant 0 : i32
    %c0_i32_1 = arith.constant 0 : i32
    return %c0_i32, %c0_i32_0 : i32, i32
  }
  func.func @transform_2(%arg0: i32) -> (i32, i32) {
    %c0_i32 = arith.constant 0 : i32
    %c0_i32_0 = arith.constant 0 : i32
    %c0_i32_1 = arith.constant 0 : i32
    return %c0_i32, %c0_i32_0 : i32, i32
  }
  func.func @transform_3(%arg0: i32) -> (i32, i32) {
    %c0_i32 = arith.constant 0 : i32
    %c0_i32_0 = arith.constant 0 : i32
    return %arg0, %c0_i32 : i32, i32
  }
  func.func @transform_4(%arg0: i32) -> (i32, i32, i32) {
    %c0_i32 = arith.constant 0 : i32
    %c0_i32_0 = arith.constant 0 : i32
    %c0_i32_1 = arith.constant 0 : i32
    return %arg0, %c0_i32, %c0_i32_0 : i32, i32, i32
  }
}

module attributes {stable_mosaic.version = 11 : i64} {
  func.func @encoder_stage2_kernel(%arg0: i32, %arg1: memref<24x128xf32, #tpu.memory_space<vmem>>, %arg2: memref<7x128xf32, #tpu.memory_space<vmem>>, %arg3: memref<5x128x128xbf16, #tpu.memory_space<vmem>>, %arg4: memref<128x3072xbf16, #tpu.memory_space<vmem>>, %arg5: memref<1x3072xf32, #tpu.memory_space<vmem>>, %arg6: memref<24x3072xf32, #tpu.memory_space<vmem>>) attributes {dimension_semantics = [#tpu.dimension_semantics<parallel>], iteration_bounds = array<i64: 2>, scalar_prefetch = 0 : i64, scratch_operands = 0 : i64, tpu.core_type = #tpu.core_type<tc>, window_params = [{transform_indices = @transform_0, window_bounds = array<i64: 24, 128>}, {pipeline_mode = #tpu.pipeline_mode<synchronous>, transform_indices = @transform_1, window_bounds = array<i64: 7, 128>}, {pipeline_mode = #tpu.pipeline_mode<synchronous>, transform_indices = @transform_2, window_bounds = array<i64: 5, 128, 128>}, {pipeline_mode = #tpu.pipeline_mode<synchronous>, transform_indices = @transform_3, window_bounds = array<i64: 128, 3072>}, {pipeline_mode = #tpu.pipeline_mode<synchronous>, transform_indices = @transform_4, window_bounds = array<i64: 1, 3072>}, {transform_indices = @transform_5, window_bounds = array<i64: 24, 3072>}]} {
    %c0 = arith.constant 0 : index
    %c0_0 = arith.constant 0 : index
    %0 = vector.load %arg2[%c0, %c0_0] : memref<7x128xf32, #tpu.memory_space<vmem>>, vector<1x128xf32>
    %c1 = arith.constant 1 : index
    %c0_1 = arith.constant 0 : index
    %1 = vector.load %arg2[%c1, %c0_1] : memref<7x128xf32, #tpu.memory_space<vmem>>, vector<1x128xf32>
    %c0_2 = arith.constant 0 : index
    %c0_3 = arith.constant 0 : index
    %2 = vector.load %arg1[%c0_2, %c0_3] : memref<24x128xf32, #tpu.memory_space<vmem>>, vector<24x128xf32>
    %3 = vector.broadcast %0 : vector<1x128xf32> to vector<24x128xf32>
    %4 = arith.mulf %2, %3 : vector<24x128xf32>
    %5 = vector.broadcast %1 : vector<1x128xf32> to vector<24x128xf32>
    %6 = arith.addf %4, %5 : vector<24x128xf32>
    %7 = arith.truncf %6 : vector<24x128xf32> to vector<24x128xbf16>
    %c0_4 = arith.constant 0 : index
    %c0_5 = arith.constant 0 : index
    %c0_6 = arith.constant 0 : index
    %8 = vector.load %arg3[%c0_4, %c0_5, %c0_6] : memref<5x128x128xbf16, #tpu.memory_space<vmem>>, vector<1x128x128xbf16>
    %9 = vector.shape_cast %8 : vector<1x128x128xbf16> to vector<128x128xbf16>
    %cst = arith.constant dense<0.000000e+00> : vector<24x128xf32>
    %10 = tpu.matmul %7, %9, %cst {dimension_numbers = #tpu.dot_dimension_numbers<[1], [0], [0], [1], [0, 0, 1, 1], [], []>} : vector<24x128xbf16>, vector<128x128xbf16>, vector<24x128xf32> -> vector<24x128xf32>
    %c2 = arith.constant 2 : index
    %c0_7 = arith.constant 0 : index
    %11 = vector.load %arg2[%c2, %c0_7] : memref<7x128xf32, #tpu.memory_space<vmem>>, vector<1x128xf32>
    %12 = vector.broadcast %11 : vector<1x128xf32> to vector<24x128xf32>
    %13 = arith.addf %10, %12 : vector<24x128xf32>
    %cst_8 = arith.constant 5.000000e-01 : f32
    %14 = vector.broadcast %cst_8 : f32 to vector<24x128xf32>
    %15 = arith.mulf %14, %13 : vector<24x128xf32>
    %cst_9 = arith.constant 0.707106769 : f32
    %16 = vector.broadcast %cst_9 : f32 to vector<24x128xf32>
    %17 = arith.mulf %13, %16 : vector<24x128xf32>
    %18 = math.erf %17 : vector<24x128xf32>
    %cst_10 = arith.constant 1.000000e+00 : f32
    %19 = vector.broadcast %cst_10 : f32 to vector<24x128xf32>
    %20 = arith.addf %19, %18 : vector<24x128xf32>
    %21 = arith.mulf %15, %20 : vector<24x128xf32>
    %22 = arith.truncf %21 : vector<24x128xf32> to vector<24x128xbf16>
    %c1_11 = arith.constant 1 : index
    %c0_12 = arith.constant 0 : index
    %c0_13 = arith.constant 0 : index
    %23 = vector.load %arg3[%c1_11, %c0_12, %c0_13] : memref<5x128x128xbf16, #tpu.memory_space<vmem>>, vector<1x128x128xbf16>
    %24 = vector.shape_cast %23 : vector<1x128x128xbf16> to vector<128x128xbf16>
    %cst_14 = arith.constant dense<0.000000e+00> : vector<24x128xf32>
    %25 = tpu.matmul %22, %24, %cst_14 {dimension_numbers = #tpu.dot_dimension_numbers<[1], [0], [0], [1], [0, 0, 1, 1], [], []>} : vector<24x128xbf16>, vector<128x128xbf16>, vector<24x128xf32> -> vector<24x128xf32>
    %c3 = arith.constant 3 : index
    %c0_15 = arith.constant 0 : index
    %26 = vector.load %arg2[%c3, %c0_15] : memref<7x128xf32, #tpu.memory_space<vmem>>, vector<1x128xf32>
    %27 = vector.broadcast %26 : vector<1x128xf32> to vector<24x128xf32>
    %28 = arith.addf %25, %27 : vector<24x128xf32>
    %cst_16 = arith.constant 5.000000e-01 : f32
    %29 = vector.broadcast %cst_16 : f32 to vector<24x128xf32>
    %30 = arith.mulf %29, %28 : vector<24x128xf32>
    %cst_17 = arith.constant 0.707106769 : f32
    %31 = vector.broadcast %cst_17 : f32 to vector<24x128xf32>
    %32 = arith.mulf %28, %31 : vector<24x128xf32>
    %33 = math.erf %32 : vector<24x128xf32>
    %cst_18 = arith.constant 1.000000e+00 : f32
    %34 = vector.broadcast %cst_18 : f32 to vector<24x128xf32>
    %35 = arith.addf %34, %33 : vector<24x128xf32>
    %36 = arith.mulf %30, %35 : vector<24x128xf32>
    %37 = arith.truncf %36 : vector<24x128xf32> to vector<24x128xbf16>
    %c2_19 = arith.constant 2 : index
    %c0_20 = arith.constant 0 : index
    %c0_21 = arith.constant 0 : index
    %38 = vector.load %arg3[%c2_19, %c0_20, %c0_21] : memref<5x128x128xbf16, #tpu.memory_space<vmem>>, vector<1x128x128xbf16>
    %39 = vector.shape_cast %38 : vector<1x128x128xbf16> to vector<128x128xbf16>
    %cst_22 = arith.constant dense<0.000000e+00> : vector<24x128xf32>
    %40 = tpu.matmul %37, %39, %cst_22 {dimension_numbers = #tpu.dot_dimension_numbers<[1], [0], [0], [1], [0, 0, 1, 1], [], []>} : vector<24x128xbf16>, vector<128x128xbf16>, vector<24x128xf32> -> vector<24x128xf32>
    %c4 = arith.constant 4 : index
    %c0_23 = arith.constant 0 : index
    %41 = vector.load %arg2[%c4, %c0_23] : memref<7x128xf32, #tpu.memory_space<vmem>>, vector<1x128xf32>
    %42 = vector.broadcast %41 : vector<1x128xf32> to vector<24x128xf32>
    %43 = arith.addf %40, %42 : vector<24x128xf32>
    %cst_24 = arith.constant 5.000000e-01 : f32
    %44 = vector.broadcast %cst_24 : f32 to vector<24x128xf32>
    %45 = arith.mulf %44, %43 : vector<24x128xf32>
    %cst_25 = arith.constant 0.707106769 : f32
    %46 = vector.broadcast %cst_25 : f32 to vector<24x128xf32>
    %47 = arith.mulf %43, %46 : vector<24x128xf32>
    %48 = math.erf %47 : vector<24x128xf32>
    %cst_26 = arith.constant 1.000000e+00 : f32
    %49 = vector.broadcast %cst_26 : f32 to vector<24x128xf32>
    %50 = arith.addf %49, %48 : vector<24x128xf32>
    %51 = arith.mulf %45, %50 : vector<24x128xf32>
    %52 = arith.truncf %51 : vector<24x128xf32> to vector<24x128xbf16>
    %c3_27 = arith.constant 3 : index
    %c0_28 = arith.constant 0 : index
    %c0_29 = arith.constant 0 : index
    %53 = vector.load %arg3[%c3_27, %c0_28, %c0_29] : memref<5x128x128xbf16, #tpu.memory_space<vmem>>, vector<1x128x128xbf16>
    %54 = vector.shape_cast %53 : vector<1x128x128xbf16> to vector<128x128xbf16>
    %cst_30 = arith.constant dense<0.000000e+00> : vector<24x128xf32>
    %55 = tpu.matmul %52, %54, %cst_30 {dimension_numbers = #tpu.dot_dimension_numbers<[1], [0], [0], [1], [0, 0, 1, 1], [], []>} : vector<24x128xbf16>, vector<128x128xbf16>, vector<24x128xf32> -> vector<24x128xf32>
    %c5 = arith.constant 5 : index
    %c0_31 = arith.constant 0 : index
    %56 = vector.load %arg2[%c5, %c0_31] : memref<7x128xf32, #tpu.memory_space<vmem>>, vector<1x128xf32>
    %57 = vector.broadcast %56 : vector<1x128xf32> to vector<24x128xf32>
    %58 = arith.addf %55, %57 : vector<24x128xf32>
    %cst_32 = arith.constant 5.000000e-01 : f32
    %59 = vector.broadcast %cst_32 : f32 to vector<24x128xf32>
    %60 = arith.mulf %59, %58 : vector<24x128xf32>
    %cst_33 = arith.constant 0.707106769 : f32
    %61 = vector.broadcast %cst_33 : f32 to vector<24x128xf32>
    %62 = arith.mulf %58, %61 : vector<24x128xf32>
    %63 = math.erf %62 : vector<24x128xf32>
    %cst_34 = arith.constant 1.000000e+00 : f32
    %64 = vector.broadcast %cst_34 : f32 to vector<24x128xf32>
    %65 = arith.addf %64, %63 : vector<24x128xf32>
    %66 = arith.mulf %60, %65 : vector<24x128xf32>
    %67 = arith.truncf %66 : vector<24x128xf32> to vector<24x128xbf16>
    %c4_35 = arith.constant 4 : index
    %c0_36 = arith.constant 0 : index
    %c0_37 = arith.constant 0 : index
    %68 = vector.load %arg3[%c4_35, %c0_36, %c0_37] : memref<5x128x128xbf16, #tpu.memory_space<vmem>>, vector<1x128x128xbf16>
    %69 = vector.shape_cast %68 : vector<1x128x128xbf16> to vector<128x128xbf16>
    %cst_38 = arith.constant dense<0.000000e+00> : vector<24x128xf32>
    %70 = tpu.matmul %67, %69, %cst_38 {dimension_numbers = #tpu.dot_dimension_numbers<[1], [0], [0], [1], [0, 0, 1, 1], [], []>} : vector<24x128xbf16>, vector<128x128xbf16>, vector<24x128xf32> -> vector<24x128xf32>
    %c6 = arith.constant 6 : index
    %c0_39 = arith.constant 0 : index
    %71 = vector.load %arg2[%c6, %c0_39] : memref<7x128xf32, #tpu.memory_space<vmem>>, vector<1x128xf32>
    %72 = vector.broadcast %71 : vector<1x128xf32> to vector<24x128xf32>
    %73 = arith.addf %70, %72 : vector<24x128xf32>
    %cst_40 = arith.constant 5.000000e-01 : f32
    %74 = vector.broadcast %cst_40 : f32 to vector<24x128xf32>
    %75 = arith.mulf %74, %73 : vector<24x128xf32>
    %cst_41 = arith.constant 0.707106769 : f32
    %76 = vector.broadcast %cst_41 : f32 to vector<24x128xf32>
    %77 = arith.mulf %73, %76 : vector<24x128xf32>
    %78 = math.erf %77 : vector<24x128xf32>
    %cst_42 = arith.constant 1.000000e+00 : f32
    %79 = vector.broadcast %cst_42 : f32 to vector<24x128xf32>
    %80 = arith.addf %79, %78 : vector<24x128xf32>
    %81 = arith.mulf %75, %80 : vector<24x128xf32>
    %82 = arith.truncf %81 : vector<24x128xf32> to vector<24x128xbf16>
    %c0_43 = arith.constant 0 : index
    %c0_44 = arith.constant 0 : index
    %83 = vector.load %arg4[%c0_43, %c0_44] : memref<128x3072xbf16, #tpu.memory_space<vmem>>, vector<128x3072xbf16>
    %cst_45 = arith.constant dense<0.000000e+00> : vector<24x3072xf32>
    %84 = tpu.matmul %82, %83, %cst_45 {dimension_numbers = #tpu.dot_dimension_numbers<[1], [0], [0], [1], [0, 0, 1, 1], [], []>} : vector<24x128xbf16>, vector<128x3072xbf16>, vector<24x3072xf32> -> vector<24x3072xf32>
    %c0_46 = arith.constant 0 : index
    %c0_47 = arith.constant 0 : index
    %85 = vector.load %arg5[%c0_46, %c0_47] : memref<1x3072xf32, #tpu.memory_space<vmem>>, vector<1x3072xf32>
    %86 = vector.broadcast %85 : vector<1x3072xf32> to vector<24x3072xf32>
    %87 = arith.addf %84, %86 : vector<24x3072xf32>
    %c0_48 = arith.constant 0 : index
    %c0_49 = arith.constant 0 : index
    %88 = vector.load %arg6[%c0_48, %c0_49] : memref<24x3072xf32, #tpu.memory_space<vmem>>, vector<24x3072xf32>
    tpu.vector_store %arg6[%c0_48, %c0_49], %87 {strides = array<i32>} : memref<24x3072xf32, #tpu.memory_space<vmem>>, vector<24x3072xf32>,
    return
  }
  func.func @transform_0(%arg0: i32) -> (i32, i32) {
    %c0_i32 = arith.constant 0 : i32
    %c0_i32_0 = arith.constant 0 : i32
    return %arg0, %c0_i32 : i32, i32
  }
  func.func @transform_1(%arg0: i32) -> (i32, i32) {
    %c0_i32 = arith.constant 0 : i32
    %c0_i32_0 = arith.constant 0 : i32
    %c0_i32_1 = arith.constant 0 : i32
    return %c0_i32, %c0_i32_0 : i32, i32
  }
  func.func @transform_2(%arg0: i32) -> (i32, i32, i32) {
    %c0_i32 = arith.constant 0 : i32
    %c0_i32_0 = arith.constant 0 : i32
    %c0_i32_1 = arith.constant 0 : i32
    %c0_i32_2 = arith.constant 0 : i32
    return %c0_i32, %c0_i32_0, %c0_i32_1 : i32, i32, i32
  }
  func.func @transform_3(%arg0: i32) -> (i32, i32) {
    %c0_i32 = arith.constant 0 : i32
    %c0_i32_0 = arith.constant 0 : i32
    %c0_i32_1 = arith.constant 0 : i32
    return %c0_i32, %c0_i32_0 : i32, i32
  }
  func.func @transform_4(%arg0: i32) -> (i32, i32) {
    %c0_i32 = arith.constant 0 : i32
    %c0_i32_0 = arith.constant 0 : i32
    %c0_i32_1 = arith.constant 0 : i32
    return %c0_i32, %c0_i32_0 : i32, i32
  }
  func.func @transform_5(%arg0: i32) -> (i32, i32) {
    %c0_i32 = arith.constant 0 : i32
    %c0_i32_0 = arith.constant 0 : i32
    return %arg0, %c0_i32 : i32, i32
  }
}

</mosaic_0001>

<bundles_post_ra>
// kernel: fc_encoder_forward.2
= control target key start
LH: loop header
LB: loop body
LE: loop exit
PB: predicated region body
PF: predicated region fallthrough
CT: control target
= control target key end

     0   :  { %s3380_s15 = smov 0   ;;  %s4063_s0 = inlined_call_operand.vmem [shape: f32[48,3072], index: 0, kind: input, shape index: {}]   ;;  %s4064_s1 = inlined_call_operand.vmem [shape: bf16[3072,128], index: 1, kind: input, shape index: {}]   ;;  %s4065_s2 = inlined_call_operand.vmem [shape: f32[1,128], index: 2, kind: input, shape index: {}]   ;;  %s4066_s3 = inlined_call_operand.vmem [shape: f32[48,128], index: 3, kind: output, shape index: {0}]   ;;  %s4067_s4 = inlined_call_operand.vmem [shape: f32[2,2,128], index: 4, kind: output, shape index: {1}]  }
   0x1 LB: > { %s3386_s16 = sadd.s32 4294967295, %s3353_s15   ;;  %p2605_p0 = scmp.ge.s32.totalorder %s3353_s15, 1  ;;  %s3353_s15 = sphi %s3380_s15, %s15_s15  }
   0x2   : > { %p167_p1 = scmp.lt.s32.totalorder %s3353_s15, 3 }
   0x4   : > { %p168_p2 = pnand %p2605_p0, %p167_p1 }
   0x5   : > { %v3149_v0 = vld [vmem:[%s4064_s1 + $0x40] sm:$0xff] (!%p168_p2)   ;;  %v3153_v4 = vld [vmem:[%s4064_s1 + $0x48] sm:$0xff] (!%p168_p2)   ;;  %v3157_v8 = vld [vmem:[%s4064_s1 + $0x50] sm:$0xff] (!%p168_p2)   ;;  %s198_s21 = smul.u32 (!%p168_p2), 3, %s3386_s16  ;;  %p211_p4 = scmp.lt.s32.totalorder (!%p168_p2), %s3386_s16, 1  ;;  %vm2511_vm3 = vcmask (!%p168_p2), 1040384  }
   0x6   : > { %171 = sbr.rel (%p168_p2) target bundleno = 462 (0x1ce), region = 32  ;;  %v3150_v1 = vld [vmem:[%s4064_s1 + $0xc0] sm:$0xff] (!%p168_p2)   ;;  %2804 = vmatprep.subr.bf16.mxu0 (!%p168_p2), %v3149_v0  ;;  %v3154_v5 = vld [vmem:[%s4064_s1 + $0xc8] sm:$0xff] (!%p168_p2)   ;;  %v3158_v9 = vld [vmem:[%s4064_s1 + $0xd0] sm:$0xff] (!%p168_p2)  }
   0x7   : > { %v3151_v2 = vld [vmem:[%s4064_s1] sm:$0xff] (!%p168_p2)   ;;  %2832 = vmatprep.subr.bf16.mxu1 (!%p168_p2), %v3150_v1  ;;  %v3155_v6 = vld [vmem:[%s4064_s1 + $0x8] sm:$0xff] (!%p168_p2)   ;;  %v3159_v10 = vld [vmem:[%s4064_s1 + $0x10] sm:$0xff] (!%p168_p2)   ;;  %p199_p3 = scmp.lt.s32.totalorder (!%p168_p2), %s198_s21, 5 }
   0x8   : > { %v3152_v3 = vld [vmem:[%s4064_s1 + $0x80] sm:$0xff] (!%p168_p2)   ;;  %2805 = vmatpush3.bf16.msra.mxu0 (!%p168_p2), %v3151_v2  ;;  %v3156_v7 = vld [vmem:[%s4064_s1 + $0x88] sm:$0xff] (!%p168_p2)   ;;  %v3160_v11 = vld [vmem:[%s4064_s1 + $0x90] sm:$0xff] (!%p168_p2)  }
   0x9   : > { %2833 = vmatpush3.bf16.msra.mxu1 (!%p168_p2), %v3152_v3  ;;  %2806 = vmatprep.subr.bf16.mxu0 (!%p168_p2), %v3153_v4  ;;  %v3161_v12 = vld [vmem:[%s4064_s1 + $0x58] sm:$0xff] (!%p168_p2)   ;;  %v3165_v16 = vld [vmem:[%s4064_s1 + $0x60] sm:$0xff] (!%p168_p2)   ;;  %v3169_v20 = vld [vmem:[%s4064_s1 + $0x68] sm:$0xff] (!%p168_p2)  }
   0xa   : > { %2834 = vmatprep.subr.bf16.mxu1 (!%p168_p2), %v3154_v5  ;;  %v3162_v13 = vld [vmem:[%s4064_s1 + $0xd8] sm:$0xff] (!%p168_p2)   ;;  %v3166_v17 = vld [vmem:[%s4064_s1 + $0xe0] sm:$0xff] (!%p168_p2)   ;;  %v3170_v21 = vld [vmem:[%s4064_s1 + $0xe8] sm:$0xff] (!%p168_p2)  }
   0xb   : > { %v3163_v14 = vld [vmem:[%s4064_s1 + $0x18] sm:$0xff] (!%p168_p2)   ;;  %v3167_v18 = vld [vmem:[%s4064_s1 + $0x20] sm:$0xff] (!%p168_p2)   ;;  %v3171_v22 = vld [vmem:[%s4064_s1 + $0x28] sm:$0xff] (!%p168_p2)  }
   0xc   : > { %2807 = vmatpush3.bf16.msra.mxu0 (!%p168_p2), %v3155_v6  ;;  %v3164_v15 = vld [vmem:[%s4064_s1 + $0x98] sm:$0xff] (!%p168_p2)   ;;  %v3168_v19 = vld [vmem:[%s4064_s1 + $0xa0] sm:$0xff] (!%p168_p2)   ;;  %v3172_v23 = vld [vmem:[%s4064_s1 + $0xa8] sm:$0xff] (!%p168_p2)  }
   0xd   : > { %2835 = vmatpush3.bf16.msra.mxu1 %v3156_v7  ;;  %2808 = vmatprep.subr.bf16.mxu0 %v3157_v8  ;;  %s4069_s21 = smov (!%p199_p3, %s198_s21), 5  ;;  %v3173_v24 = vld [vmem:[%s4064_s1 + $0x70] sm:$0xff]   ;;  %v3177_v28 = vld [vmem:[%s4064_s1 + $0x78] sm:$0xff]   ;;  %v3181_v44 = vld [vmem:[%s4064_s1 + $0x140] sm:$0xff]  }
   0xe   : > { %2836 = vmatprep.subr.bf16.mxu1 %v3158_v9  ;;  %v3174_v25 = vld [vmem:[%s4064_s1 + $0xf0] sm:$0xff]   ;;  %s3140_s23 = smul.u32 192, %s4069_s21  ;;  %v3178_v29 = vld [vmem:[%s4064_s1 + $0xf8] sm:$0xff]   ;;  %v3182_v45 = vld [vmem:[%s4064_s1 + $0x1c0] sm:$0xff]   ;;  %s2607_s5 = sshll.u32 %s4069_s21, 3 }
   0xf   : > { %v3175_v26 = vld [vmem:[%s4064_s1 + $0x30] sm:$0xff]   ;;  %v3179_v30 = vld [vmem:[%s4064_s1 + $0x38] sm:$0xff]   ;;  %v3183_v46 = vld [vmem:[%s4064_s1 + $0x100] sm:$0xff]   ;;  %s209_s9 = scalar_lea.vmem %s4066_s3, %s2607_s5 }
  0x10   : > { %2809 = vmatpush3.bf16.msra.mxu0 %v3159_v10  ;;  %v3176_v27 = vld [vmem:[%s4064_s1 + $0xb0] sm:$0xff]   ;;  %s3487_s8 = scalar_lea.vmem %s4063_s0, %s3140_s23  ;;  %v3180_v31 = vld [vmem:[%s4064_s1 + $0xb8] sm:$0xff]   ;;  %v3184_v47 = vld [vmem:[%s4064_s1 + $0x180] sm:$0xff]  }
  0x11   : > { %2837 = vmatpush3.bf16.msra.mxu1 %v3160_v11  ;;  %2810 = vmatprep.subr.bf16.mxu0 %v3161_v12  ;;  %v217_v32 = vld [vmem:[%s3487_s8 + $0x8] sm:$0xff]  ;;  %v219_v34 = vld [vmem:[%s3487_s8 + $0x18] sm:$0xff]  ;;  %v216_v37 = vld [vmem:[%s3487_s8] sm:$0xff] }
  0x12   : > { %2838 = vmatprep.subr.bf16.mxu1 %v3162_v13  ;;  %v241_v33 = vld [vmem:[%s3487_s8 + $0xc8] sm:$0xff]  ;;  %v243_v36 = vld [vmem:[%s3487_s8 + $0xd8] sm:$0xff]  ;;  %v240_v38 = vld [vmem:[%s3487_s8 + $0xc0] sm:$0xff] }
  0x13   : > { %v289_v35 = vpack.c.bf16 %v241_v33, %v217_v32  ;;  %v291_v39 = vpack.c.bf16 %v243_v36, %v219_v34  ;;  %v288_v40 = vpack.c.bf16 %v240_v38, %v216_v37  ;;  %v218_v41 = vld [vmem:[%s3487_s8 + $0x10] sm:$0xff]  ;;  %v3185_v48 = vld [vmem:[%s4064_s1 + $0x148] sm:$0xff]   ;;  %v3193_v56 = vld [vmem:[%s4064_s1 + $0x158] sm:$0xff]  }
  0x14   : > { %2811 = vmatpush3.bf16.msra.mxu0 %v3163_v14  ;;  %v242_v42 = vld [vmem:[%s3487_s8 + $0xd0] sm:$0xff]  ;;  %v3186_v49 = vld [vmem:[%s4064_s1 + $0x1c8] sm:$0xff]   ;;  %v3194_v57 = vld [vmem:[%s4064_s1 + $0x1d8] sm:$0xff]  }
  0x15   : > { %2839 = vmatpush3.bf16.msra.mxu1 %v3164_v15  ;;  %2812 = vmatprep.subr.bf16.mxu0 %v3165_v16  ;;  %v290_v43 = vpack.c.bf16 %v242_v42, %v218_v41  ;;  %v3187_v50 = vld [vmem:[%s4064_s1 + $0x108] sm:$0xff]   ;;  %v3189_v52 = vld [vmem:[%s4064_s1 + $0x150] sm:$0xff]   ;;  %v3195_v58 = vld [vmem:[%s4064_s1 + $0x118] sm:$0xff]  }
  0x16   : > { %2840 = vmatprep.subr.bf16.mxu1 %v3166_v17  ;;  %1911 = vmatprep.mubr.bf16.mxu0 %v289_v35  ;;  %v3188_v51 = vld [vmem:[%s4064_s1 + $0x188] sm:$0xff]   ;;  %v3190_v53 = vld [vmem:[%s4064_s1 + $0x1d0] sm:$0xff]   ;;  %v3196_v59 = vld [vmem:[%s4064_s1 + $0x198] sm:$0xff]  }
  0x17   : > { %1959 = vmatprep.mubr.bf16.mxu1 %v291_v39  ;;  %v3191_v54 = vld [vmem:[%s4064_s1 + $0x110] sm:$0xff]   ;;  %v3197_v60 = vld [vmem:[%s4064_s1 + $0x160] sm:$0xff]   ;;  %v3201_v0 = vld [vmem:[%s4064_s1 + $0x168] sm:$0xff]  }
  0x18   : > { %2813 = vmatpush3.bf16.msra.mxu0 %v3167_v18  ;;  %v3192_v55 = vld [vmem:[%s4064_s1 + $0x190] sm:$0xff]   ;;  %v3198_v61 = vld [vmem:[%s4064_s1 + $0x1e0] sm:$0xff]   ;;  %v3202_v1 = vld [vmem:[%s4064_s1 + $0x1e8] sm:$0xff]  }
  0x19   : > { %2841 = vmatpush3.bf16.msra.mxu1 %v3168_v19  ;;  %2814 = vmatprep.subr.bf16.mxu0 %v3169_v20  ;;  %v3199_v62 = vld [vmem:[%s4064_s1 + $0x120] sm:$0xff]   ;;  %v265_v2 = vld [vmem:[%s3487_s8 + $0x188] sm:$0xff]  ;;  %v267_v7 = vld [vmem:[%s3487_s8 + $0x198] sm:$0xff] }
  0x1a   : > { %2842 = vmatprep.subr.bf16.mxu1 %v3170_v21  ;;  %v3200_v63 = vld [vmem:[%s4064_s1 + $0x1a0] sm:$0xff]   ;;  %v313_v3 = vpack.c.bf16 %v265_v2, %v265_v2  ;;  %v3203_v4 = vld [vmem:[%s4064_s1 + $0x128] sm:$0xff]   ;;  %v266_v8 = vld [vmem:[%s3487_s8 + $0x190] sm:$0xff]  ;;  %v315_v10 = vpack.c.bf16 %v267_v7, %v267_v7 }
  0x1b   : > { %v3204_v5 = vld [vmem:[%s4064_s1 + $0x1a8] sm:$0xff]   ;;  %v264_v6 = vld [vmem:[%s3487_s8 + $0x180] sm:$0xff]  ;;  %v314_v11 = vpack.c.bf16 %v266_v8, %v266_v8  ;;  %v3205_v12 = vld [vmem:[%s4064_s1 + $0x170] sm:$0xff]  }
  0x1c   : > { %2815 = vmatpush3.bf16.msra.mxu0 %v3171_v22  ;;  %v312_v9 = vpack.c.bf16 %v264_v6, %v264_v6  ;;  %v3206_v13 = vld [vmem:[%s4064_s1 + $0x1f0] sm:$0xff]   ;;  %v3209_v16 = vld [vmem:[%s4064_s1 + $0x178] sm:$0xff]   ;;  %v221_v20 = vld [vmem:[%s3487_s8 + $0x28] sm:$0xff] }
  0x1d   : > { %2843 = vmatpush3.bf16.msra.mxu1 %v3172_v23  ;;  %2816 = vmatprep.subr.bf16.mxu0 %v3173_v24  ;;  %v3207_v14 = vld [vmem:[%s4064_s1 + $0x130] sm:$0xff]   ;;  %v3210_v17 = vld [vmem:[%s4064_s1 + $0x1f8] sm:$0xff]   ;;  %v245_v21 = vld [vmem:[%s3487_s8 + $0xe8] sm:$0xff] }
  0x1e   : > { %2844 = vmatprep.subr.bf16.mxu1 %v3174_v25  ;;  %v3208_v15 = vld [vmem:[%s4064_s1 + $0x1b0] sm:$0xff]   ;;  %v3211_v18 = vld [vmem:[%s4064_s1 + $0x138] sm:$0xff]   ;;  %v293_v23 = vpack.c.bf16 %v245_v21, %v221_v20  ;;  %v220_v25 = vld [vmem:[%s3487_s8 + $0x20] sm:$0xff] }
  0x1f   : > { %v3212_v19 = vld [vmem:[%s4064_s1 + $0x1b8] sm:$0xff]   ;;  %v3213_v32 = vld [vmem:[%s4064_s1 + $0x240] sm:$0xff]   ;;  %v3217_v36 = vld [vmem:[%s4064_s1 + $0x248] sm:$0xff]  }
  0x20   : > { %2817 = vmatpush3.bf16.msra.mxu0 %v3175_v26  ;;  %v223_v22 = vld [vmem:[%s3487_s8 + $0x38] sm:$0xff]  ;;  %v244_v26 = vld [vmem:[%s3487_s8 + $0xe0] sm:$0xff]  ;;  %v3218_v37 = vld [vmem:[%s4064_s1 + $0x2c8] sm:$0xff]  }
  0x21   : > { %2845 = vmatpush3.bf16.msra.mxu1 %v3176_v27  ;;  %2818 = vmatprep.subr.bf16.mxu0 %v3177_v28  ;;  %v247_v24 = vld [vmem:[%s3487_s8 + $0xf8] sm:$0xff]  ;;  %v292_v28 = vpack.c.bf16 %v244_v26, %v220_v25  ;;  %v3214_v33 = vld [vmem:[%s4064_s1 + $0x2c0] sm:$0xff]   ;;  %v3219_v38 = vld [vmem:[%s4064_s1 + $0x208] sm:$0xff]  }
  0x22   : > { %2846 = vmatprep.subr.bf16.mxu1 %v3178_v29  ;;  %v295_v27 = vpack.c.bf16 %v247_v24, %v223_v22  ;;  %v222_v29 = vld [vmem:[%s3487_s8 + $0x30] sm:$0xff]  ;;  %v3215_v34 = vld [vmem:[%s4064_s1 + $0x200] sm:$0xff]   ;;  %v3220_v39 = vld [vmem:[%s4064_s1 + $0x288] sm:$0xff]  }
  0x23   : > { %v3216_v35 = vld [vmem:[%s4064_s1 + $0x280] sm:$0xff]   ;;  %v3239_v2 = vld [vmem:[%s4064_s1 + $0x230] sm:$0xff]   ;;  %v3243_v6 = vld [vmem:[%s4064_s1 + $0x238] sm:$0xff]  }
  0x24   : > { %2819 = vmatpush3.bf16.msra.mxu0 %v3179_v30  ;;  %v246_v30 = vld [vmem:[%s3487_s8 + $0xf0] sm:$0xff]  ;;  %v268_v42 = vld [vmem:[%s3487_s8 + $0x1a0] sm:$0xff]  ;;  %v3244_v7 = vld [vmem:[%s4064_s1 + $0x2b8] sm:$0xff]  }
  0x25   : > { %2847 = vmatpush3.bf16.msra.mxu1 %v3180_v31  ;;  %2860 = vmatprep.subr.bf16.mxu0 %v3181_v44  ;;  %v294_v31 = vpack.c.bf16 %v246_v30, %v222_v29  ;;  %v3221_v44 = vld [vmem:[%s4064_s1 + $0x250] sm:$0xff]   ;;  %v225_v8 = vld [vmem:[%s3487_s8 + $0x48] sm:$0xff]  ;;  %v3245_v20 = vld [vmem:[%s4064_s1 + $0x340] sm:$0xff]  }
  0x26   : > { %2888 = vmatprep.subr.bf16.mxu1 %v3182_v45  ;;  %v3222_v45 = vld [vmem:[%s4064_s1 + $0x2d0] sm:$0xff]   ;;  %v3246_v21 = vld [vmem:[%s4064_s1 + $0x3c0] sm:$0xff]   ;;  %v3249_v24 = vld [vmem:[%s4064_s1 + $0x348] sm:$0xff]  }
  0x27   : > { %1912 = vmatmul.mubr.bf16.vlgmr.msra.gmra.mrb[0].mxu0 %v288_v40  ;;  %v269_v40 = vld [vmem:[%s3487_s8 + $0x1a8] sm:$0xff]  ;;  %v3247_v22 = vld [vmem:[%s4064_s1 + $0x300] sm:$0xff]  }
  0x28   : > { %1960 = vmatmul.mubr.bf16.vlgmr.msra.gmra.mrb[0].mxu1 %v290_v43  ;;  %2861 = vmatpush3.bf16.msra.mxu0 %v3183_v46  ;;  %v317_v41 = vpack.c.bf16 %v269_v40, %v269_v40  ;;  %v316_v43 = vpack.c.bf16 %v268_v42, %v268_v42  ;;  %v271_v46 = vld [vmem:[%s3487_s8 + $0x1b8] sm:$0xff]  ;;  %v3250_v25 = vld [vmem:[%s4064_s1 + $0x3c8] sm:$0xff]   ;;  %v272_v30 = vld [vmem:[%s3487_s8 + $0x1c0] sm:$0xff] }
  0x29   : > { %2889 = vmatpush3.bf16.msra.mxu1 %v3184_v47  ;;  %2862 = vmatprep.subr.bf16.mxu0 %v3185_v48  ;;  %v319_v47 = vpack.c.bf16 %v271_v46, %v271_v46  ;;  %v3223_v48 = vld [vmem:[%s4064_s1 + $0x210] sm:$0xff]   ;;  %v3251_v26 = vld [vmem:[%s4064_s1 + $0x308] sm:$0xff]   ;;  %v3257_v40 = vld [vmem:[%s4064_s1 + $0x358] sm:$0xff]  }
  0x2a   : > { %2890 = vmatprep.subr.bf16.mxu1 %v3186_v49  ;;  %1919 = vmatprep.mubr.bf16.mxu0 %v313_v3  ;;  %v3224_v49 = vld [vmem:[%s4064_s1 + $0x290] sm:$0xff]   ;;  %v3259_v42 = vld [vmem:[%s4064_s1 + $0x318] sm:$0xff]   ;;  %v3263_v46 = vld [vmem:[%s4064_s1 + $0x320] sm:$0xff]  }
  0x2b   : > { %1967 = vmatprep.mubr.bf16.mxu1 %v315_v10  ;;  %v3240_v3 = vld [vmem:[%s4064_s1 + $0x2b0] sm:$0xff]   ;;  %v227_v10 = vld [vmem:[%s3487_s8 + $0x58] sm:$0xff] }
  0x2c   : > { %2863 = vmatpush3.bf16.msra.mxu0 %v3187_v50  ;;  %v270_v50 = vld [vmem:[%s3487_s8 + $0x1b0] sm:$0xff] }
  0x2d   : > { %2891 = vmatpush3.bf16.msra.mxu1 %v3188_v51  ;;  %2864 = vmatprep.subr.bf16.mxu0 %v3189_v52  ;;  %v318_v51 = vpack.c.bf16 %v270_v50, %v270_v50  ;;  %v3225_v52 = vld [vmem:[%s4064_s1 + $0x258] sm:$0xff]   ;;  %v3267_v50 = vld [vmem:[%s4064_s1 + $0x328] sm:$0xff]  }
  0x2e   : > { %2892 = vmatprep.subr.bf16.mxu1 %v3190_v53  ;;  %v3226_v53 = vld [vmem:[%s4064_s1 + $0x2d8] sm:$0xff]  }
  0x2f   : > { %1920 = vmatmul.mubr.bf16.gmra.mrb[4].mxu0 %v312_v9  ;;  %v249_v9 = vld [vmem:[%s3487_s8 + $0x108] sm:$0xff] }
  0x30   : > { %2865 = vmatpush3.bf16.msra.mxu0 %v3191_v54  ;;  %1968 = vmatmul.mubr.bf16.gmra.mrb[4].mxu1 %v314_v11  ;;  %v3227_v54 = vld [vmem:[%s4064_s1 + $0x218] sm:$0xff]   ;;  %v297_v11 = vpack.c.bf16 %v249_v9, %v225_v8  ;;  %v3277_v8 = vld [vmem:[%s4064_s1 + $0x440] sm:$0xff]  }
  0x31   : > { %2893 = vmatpush3.bf16.msra.mxu1 %v3192_v55  ;;  %2866 = vmatprep.subr.bf16.mxu0 %v3193_v56  ;;  %v3228_v55 = vld [vmem:[%s4064_s1 + $0x298] sm:$0xff]   ;;  %v3229_v56 = vld [vmem:[%s4064_s1 + $0x260] sm:$0xff]  }
  0x32   : > { %2894 = vmatprep.subr.bf16.mxu1 %v3194_v57  ;;  %2007 = vmatprep.mubr.bf16.mxu0 %v293_v23  ;;  %v3230_v57 = vld [vmem:[%s4064_s1 + $0x2e0] sm:$0xff]  }
  0x33   : > { %2055 = vmatprep.mubr.bf16.mxu1 %v295_v27  ;;  %v3248_v23 = vld [vmem:[%s4064_s1 + $0x380] sm:$0xff]   ;;  %v3252_v27 = vld [vmem:[%s4064_s1 + $0x388] sm:$0xff]  }
  0x34   : > { %2867 = vmatpush3.bf16.msra.mxu0 %v3195_v58  ;;  %v3231_v58 = vld [vmem:[%s4064_s1 + $0x220] sm:$0xff]  }
  0x35   : > { %2895 = vmatpush3.bf16.msra.mxu1 %v3196_v59  ;;  %2868 = vmatprep.subr.bf16.mxu0 %v3197_v60  ;;  %v3232_v59 = vld [vmem:[%s4064_s1 + $0x2a0] sm:$0xff]   ;;  %v3233_v60 = vld [vmem:[%s4064_s1 + $0x268] sm:$0xff]  }
  0x36   : > { %2896 = vmatprep.subr.bf16.mxu1 %v3198_v61  ;;  %v3234_v61 = vld [vmem:[%s4064_s1 + $0x2e8] sm:$0xff]   ;;  %v3278_v9 = vld [vmem:[%s4064_s1 + $0x4c0] sm:$0xff]  }
  0x38   : > { %2869 = vmatpush3.bf16.msra.mxu0 %v3199_v62  ;;  %v3235_v62 = vld [vmem:[%s4064_s1 + $0x228] sm:$0xff]  }
  0x39   : > { %2897 = vmatpush3.bf16.msra.mxu1 %v3200_v63  ;;  %2870 = vmatprep.subr.bf16.mxu0 %v3201_v0  ;;  %v3236_v63 = vld [vmem:[%s4064_s1 + $0x2a8] sm:$0xff]   ;;  %v3237_v0 = vld [vmem:[%s4064_s1 + $0x270] sm:$0xff]  }
  0x3a   : > { %2898 = vmatprep.subr.bf16.mxu1 %v3202_v1  ;;  %v3238_v1 = vld [vmem:[%s4064_s1 + $0x2f0] sm:$0xff]  }
  0x3c   : > { %2871 = vmatpush3.bf16.msra.mxu0 %v3203_v4  ;;  %v3241_v4 = vld [vmem:[%s4064_s1 + $0x278] sm:$0xff]  }
  0x3d   : > { %2899 = vmatpush3.bf16.msra.mxu1 %v3204_v5  ;;  %2872 = vmatprep.subr.bf16.mxu0 %v3205_v12  ;;  %v3242_v5 = vld [vmem:[%s4064_s1 + $0x2f8] sm:$0xff]  }
  0x3e   : > { %2900 = vmatprep.subr.bf16.mxu1 %v3206_v13  ;;  %v251_v12 = vld [vmem:[%s3487_s8 + $0x118] sm:$0xff]  ;;  %v224_v13 = vld [vmem:[%s3487_s8 + $0x40] sm:$0xff] }
  0x40   : > { %2873 = vmatpush3.bf16.msra.mxu0 %v3207_v14  ;;  %v248_v14 = vld [vmem:[%s3487_s8 + $0x100] sm:$0xff] }
  0x41   : > { %2901 = vmatpush3.bf16.msra.mxu1 %v3208_v15  ;;  %2874 = vmatprep.subr.bf16.mxu0 %v3209_v16  ;;  %v299_v15 = vpack.c.bf16 %v251_v12, %v227_v10  ;;  %v296_v16 = vpack.c.bf16 %v248_v14, %v224_v13  ;;  %v3279_v10 = vld [vmem:[%s4064_s1 + $0x400] sm:$0xff]   ;;  %v3281_v12 = vld [vmem:[%s4064_s1 + $0x448] sm:$0xff]  }
  0x42   : > { %2902 = vmatprep.subr.bf16.mxu1 %v3210_v17  ;;  %v226_v17 = vld [vmem:[%s3487_s8 + $0x50] sm:$0xff]  ;;  %v3282_v13 = vld [vmem:[%s4064_s1 + $0x4c8] sm:$0xff]  }
  0x43   : > { %v3283_v14 = vld [vmem:[%s4064_s1 + $0x408] sm:$0xff]  }
  0x44   : > { %2875 = vmatpush3.bf16.msra.mxu0 %v3211_v18  ;;  %v250_v18 = vld [vmem:[%s3487_s8 + $0x110] sm:$0xff] }
  0x45   : > { %2903 = vmatpush3.bf16.msra.mxu1 %v3212_v19  ;;  %2916 = vmatprep.subr.bf16.mxu0 %v3213_v32  ;;  %v298_v19 = vpack.c.bf16 %v250_v18, %v226_v17  ;;  %v3253_v32 = vld [vmem:[%s4064_s1 + $0x350] sm:$0xff]   ;;  %v276_v18 = vld [vmem:[%s3487_s8 + $0x1e0] sm:$0xff] }
  0x46   : > { %2944 = vmatprep.subr.bf16.mxu1 %v3214_v33  ;;  %v3254_v33 = vld [vmem:[%s4064_s1 + $0x3d0] sm:$0xff]  }
  0x47   : > { %2008 = vmatmul.mubr.bf16.vlgmr.msra.gmra.mrb[8].mxu0 %v292_v28  ;;  %v273_v28 = vld [vmem:[%s3487_s8 + $0x1c8] sm:$0xff] }
  0x48   : > { %2056 = vmatmul.mubr.bf16.vlgmr.msra.gmra.mrb[8].mxu1 %v294_v31  ;;  %2917 = vmatpush3.bf16.msra.mxu0 %v3215_v34  ;;  %v321_v29 = vpack.c.bf16 %v273_v28, %v273_v28  ;;  %v320_v31 = vpack.c.bf16 %v272_v30, %v272_v30  ;;  %v275_v34 = vld [vmem:[%s3487_s8 + $0x1d8] sm:$0xff] }
  0x49   : > { %2945 = vmatpush3.bf16.msra.mxu1 %v3216_v35  ;;  %2918 = vmatprep.subr.bf16.mxu0 %v3217_v36  ;;  %v323_v35 = vpack.c.bf16 %v275_v34, %v275_v34  ;;  %v3255_v36 = vld [vmem:[%s4064_s1 + $0x310] sm:$0xff]   ;;  %v3289_v28 = vld [vmem:[%s4064_s1 + $0x458] sm:$0xff]   ;;  %v3295_v34 = vld [vmem:[%s4064_s1 + $0x420] sm:$0xff]  }
  0x4a   : > { %2946 = vmatprep.subr.bf16.mxu1 %v3218_v37  ;;  %2015 = vmatprep.mubr.bf16.mxu0 %v317_v41  ;;  %v3256_v37 = vld [vmem:[%s4064_s1 + $0x390] sm:$0xff]   ;;  %v3258_v41 = vld [vmem:[%s4064_s1 + $0x3d8] sm:$0xff]  }
  0x4b   : > { %2063 = vmatprep.mubr.bf16.mxu1 %v319_v47  ;;  %v3264_v47 = vld [vmem:[%s4064_s1 + $0x3a0] sm:$0xff]   ;;  %v3291_v30 = vld [vmem:[%s4064_s1 + $0x418] sm:$0xff]  }
  0x4c   : > { %2919 = vmatpush3.bf16.msra.mxu0 %v3219_v38  ;;  %v274_v38 = vld [vmem:[%s3487_s8 + $0x1d0] sm:$0xff] }
  0x4d   : > { %2947 = vmatpush3.bf16.msra.mxu1 %v3220_v39  ;;  %2920 = vmatprep.subr.bf16.mxu0 %v3221_v44  ;;  %v322_v39 = vpack.c.bf16 %v274_v38, %v274_v38  ;;  %v3261_v44 = vld [vmem:[%s4064_s1 + $0x360] sm:$0xff]   ;;  %v3299_v38 = vld [vmem:[%s4064_s1 + $0x428] sm:$0xff]  }
  0x4e   : > { %2948 = vmatprep.subr.bf16.mxu1 %v3222_v45  ;;  %v3262_v45 = vld [vmem:[%s4064_s1 + $0x3e0] sm:$0xff]  }
  0x4f   : > { %2016 = vmatmul.mubr.bf16.gmra.mrb[12].mxu0 %v316_v43  ;;  %v3260_v43 = vld [vmem:[%s4064_s1 + $0x398] sm:$0xff]  }
  0x50   : > { %2921 = vmatpush3.bf16.msra.mxu0 %v3223_v48  ;;  %2064 = vmatmul.mubr.bf16.gmra.mrb[12].mxu1 %v318_v51  ;;  %v3265_v48 = vld [vmem:[%s4064_s1 + $0x368] sm:$0xff]  }
  0x51   : > { %2949 = vmatpush3.bf16.msra.mxu1 %v3224_v49  ;;  %2922 = vmatprep.subr.bf16.mxu0 %v3225_v52  ;;  %v3266_v49 = vld [vmem:[%s4064_s1 + $0x3e8] sm:$0xff]   ;;  %v3269_v52 = vld [vmem:[%s4064_s1 + $0x370] sm:$0xff]  }
  0x52   : > { %2950 = vmatprep.subr.bf16.mxu1 %v3226_v53  ;;  %2103 = vmatprep.mubr.bf16.mxu0 %v297_v11  ;;  %v3268_v51 = vld [vmem:[%s4064_s1 + $0x3a8] sm:$0xff]   ;;  %v3270_v53 = vld [vmem:[%s4064_s1 + $0x3f0] sm:$0xff]   ;;  %v3280_v11 = vld [vmem:[%s4064_s1 + $0x480] sm:$0xff]  }
  0x53   : > { %2151 = vmatprep.mubr.bf16.mxu1 %v299_v15  ;;  %v3284_v15 = vld [vmem:[%s4064_s1 + $0x488] sm:$0xff]  }
  0x54   : > { %2923 = vmatpush3.bf16.msra.mxu0 %v3227_v54  ;;  %v3271_v54 = vld [vmem:[%s4064_s1 + $0x330] sm:$0xff]  }
  0x55   : > { %2951 = vmatpush3.bf16.msra.mxu1 %v3228_v55  ;;  %2924 = vmatprep.subr.bf16.mxu0 %v3229_v56  ;;  %v3272_v55 = vld [vmem:[%s4064_s1 + $0x3b0] sm:$0xff]   ;;  %v3273_v56 = vld [vmem:[%s4064_s1 + $0x378] sm:$0xff]  }
  0x56   : > { %2952 = vmatprep.subr.bf16.mxu1 %v3230_v57  ;;  %v3274_v57 = vld [vmem:[%s4064_s1 + $0x3f8] sm:$0xff]  }
  0x58   : > { %2925 = vmatpush3.bf16.msra.mxu0 %v3231_v58  ;;  %v3275_v58 = vld [vmem:[%s4064_s1 + $0x338] sm:$0xff]  }
  0x59   : > { %2953 = vmatpush3.bf16.msra.mxu1 %v3232_v59  ;;  %2926 = vmatprep.subr.bf16.mxu0 %v3233_v60  ;;  %v3276_v59 = vld [vmem:[%s4064_s1 + $0x3b8] sm:$0xff]   ;;  %v229_v60 = vld [vmem:[%s3487_s8 + $0x68] sm:$0xff] }
  0x5a   : > { %2954 = vmatprep.subr.bf16.mxu1 %v3234_v61  ;;  %v253_v61 = vld [vmem:[%s3487_s8 + $0x128] sm:$0xff] }
  0x5c   : > { %2927 = vmatpush3.bf16.msra.mxu0 %v3235_v62  ;;  %v231_v62 = vld [vmem:[%s3487_s8 + $0x78] sm:$0xff] }
  0x5d   : > { %2955 = vmatpush3.bf16.msra.mxu1 %v3236_v63  ;;  %2928 = vmatprep.subr.bf16.mxu0 %v3237_v0  ;;  %v301_v63 = vpack.c.bf16 %v253_v61, %v229_v60  ;;  %v255_v0 = vld [vmem:[%s3487_s8 + $0x138] sm:$0xff]  ;;  %v3309_v60 = vld [vmem:[%s4064_s1 + $0x540] sm:$0xff]  }
  0x5e   : > { %2956 = vmatprep.subr.bf16.mxu1 %v3238_v1  ;;  %v228_v1 = vld [vmem:[%s3487_s8 + $0x60] sm:$0xff] }
  0x5f   : > { %v3310_v61 = vld [vmem:[%s4064_s1 + $0x5c0] sm:$0xff]  }
  0x60   : > { %2929 = vmatpush3.bf16.msra.mxu0 %v3239_v2  ;;  %v252_v2 = vld [vmem:[%s3487_s8 + $0x120] sm:$0xff] }
  0x61   : > { %2957 = vmatpush3.bf16.msra.mxu1 %v3240_v3  ;;  %2930 = vmatprep.subr.bf16.mxu0 %v3241_v4  ;;  %v303_v3 = vpack.c.bf16 %v255_v0, %v231_v62  ;;  %v300_v4 = vpack.c.bf16 %v252_v2, %v228_v1  ;;  %v3311_v62 = vld [vmem:[%s4064_s1 + $0x500] sm:$0xff]   ;;  %v3313_v0 = vld [vmem:[%s4064_s1 + $0x548] sm:$0xff]  }
  0x62   : > { %2958 = vmatprep.subr.bf16.mxu1 %v3242_v5  ;;  %v230_v5 = vld [vmem:[%s3487_s8 + $0x70] sm:$0xff]  ;;  %v3314_v1 = vld [vmem:[%s4064_s1 + $0x5c8] sm:$0xff]  }
  0x63   : > { %v3315_v2 = vld [vmem:[%s4064_s1 + $0x508] sm:$0xff]  }
  0x64   : > { %2931 = vmatpush3.bf16.msra.mxu0 %v3243_v6  ;;  %v254_v6 = vld [vmem:[%s3487_s8 + $0x130] sm:$0xff] }
  0x65   : > { %2959 = vmatpush3.bf16.msra.mxu1 %v3244_v7  ;;  %2972 = vmatprep.subr.bf16.mxu0 %v3245_v20  ;;  %v302_v7 = vpack.c.bf16 %v254_v6, %v230_v5  ;;  %v3285_v20 = vld [vmem:[%s4064_s1 + $0x450] sm:$0xff]   ;;  %v280_v6 = vld [vmem:[%s3487_s8 + $0x200] sm:$0xff] }
  0x66   : > { %3000 = vmatprep.subr.bf16.mxu1 %v3246_v21  ;;  %v3286_v21 = vld [vmem:[%s4064_s1 + $0x4d0] sm:$0xff]  }
  0x67   : > { %2104 = vmatmul.mubr.bf16.vlgmr.msra.gmra.mrb[16].mxu0 %v296_v16  ;;  %v277_v16 = vld [vmem:[%s3487_s8 + $0x1e8] sm:$0xff] }
  0x68   : > { %2152 = vmatmul.mubr.bf16.vlgmr.msra.gmra.mrb[16].mxu1 %v298_v19  ;;  %2973 = vmatpush3.bf16.msra.mxu0 %v3247_v22  ;;  %v325_v17 = vpack.c.bf16 %v277_v16, %v277_v16  ;;  %v324_v19 = vpack.c.bf16 %v276_v18, %v276_v18  ;;  %v279_v22 = vld [vmem:[%s3487_s8 + $0x1f8] sm:$0xff] }
  0x69   : > { %3001 = vmatpush3.bf16.msra.mxu1 %v3248_v23  ;;  %2974 = vmatprep.subr.bf16.mxu0 %v3249_v24  ;;  %v327_v23 = vpack.c.bf16 %v279_v22, %v279_v22  ;;  %v3287_v24 = vld [vmem:[%s4064_s1 + $0x410] sm:$0xff]   ;;  %v3321_v16 = vld [vmem:[%s4064_s1 + $0x558] sm:$0xff]   ;;  %v3327_v22 = vld [vmem:[%s4064_s1 + $0x520] sm:$0xff]  }
  0x6a   : > { %3002 = vmatprep.subr.bf16.mxu1 %v3250_v25  ;;  %2111 = vmatprep.mubr.bf16.mxu0 %v321_v29  ;;  %v3288_v25 = vld [vmem:[%s4064_s1 + $0x490] sm:$0xff]   ;;  %v3290_v29 = vld [vmem:[%s4064_s1 + $0x4d8] sm:$0xff]  }
  0x6b   : > { %2159 = vmatprep.mubr.bf16.mxu1 %v323_v35  ;;  %v3296_v35 = vld [vmem:[%s4064_s1 + $0x4a0] sm:$0xff]   ;;  %v3323_v18 = vld [vmem:[%s4064_s1 + $0x518] sm:$0xff]  }
  0x6c   : > { %2975 = vmatpush3.bf16.msra.mxu0 %v3251_v26  ;;  %v278_v26 = vld [vmem:[%s3487_s8 + $0x1f0] sm:$0xff] }
  0x6d   : > { %3003 = vmatpush3.bf16.msra.mxu1 %v3252_v27  ;;  %2976 = vmatprep.subr.bf16.mxu0 %v3253_v32  ;;  %v326_v27 = vpack.c.bf16 %v278_v26, %v278_v26  ;;  %v3293_v32 = vld [vmem:[%s4064_s1 + $0x460] sm:$0xff]   ;;  %v3331_v26 = vld [vmem:[%s4064_s1 + $0x528] sm:$0xff]  }
  0x6e   : > { %3004 = vmatprep.subr.bf16.mxu1 %v3254_v33  ;;  %v3294_v33 = vld [vmem:[%s4064_s1 + $0x4e0] sm:$0xff]  }
  0x6f   : > { %2112 = vmatmul.mubr.bf16.gmra.mrb[20].mxu0 %v320_v31  ;;  %v3292_v31 = vld [vmem:[%s4064_s1 + $0x498] sm:$0xff]  }
  0x70   : > { %2977 = vmatpush3.bf16.msra.mxu0 %v3255_v36  ;;  %2160 = vmatmul.mubr.bf16.gmra.mrb[20].mxu1 %v322_v39  ;;  %v3297_v36 = vld [vmem:[%s4064_s1 + $0x468] sm:$0xff]  }
  0x71   : > { %3005 = vmatpush3.bf16.msra.mxu1 %v3256_v37  ;;  %2978 = vmatprep.subr.bf16.mxu0 %v3257_v40  ;;  %v3298_v37 = vld [vmem:[%s4064_s1 + $0x4e8] sm:$0xff]   ;;  %v3301_v40 = vld [vmem:[%s4064_s1 + $0x470] sm:$0xff]  }
  0x72   : > { %3006 = vmatprep.subr.bf16.mxu1 %v3258_v41  ;;  %2199 = vmatprep.mubr.bf16.mxu0 %v301_v63  ;;  %v3300_v39 = vld [vmem:[%s4064_s1 + $0x4a8] sm:$0xff]   ;;  %v3302_v41 = vld [vmem:[%s4064_s1 + $0x4f0] sm:$0xff]   ;;  %v3312_v63 = vld [vmem:[%s4064_s1 + $0x580] sm:$0xff]  }
  0x73   : > { %2247 = vmatprep.mubr.bf16.mxu1 %v303_v3  ;;  %v3316_v3 = vld [vmem:[%s4064_s1 + $0x588] sm:$0xff]  }
  0x74   : > { %2979 = vmatpush3.bf16.msra.mxu0 %v3259_v42  ;;  %v3303_v42 = vld [vmem:[%s4064_s1 + $0x430] sm:$0xff]  }
  0x75   : > { %3007 = vmatpush3.bf16.msra.mxu1 %v3260_v43  ;;  %2980 = vmatprep.subr.bf16.mxu0 %v3261_v44  ;;  %v3304_v43 = vld [vmem:[%s4064_s1 + $0x4b0] sm:$0xff]   ;;  %v3305_v44 = vld [vmem:[%s4064_s1 + $0x478] sm:$0xff]  }
  0x76   : > { %3008 = vmatprep.subr.bf16.mxu1 %v3262_v45  ;;  %v3306_v45 = vld [vmem:[%s4064_s1 + $0x4f8] sm:$0xff]  }
  0x78   : > { %2981 = vmatpush3.bf16.msra.mxu0 %v3263_v46  ;;  %v3307_v46 = vld [vmem:[%s4064_s1 + $0x438] sm:$0xff]  }
  0x79   : > { %3009 = vmatpush3.bf16.msra.mxu1 %v3264_v47  ;;  %2982 = vmatprep.subr.bf16.mxu0 %v3265_v48  ;;  %v3308_v47 = vld [vmem:[%s4064_s1 + $0x4b8] sm:$0xff]   ;;  %v233_v48 = vld [vmem:[%s3487_s8 + $0x88] sm:$0xff] }
  0x7a   : > { %3010 = vmatprep.subr.bf16.mxu1 %v3266_v49  ;;  %v257_v49 = vld [vmem:[%s3487_s8 + $0x148] sm:$0xff] }
  0x7c   : > { %2983 = vmatpush3.bf16.msra.mxu0 %v3267_v50  ;;  %v235_v50 = vld [vmem:[%s3487_s8 + $0x98] sm:$0xff] }
  0x7d   : > { %3011 = vmatpush3.bf16.msra.mxu1 %v3268_v51  ;;  %2984 = vmatprep.subr.bf16.mxu0 %v3269_v52  ;;  %v305_v51 = vpack.c.bf16 %v257_v49, %v233_v48  ;;  %v259_v52 = vld [vmem:[%s3487_s8 + $0x158] sm:$0xff] }
  0x7e   : > { %3012 = vmatprep.subr.bf16.mxu1 %v3270_v53  ;;  %v232_v53 = vld [vmem:[%s3487_s8 + $0x80] sm:$0xff] }
  0x80   : > { %2985 = vmatpush3.bf16.msra.mxu0 %v3271_v54  ;;  %v256_v54 = vld [vmem:[%s3487_s8 + $0x140] sm:$0xff] }
  0x81   : > { %3013 = vmatpush3.bf16.msra.mxu1 %v3272_v55  ;;  %2986 = vmatprep.subr.bf16.mxu0 %v3273_v56  ;;  %v307_v55 = vpack.c.bf16 %v259_v52, %v235_v50  ;;  %v304_v56 = vpack.c.bf16 %v256_v54, %v232_v53  ;;  %v287_v50 = vld [vmem:[%s3487_s8 + $0x238] sm:$0xff]  ;;  %v284_v52 = vld [vmem:[%s3487_s8 + $0x220] sm:$0xff]  ;;  %v286_v53 = vld [vmem:[%s3487_s8 + $0x230] sm:$0xff] }
  0x82   : > { %3014 = vmatprep.subr.bf16.mxu1 %v3274_v57  ;;  %v234_v57 = vld [vmem:[%s3487_s8 + $0x90] sm:$0xff]  ;;  %v332_v54 = vpack.c.bf16 %v284_v52, %v284_v52 }
  0x84   : > { %2987 = vmatpush3.bf16.msra.mxu0 %v3275_v58  ;;  %v258_v58 = vld [vmem:[%s3487_s8 + $0x150] sm:$0xff] }
  0x85   : > { %3015 = vmatpush3.bf16.msra.mxu1 %v3276_v59  ;;  %3028 = vmatprep.subr.bf16.mxu0 %v3277_v8  ;;  %v306_v59 = vpack.c.bf16 %v258_v58, %v234_v57  ;;  %v3317_v8 = vld [vmem:[%s4064_s1 + $0x550] sm:$0xff]   ;;  %v2609_v58 = vld [vmem:[%s4065_s2] ss:$0 sm:$0xff] }
  0x86   : > { %3056 = vmatprep.subr.bf16.mxu1 %v3278_v9  ;;  %v3318_v9 = vld [vmem:[%s4064_s1 + $0x5d0] sm:$0xff]  }
  0x87   : > { %2200 = vmatmul.mubr.bf16.vlgmr.msra.gmra.mrb[24].mxu0 %v300_v4  ;;  %v281_v4 = vld [vmem:[%s3487_s8 + $0x208] sm:$0xff] }
  0x88   : > { %2248 = vmatmul.mubr.bf16.vlgmr.msra.gmra.mrb[24].mxu1 %v302_v7  ;;  %3029 = vmatpush3.bf16.msra.mxu0 %v3279_v10  ;;  %v329_v5 = vpack.c.bf16 %v281_v4, %v281_v4  ;;  %v328_v7 = vpack.c.bf16 %v280_v6, %v280_v6  ;;  %v283_v10 = vld [vmem:[%s3487_s8 + $0x218] sm:$0xff] }
  0x89   : > { %3057 = vmatpush3.bf16.msra.mxu1 %v3280_v11  ;;  %3030 = vmatprep.subr.bf16.mxu0 %v3281_v12  ;;  %v331_v11 = vpack.c.bf16 %v283_v10, %v283_v10  ;;  %v3319_v12 = vld [vmem:[%s4064_s1 + $0x510] sm:$0xff]  }
  0x8a   : > { %3058 = vmatprep.subr.bf16.mxu1 %v3282_v13  ;;  %2207 = vmatprep.mubr.bf16.mxu0 %v325_v17  ;;  %v3320_v13 = vld [vmem:[%s4064_s1 + $0x590] sm:$0xff]   ;;  %v3322_v17 = vld [vmem:[%s4064_s1 + $0x5d8] sm:$0xff]  }
  0x8b   : > { %2255 = vmatprep.mubr.bf16.mxu1 %v327_v23  ;;  %v3328_v23 = vld [vmem:[%s4064_s1 + $0x5a0] sm:$0xff]  }
  0x8c   : > { %3031 = vmatpush3.bf16.msra.mxu0 %v3283_v14  ;;  %v282_v14 = vld [vmem:[%s3487_s8 + $0x210] sm:$0xff] }
  0x8d   : > { %3059 = vmatpush3.bf16.msra.mxu1 %v3284_v15  ;;  %3032 = vmatprep.subr.bf16.mxu0 %v3285_v20  ;;  %v330_v15 = vpack.c.bf16 %v282_v14, %v282_v14  ;;  %v3325_v20 = vld [vmem:[%s4064_s1 + $0x560] sm:$0xff]  }
  0x8e   : > { %3060 = vmatprep.subr.bf16.mxu1 %v3286_v21  ;;  %v3326_v21 = vld [vmem:[%s4064_s1 + $0x5e0] sm:$0xff]  }
  0x8f   : > { %2208 = vmatmul.mubr.bf16.gmra.mrb[28].mxu0 %v324_v19  ;;  %v3324_v19 = vld [vmem:[%s4064_s1 + $0x598] sm:$0xff]  }
  0x90   : > { %3033 = vmatpush3.bf16.msra.mxu0 %v3287_v24  ;;  %2256 = vmatmul.mubr.bf16.gmra.mrb[28].mxu1 %v326_v27  ;;  %v3329_v24 = vld [vmem:[%s4064_s1 + $0x568] sm:$0xff]  }
  0x91   : > { %3061 = vmatpush3.bf16.msra.mxu1 %v3288_v25  ;;  %3034 = vmatprep.subr.bf16.mxu0 %v3289_v28  ;;  %v3330_v25 = vld [vmem:[%s4064_s1 + $0x5e8] sm:$0xff]   ;;  %v3333_v28 = vld [vmem:[%s4064_s1 + $0x570] sm:$0xff]  }
  0x92   : > { %3062 = vmatprep.subr.bf16.mxu1 %v3290_v29  ;;  %2295 = vmatprep.mubr.bf16.mxu0 %v305_v51  ;;  %v3332_v27 = vld [vmem:[%s4064_s1 + $0x5a8] sm:$0xff]   ;;  %v3334_v29 = vld [vmem:[%s4064_s1 + $0x5f0] sm:$0xff]   ;;  %v335_v51 = vpack.c.bf16 %v287_v50, %v287_v50 }
  0x93   : > { %2343 = vmatprep.mubr.bf16.mxu1 %v307_v55  ;;  %v334_v55 = vpack.c.bf16 %v286_v53, %v286_v53 }
  0x94   : > { %3035 = vmatpush3.bf16.msra.mxu0 %v3291_v30  ;;  %v3335_v30 = vld [vmem:[%s4064_s1 + $0x530] sm:$0xff]  }
  0x95   : > { %3063 = vmatpush3.bf16.msra.mxu1 %v3292_v31  ;;  %3036 = vmatprep.subr.bf16.mxu0 %v3293_v32  ;;  %v3336_v31 = vld [vmem:[%s4064_s1 + $0x5b0] sm:$0xff]   ;;  %v3337_v32 = vld [vmem:[%s4064_s1 + $0x578] sm:$0xff]  }
  0x96   : > { %3064 = vmatprep.subr.bf16.mxu1 %v3294_v33  ;;  %v3338_v33 = vld [vmem:[%s4064_s1 + $0x5f8] sm:$0xff]  }
  0x98   : > { %3037 = vmatpush3.bf16.msra.mxu0 %v3295_v34  ;;  %v3339_v34 = vld [vmem:[%s4064_s1 + $0x538] sm:$0xff]  }
  0x99   : > { %3065 = vmatpush3.bf16.msra.mxu1 %v3296_v35  ;;  %3038 = vmatprep.subr.bf16.mxu0 %v3297_v36  ;;  %v3340_v35 = vld [vmem:[%s4064_s1 + $0x5b8] sm:$0xff]   ;;  %v237_v36 = vld [vmem:[%s3487_s8 + $0xa8] sm:$0xff] }
  0x9a   : > { %3066 = vmatprep.subr.bf16.mxu1 %v3298_v37  ;;  %v261_v37 = vld [vmem:[%s3487_s8 + $0x168] sm:$0xff] }
  0x9c   : > { %3039 = vmatpush3.bf16.msra.mxu0 %v3299_v38  ;;  %v239_v38 = vld [vmem:[%s3487_s8 + $0xb8] sm:$0xff] }
  0x9d   : > { %3067 = vmatpush3.bf16.msra.mxu1 %v3300_v39  ;;  %3040 = vmatprep.subr.bf16.mxu0 %v3301_v40  ;;  %v309_v39 = vpack.c.bf16 %v261_v37, %v237_v36  ;;  %v263_v40 = vld [vmem:[%s3487_s8 + $0x178] sm:$0xff] }
  0x9e   : > { %3068 = vmatprep.subr.bf16.mxu1 %v3302_v41  ;;  %v236_v41 = vld [vmem:[%s3487_s8 + $0xa0] sm:$0xff] }
  0xa0   : > { %3041 = vmatpush3.bf16.msra.mxu0 %v3303_v42  ;;  %v260_v42 = vld [vmem:[%s3487_s8 + $0x160] sm:$0xff] }
  0xa1   : > { %3069 = vmatpush3.bf16.msra.mxu1 %v3304_v43  ;;  %3042 = vmatprep.subr.bf16.mxu0 %v3305_v44  ;;  %v311_v43 = vpack.c.bf16 %v263_v40, %v239_v38  ;;  %v308_v44 = vpack.c.bf16 %v260_v42, %v236_v41 }
  0xa2   : > { %3070 = vmatprep.subr.bf16.mxu1 %v3306_v45  ;;  %v238_v45 = vld [vmem:[%s3487_s8 + $0xb0] sm:$0xff] }
  0xa4   : > { %3043 = vmatpush3.bf16.msra.mxu0 %v3307_v46  ;;  %v262_v46 = vld [vmem:[%s3487_s8 + $0x170] sm:$0xff] }
  0xa5   : > { %3071 = vmatpush3.bf16.msra.mxu1 %v3308_v47  ;;  %3084 = vmatprep.subr.bf16.mxu0 %v3309_v60  ;;  %v285_v47 = vld [vmem:[%s3487_s8 + $0x228] sm:$0xff]  ;;  %v310_v48 = vpack.c.bf16 %v262_v46, %v238_v45  ;;  %s2473_s8 = smul.u32 24, %s3386_s16  ;;  %s4071_s16 = smov (!%p211_p4, %s3386_s16), 1 }
  0xa6   : > { %3112 = vmatprep.subr.bf16.mxu1 %v3310_v61  ;;  %v333_v49 = vpack.c.bf16 %v285_v47, %v285_v47  ;;  %s2608_s21 = sshll.u32 %s4071_s16, 1 }
  0xa7   : > { %2296 = vmatmul.mubr.bf16.vlgmr.msra.gmra.mrb[32].mxu0 %v304_v56  ;;  %s2474_s30 = ssub.s32 40, %s2473_s8  ;;  %s214_s12 = scalar_lea.vmem %s4067_s4, %s2608_s21 }
  0xa8   : > { %2344 = vmatmul.mubr.bf16.vlgmr.msra.gmra.mrb[32].mxu1 %v306_v59  ;;  %3085 = vmatpush3.bf16.msra.mxu0 %v3311_v62 }
  0xa9   : > { %3113 = vmatpush3.bf16.msra.mxu1 %v3312_v63  ;;  %3086 = vmatprep.subr.bf16.mxu0 %v3313_v0 }
  0xaa   : > { %3114 = vmatprep.subr.bf16.mxu1 %v3314_v1  ;;  %2303 = vmatprep.mubr.bf16.mxu0 %v329_v5 }
  0xab   : > { %2351 = vmatprep.mubr.bf16.mxu1 %v331_v11 }
  0xac   : > { %3087 = vmatpush3.bf16.msra.mxu0 %v3315_v2 }
  0xad   : > { %3115 = vmatpush3.bf16.msra.mxu1 %v3316_v3  ;;  %3088 = vmatprep.subr.bf16.mxu0 %v3317_v8 }
  0xae   : > { %3116 = vmatprep.subr.bf16.mxu1 %v3318_v9 }
  0xaf   : > { %2304 = vmatmul.mubr.bf16.gmra.mrb[36].mxu0 %v328_v7 }
  0xb0   : > { %3089 = vmatpush3.bf16.msra.mxu0 %v3319_v12  ;;  %2352 = vmatmul.mubr.bf16.gmra.mrb[36].mxu1 %v330_v15 }
  0xb1   : > { %3117 = vmatpush3.bf16.msra.mxu1 %v3320_v13  ;;  %3090 = vmatprep.subr.bf16.mxu0 %v3321_v16 }
  0xb2   : > { %3118 = vmatprep.subr.bf16.mxu1 %v3322_v17  ;;  %2391 = vmatprep.mubr.bf16.mxu0 %v309_v39 }
  0xb3   : > { %2439 = vmatprep.mubr.bf16.mxu1 %v311_v43 }
  0xb4   : > { %3091 = vmatpush3.bf16.msra.mxu0 %v3323_v18 }
  0xb5   : > { %3119 = vmatpush3.bf16.msra.mxu1 %v3324_v19  ;;  %3092 = vmatprep.subr.bf16.mxu0 %v3325_v20 }
  0xb6   : > { %3120 = vmatprep.subr.bf16.mxu1 %v3326_v21 }
  0xb8   : > { %3093 = vmatpush3.bf16.msra.mxu0 %v3327_v22 }
  0xb9   : > { %3121 = vmatpush3.bf16.msra.mxu1 %v3328_v23  ;;  %3094 = vmatprep.subr.bf16.mxu0 %v3329_v24 }
  0xba   : > { %3122 = vmatprep.subr.bf16.mxu1 %v3330_v25 }
  0xbc   : > { %3095 = vmatpush3.bf16.msra.mxu0 %v3331_v26 }
  0xbd   : > { %3123 = vmatpush3.bf16.msra.mxu1 %v3332_v27  ;;  %3096 = vmatprep.subr.bf16.mxu0 %v3333_v28 }
  0xbe   : > { %3124 = vmatprep.subr.bf16.mxu1 %v3334_v29 }
  0xc0   : > { %3097 = vmatpush3.bf16.msra.mxu0 %v3335_v30 }
  0xc1   : > { %3125 = vmatpush3.bf16.msra.mxu1 %v3336_v31  ;;  %3098 = vmatprep.subr.bf16.mxu0 %v3337_v32 }
  0xc2   : > { %3126 = vmatprep.subr.bf16.mxu1 %v3338_v33 }
  0xc4   : > { %3099 = vmatpush3.bf16.msra.mxu0 %v3339_v34 }
  0xc5   : > { %3127 = vmatpush3.bf16.msra.mxu1 %v3340_v35 }
  0xc7   : > { %2392 = vmatmul.mubr.bf16.vlgmr.msra.gmra.mrb[40].mxu0 %v308_v44 }
  0xc8   : > { %2440 = vmatmul.mubr.bf16.vlgmr.msra.gmra.mrb[40].mxu1 %v310_v48  ;;  %2399 = vmatprep.mubr.bf16.mxu0 %v333_v49 }
  0xc9   : > { %2447 = vmatprep.mubr.bf16.mxu1 %v335_v51 }
  0xcf   : > { %2400 = vmatmul.mubr.bf16.gmra.mrb[44].mxu0 %v332_v54 }
  0xd0   : > { %2448 = vmatmul.mubr.bf16.gmra.mrb[44].mxu1 %v334_v55 }
  0xfa   : > { %v2820_v56 = vpop.f32.mrb[0].mxu0 }
  0xfb   : > { %v2848_v57 = vpop.f32.mrb[0].mxu1  ;;  %v2821_v59 = vpop.f32.mrb[1].mxu0 }
  0xfc   : > { %v2822_v60 = vadd.f32 %v2821_v59, %v2820_v56  ;;  %v2849_v61 = vpop.f32.mrb[1].mxu1  ;;  %v2823_v62 = vpop.f32.mrb[2].mxu0 }
  0xfd   : > { %v2850_v63 = vadd.f32 %v2849_v61, %v2848_v57  ;;  %v2851_v0 = vpop.f32.mrb[2].mxu1  ;;  %v2824_v1 = vpop.f32.mrb[3].mxu0 }
  0xfe   : > { %v1914_v2 = vadd.f32 %v2822_v60, %v2609_v58  ;;  %v2825_v3 = vadd.f32 %v2824_v1, %v2823_v62  ;;  %v2852_v4 = vpop.f32.mrb[3].mxu1 }
  0xff   : > { %v2853_v5 = vadd.f32 %v2852_v4, %v2851_v0 }
 0x100   : > { %v1962_v6 = vadd.f32 %v2850_v63, %v1914_v2  ;;  %v1917_v7 = vadd.f32 %v2825_v3, %v2609_v58 }
 0x102   : > { %v1965_v8 = vadd.f32 %v2853_v5, %v1917_v7  ;;  %v2826_v9 = vpop.f32.mrb[4].mxu0 }
 0x103   : > { %v2827_v10 = vpop.f32.mrb[5].mxu0  ;;  %v2854_v11 = vpop.f32.mrb[4].mxu1 }
 0x104   : > { %v2828_v12 = vadd.f32 %v2827_v10, %v2826_v9  ;;  %v2829_v13 = vpop.f32.mrb[6].mxu0  ;;  %v2855_v14 = vpop.f32.mrb[5].mxu1 }
 0x105   : > { %v2830_v15 = vpop.f32.mrb[7].mxu0  ;;  %v2856_v16 = vadd.f32 %v2855_v14, %v2854_v11  ;;  %v2857_v17 = vpop.f32.mrb[6].mxu1 }
 0x106   : > { %v1922_v18 = vadd.f32 %v2828_v12, %v2609_v58  ;;  %v2858_v19 = vpop.f32.mrb[7].mxu1 }
 0x108   : > { %v1970_v20 = vadd.f32 %v2856_v16, %v1922_v18 }
 0x11a   : > { %v2876_v21 = vpop.f32.mrb[8].mxu0 }
 0x11b   : > { %v2904_v22 = vpop.f32.mrb[8].mxu1  ;;  %v2877_v23 = vpop.f32.mrb[9].mxu0 }
 0x11c   : > { %v2878_v24 = vadd.f32 %v2877_v23, %v2876_v21  ;;  %v2905_v25 = vpop.f32.mrb[9].mxu1  ;;  %v2879_v26 = vpop.f32.mrb[10].mxu0 }
 0x11d   : > { %v2906_v27 = vadd.f32 %v2905_v25, %v2904_v22  ;;  %v2907_v28 = vpop.f32.mrb[10].mxu1  ;;  %v2880_v29 = vpop.f32.mrb[11].mxu0 }
 0x11e   : > { %v2010_v30 = vadd.f32 %v2878_v24, %v1962_v6  ;;  %v2881_v31 = vadd.f32 %v2880_v29, %v2879_v26  ;;  %v2908_v32 = vpop.f32.mrb[11].mxu1 }
 0x11f   : > { %v2909_v33 = vadd.f32 %v2908_v32, %v2907_v28 }
 0x120   : > { %v2058_v34 = vadd.f32 %v2906_v27, %v2010_v30  ;;  %v2013_v35 = vadd.f32 %v2881_v31, %v1965_v8 }
 0x122   : > { %v2061_v36 = vadd.f32 %v2909_v33, %v2013_v35  ;;  %v2882_v37 = vpop.f32.mrb[12].mxu0 }
 0x123   : > { %v2883_v38 = vpop.f32.mrb[13].mxu0  ;;  %v2910_v43 = vpop.f32.mrb[12].mxu1 }
 0x124   : > { %v2884_v39 = vadd.f32 %v2883_v38, %v2882_v37  ;;  %v2885_v40 = vpop.f32.mrb[14].mxu0  ;;  %v2911_v44 = vpop.f32.mrb[13].mxu1 }
 0x125   : > { %v2886_v41 = vpop.f32.mrb[15].mxu0  ;;  %v2912_v45 = vadd.f32 %v2911_v44, %v2910_v43  ;;  %v2913_v46 = vpop.f32.mrb[14].mxu1 }
 0x126   : > { %v2018_v42 = vadd.f32 %v2884_v39, %v1970_v20  ;;  %v2914_v47 = vpop.f32.mrb[15].mxu1 }
 0x128   : > { %v2066_v48 = vadd.f32 %v2912_v45, %v2018_v42 }
 0x13a   : > { %v2932_v49 = vpop.f32.mrb[16].mxu0 }
 0x13b   : > { %v2960_v50 = vpop.f32.mrb[16].mxu1  ;;  %v2933_v51 = vpop.f32.mrb[17].mxu0 }
 0x13c   : > { %v2934_v52 = vadd.f32 %v2933_v51, %v2932_v49  ;;  %v2961_v53 = vpop.f32.mrb[17].mxu1  ;;  %v2935_v54 = vpop.f32.mrb[18].mxu0 }
 0x13d   : > { %v2962_v55 = vadd.f32 %v2961_v53, %v2960_v50  ;;  %v2963_v56 = vpop.f32.mrb[18].mxu1  ;;  %v2936_v57 = vpop.f32.mrb[19].mxu0 }
 0x13e   : > { %v2106_v58 = vadd.f32 %v2934_v52, %v2058_v34  ;;  %v2937_v59 = vadd.f32 %v2936_v57, %v2935_v54  ;;  %v2964_v60 = vpop.f32.mrb[19].mxu1 }
 0x13f   : > { %v2965_v61 = vadd.f32 %v2964_v60, %v2963_v56 }
 0x140   : > { %v2154_v62 = vadd.f32 %v2962_v55, %v2106_v58  ;;  %v2109_v63 = vadd.f32 %v2937_v59, %v2061_v36 }
 0x142   : > { %v2157_v0 = vadd.f32 %v2965_v61, %v2109_v63  ;;  %v2938_v1 = vpop.f32.mrb[20].mxu0 }
 0x143   : > { %v2939_v2 = vpop.f32.mrb[21].mxu0  ;;  %v2966_v7 = vpop.f32.mrb[20].mxu1 }
 0x144   : > { %v2940_v3 = vadd.f32 %v2939_v2, %v2938_v1  ;;  %v2941_v4 = vpop.f32.mrb[22].mxu0  ;;  %v2967_v8 = vpop.f32.mrb[21].mxu1 }
 0x145   : > { %v2942_v5 = vpop.f32.mrb[23].mxu0  ;;  %v2968_v9 = vadd.f32 %v2967_v8, %v2966_v7  ;;  %v2969_v10 = vpop.f32.mrb[22].mxu1 }
 0x146   : > { %v2114_v6 = vadd.f32 %v2940_v3, %v2066_v48  ;;  %v2970_v11 = vpop.f32.mrb[23].mxu1 }
 0x148   : > { %v2162_v12 = vadd.f32 %v2968_v9, %v2114_v6 }
 0x15a   : > { %v2988_v13 = vpop.f32.mrb[24].mxu0 }
 0x15b   : > { %v3016_v14 = vpop.f32.mrb[24].mxu1  ;;  %v2989_v15 = vpop.f32.mrb[25].mxu0 }
 0x15c   : > { %v2990_v16 = vadd.f32 %v2989_v15, %v2988_v13  ;;  %v3017_v17 = vpop.f32.mrb[25].mxu1  ;;  %v2991_v18 = vpop.f32.mrb[26].mxu0 }
 0x15d   : > { %v3018_v19 = vadd.f32 %v3017_v17, %v3016_v14  ;;  %v3019_v20 = vpop.f32.mrb[26].mxu1  ;;  %v2992_v21 = vpop.f32.mrb[27].mxu0 }
 0x15e   : > { %v2202_v22 = vadd.f32 %v2990_v16, %v2154_v62  ;;  %v2993_v23 = vadd.f32 %v2992_v21, %v2991_v18  ;;  %v3020_v24 = vpop.f32.mrb[27].mxu1 }
 0x15f   : > { %v3021_v25 = vadd.f32 %v3020_v24, %v3019_v20 }
 0x160   : > { %v2250_v26 = vadd.f32 %v3018_v19, %v2202_v22  ;;  %v2205_v27 = vadd.f32 %v2993_v23, %v2157_v0 }
 0x162   : > { %v2253_v28 = vadd.f32 %v3021_v25, %v2205_v27  ;;  %v2994_v29 = vpop.f32.mrb[28].mxu0 }
 0x163   : > { %v2995_v30 = vpop.f32.mrb[29].mxu0  ;;  %v3022_v35 = vpop.f32.mrb[28].mxu1 }
 0x164   : > { %v2996_v31 = vadd.f32 %v2995_v30, %v2994_v29  ;;  %v2997_v32 = vpop.f32.mrb[30].mxu0  ;;  %v3023_v36 = vpop.f32.mrb[29].mxu1 }
 0x165   : > { %v2998_v33 = vpop.f32.mrb[31].mxu0  ;;  %v3024_v37 = vadd.f32 %v3023_v36, %v3022_v35  ;;  %v3025_v38 = vpop.f32.mrb[30].mxu1  ;;  %v2475_v32 = vlaneseq }
 0x166   : > { %v2210_v34 = vadd.f32 %v2996_v31, %v2162_v12  ;;  %v3026_v39 = vpop.f32.mrb[31].mxu1  ;;  %v2479_v38 = vstv %s2474_s30 }
 0x167   : > { %v2476_v36 = vshrl.u32 %v2475_v32, 7 }
 0x168   : > { %v2258_v40 = vadd.f32 %v3024_v37, %v2210_v34 }
 0x169   : > { %vm2480_vm0 = vcmp.lt.s32.totalorder %v2476_v36, %v2479_v38 }
 0x17a   : > { %v3044_v41 = vpop.f32.mrb[32].mxu0 }
 0x17b   : > { %v3072_v42 = vpop.f32.mrb[32].mxu1  ;;  %v3045_v43 = vpop.f32.mrb[33].mxu0 }
 0x17c   : > { %v3046_v44 = vadd.f32 %v3045_v43, %v3044_v41  ;;  %v3073_v45 = vpop.f32.mrb[33].mxu1  ;;  %v3047_v46 = vpop.f32.mrb[34].mxu0 }
 0x17d   : > { %v3074_v47 = vadd.f32 %v3073_v45, %v3072_v42  ;;  %v3075_v48 = vpop.f32.mrb[34].mxu1  ;;  %v3048_v49 = vpop.f32.mrb[35].mxu0 }
 0x17e   : > { %v2298_v50 = vadd.f32 %v3046_v44, %v2250_v26  ;;  %v3049_v51 = vadd.f32 %v3048_v49, %v3047_v46  ;;  %v3076_v52 = vpop.f32.mrb[35].mxu1  ;;  %v2478_v49 = vadd.s32 16, %v2476_v36 }
 0x17f   : > { %v3077_v53 = vadd.f32 %v3076_v52, %v3075_v48 }
 0x180   : > { %v2346_v54 = vadd.f32 %v3074_v47, %v2298_v50  ;;  %v2301_v55 = vadd.f32 %v3049_v51, %v2253_v28  ;;  %vm2482_vm2 = vcmp.lt.s32.totalorder %v2478_v49, %v2479_v38 }
 0x182   : > { %v2349_v56 = vadd.f32 %v3077_v53, %v2301_v55  ;;  %v3050_v57 = vpop.f32.mrb[36].mxu0 }
 0x183   : > { %v3051_v58 = vpop.f32.mrb[37].mxu0  ;;  %v3078_v63 = vpop.f32.mrb[36].mxu1 }
 0x184   : > { %v3052_v59 = vadd.f32 %v3051_v58, %v3050_v57  ;;  %v3053_v60 = vpop.f32.mrb[38].mxu0  ;;  %v3079_v0 = vpop.f32.mrb[37].mxu1 }
 0x185   : > { %v3054_v61 = vpop.f32.mrb[39].mxu0  ;;  %v3080_v1 = vadd.f32 %v3079_v0, %v3078_v63  ;;  %v3081_v2 = vpop.f32.mrb[38].mxu1 }
 0x186   : > { %v2306_v62 = vadd.f32 %v3052_v59, %v2258_v40  ;;  %v3082_v3 = vpop.f32.mrb[39].mxu1  ;;  %v2477_v40 = vadd.s32 8, %v2476_v36 }
 0x188   : > { %v2354_v4 = vadd.f32 %v3080_v1, %v2306_v62  ;;  %vm2481_vm1 = vcmp.lt.s32.totalorder %v2477_v40, %v2479_v38 }
 0x19a   : > { %v3100_v5 = vpop.f32.mrb[40].mxu0 }
 0x19b   : > { %v3128_v6 = vpop.f32.mrb[40].mxu1  ;;  %v3101_v7 = vpop.f32.mrb[41].mxu0 }
 0x19c   : > { %v3102_v8 = vadd.f32 %v3101_v7, %v3100_v5  ;;  %v3129_v9 = vpop.f32.mrb[41].mxu1  ;;  %v3103_v10 = vpop.f32.mrb[42].mxu0 }
 0x19d   : > { %v3130_v11 = vadd.f32 %v3129_v9, %v3128_v6  ;;  %v3131_v12 = vpop.f32.mrb[42].mxu1  ;;  %v3104_v13 = vpop.f32.mrb[43].mxu0 }
 0x19e   : > { %v2394_v14 = vadd.f32 %v3102_v8, %v2346_v54  ;;  %v3105_v15 = vadd.f32 %v3104_v13, %v3103_v10  ;;  %v3132_v16 = vpop.f32.mrb[43].mxu1 }
 0x19f   : > { %v3133_v17 = vadd.f32 %v3132_v16, %v3131_v12 }
 0x1a0   : > { %v2442_v18 = vadd.f32 %v3130_v11, %v2394_v14  ;;  %v2397_v19 = vadd.f32 %v3105_v15, %v2349_v56 }
 0x1a2   : > { %v2458_v20 = vmul.f32 0.70710677, %v2442_v18  ;;  %v2445_v21 = vadd.f32 %v3133_v17, %v2397_v19  ;;  %v3106_v22 = vpop.f32.mrb[44].mxu0  ;;  %v2455_v41 = vmul.f32 0.5, %v2442_v18 }
 0x1a3   : > { %v3134_v23 = vpop.f32.mrb[44].mxu1  ;;  %v3107_v24 = vpop.f32.mrb[45].mxu0 }
 0x1a4   : > { %3341 = verf.f32 %v2458_v20  ;;  %v2459_v25 = vmul.f32 0.70710677, %v2445_v21  ;;  %v3108_v26 = vadd.f32 %v3107_v24, %v3106_v22  ;;  %v3135_v27 = vpop.f32.mrb[45].mxu1  ;;  %v3109_v28 = vpop.f32.mrb[46].mxu0  ;;  %v2456_v45 = vmul.f32 0.5, %v2445_v21 }
 0x1a5   : > { %v3136_v29 = vadd.f32 %v3135_v27, %v3134_v23  ;;  %v3137_v30 = vpop.f32.mrb[46].mxu1  ;;  %v3110_v31 = vpop.f32.mrb[47].mxu0 }
 0x1a6   : > { %3343 = verf.f32 %v2459_v25  ;;  %v2402_v33 = vadd.f32 %v3108_v26, %v2354_v4  ;;  %v3138_v34 = vpop.f32.mrb[47].mxu1 }
 0x1a8   : > { %v2450_v35 = vadd.f32 %v3136_v29, %v2402_v33 }
 0x1aa   : > { %v2460_v37 = vmul.f32 0.70710677, %v2450_v35  ;;  %v2457_v55 = vmul.f32 0.5, %v2450_v35 }
 0x1ac   : > { %3345 = verf.f32 %v2460_v37 }
 0x1ae   : > { %v3342_v39 = vpop.eup %3341 }
 0x1af   : > { %v2464_v42 = vadd.f32 1.0, %v3342_v39 }
 0x1b0   : > { %v3344_v43 = vpop.eup %3343 }
 0x1b1   : > { %v2467_v44 = vmul.f32 %v2464_v42, %v2455_v41  ;;  %v2465_v46 = vadd.f32 1.0, %v3344_v43 }
 0x1b3   : > { %2470 = vst [vmem:[%s209_s9] sm:$0xff] %v2467_v44  ;;  %v2489_v47 = vsel %vm2480_vm0, %v2467_v44, 0.0  ;;  %v2468_v48 = vmul.f32 %v2465_v46, %v2456_v45 }
 0x1b4   : > { %v2500_v52 = vmul.f32 %v2489_v47, %v2489_v47 }
 0x1b5   : > { %2471 = vst [vmem:[%s209_s9 + $0x8] sm:$0xff] %v2468_v48  ;;  %v2490_v50 = vsel %vm2481_vm1, %v2468_v48, 0.0 }
 0x1b6   : > { %v3346_v51 = vpop.eup %3345  ;;  %v2492_v53 = vadd.f32 %v2490_v50, %v2489_v47  ;;  %v2501_v54 = vmul.f32 %v2490_v50, %v2490_v50 }
 0x1b7   : > { %v2466_v56 = vadd.f32 1.0, %v3346_v51 }
 0x1b8   : > { %v2503_v57 = vadd.f32 %v2501_v54, %v2500_v52 }
 0x1b9   : > { %v2469_v58 = vmul.f32 %v2466_v56, %v2457_v55 }
 0x1bb   : > { %2472 = vst [vmem:[%s209_s9 + $0x10] sm:$0xff] %v2469_v58  ;;  %v2491_v59 = vsel %vm2482_vm2, %v2469_v58, 0.0 }
 0x1bc   : > { %v2493_v60 = vadd.f32 %v2492_v53, %v2491_v59  ;;  %v2502_v61 = vmul.f32 %v2491_v59, %v2491_v59 }
 0x1be   : > { %v2494_v62 = vrot.slane %v2493_v60, 4  ;;  %v2504_v63 = vadd.f32 %v2503_v57, %v2502_v61 }
 0x1c0   : > { %v2495_v0 = vadd.f32 %v2494_v62, %v2493_v60  ;;  %v2505_v1 = vrot.slane %v2504_v63, 4 }
 0x1c2   : > { %v2496_v2 = vrot.slane %v2495_v0, 2  ;;  %v2506_v3 = vadd.f32 %v2505_v1, %v2504_v63 }
 0x1c4   : > { %v2497_v4 = vadd.f32 %v2496_v2, %v2495_v0  ;;  %v2507_v5 = vrot.slane %v2506_v3, 2 }
 0x1c6   : > { %v2498_v6 = vrot.slane %v2497_v4, 1  ;;  %v2508_v7 = vadd.f32 %v2507_v5, %v2506_v3 }
 0x1c8   : > { %v2509_v8 = vrot.slane %v2508_v7, 1  ;;  %v2499_v9 = vadd.f32 %v2498_v6, %v2497_v4 }
 0x1ca   : > { %v2510_v10 = vadd.f32 %v2509_v8, %v2508_v7 }
 0x1cc   : > { %v2512_v11 = vsel %vm2511_vm3, %v2499_v9, %v2510_v10 }
 0x1cd   : > { %2513 = vst [vmem:[%s214_s12] sm:$0x3] %v2512_v11 }
 0x1ce PF: > { %s15_s15 = sadd.s32 1, %s3353_s15  }
 0x1cf   : > { %p12_p5 = scmp.ge.s32.totalorder %s15_s15, 4  }
 0x1d1   :  { %14 = sbr.rel (!%p12_p5) target bundleno = 1 (0x1), region = 74 }

// kernel: fc_encoder_forward.3
= control target key start
LH: loop header
LB: loop body
LE: loop exit
PB: predicated region body
PF: predicated region fallthrough
CT: control target
= control target key end

     0   :  { %s3543_s18 = smov 0   ;;  %s4484_s0 = inlined_call_operand.vmem [shape: f32[48,128], index: 0, kind: input, shape index: {}]   ;;  %s4485_s1 = inlined_call_operand.vmem [shape: f32[7,128], index: 1, kind: input, shape index: {}]   ;;  %s4486_s2 = inlined_call_operand.vmem [shape: bf16[5,128,128], index: 2, kind: input, shape index: {}]   ;;  %s4487_s3 = inlined_call_operand.vmem [shape: bf16[128,3072], index: 3, kind: input, shape index: {}]   ;;  %s4488_s4 = inlined_call_operand.vmem [shape: f32[1,3072], index: 4, kind: input, shape index: {}]   ;;  %s4489_s5 = inlined_call_operand.vmem [shape: f32[48,3072], index: 5, kind: output, shape index: {}]  }
   0x1 LB: > { %s2946_s19 = sadd.s32 4294967295, %s3510_s18   ;;  %p2950_p0 = scmp.ge.s32.totalorder %s3510_s18, 1  ;;  %s3510_s18 = sphi %s3543_s18, %s15_s18  }
   0x2   : > { %p188_p1 = scmp.lt.s32.totalorder %s3510_s18, 3 }
   0x4   : > { %p189_p2 = pnand %p2950_p0, %p188_p1 }
   0x5   : > { %v3434_v0 = vld [vmem:[%s4486_s2] sm:$0xff] (!%p189_p2)   ;;  %s217_s22 = smul.u32 (!%p189_p2), 3, %s2946_s19  ;;  %v3435_v1 = vld [vmem:[%s4486_s2 + $0x8] sm:$0xff] (!%p189_p2)   ;;  %v3436_v2 = vld [vmem:[%s4486_s2 + $0x10] sm:$0xff] (!%p189_p2)  }
   0x6   : > { %192 = sbr.rel (%p189_p2) target bundleno = 1630 (0x65e), region = 40  ;;  %3308 = vmatprep.subr.bf16.mxu0 (!%p189_p2), %v3434_v0  ;;  %v3437_v3 = vld [vmem:[%s4486_s2 + $0x18] sm:$0xff] (!%p189_p2)   ;;  %v2953_v4 = vld [vmem:[%s4485_s1] ss:$0 sm:$0xff] (!%p189_p2)  ;;  %v2954_v5 = vld [vmem:[%s4485_s1 + $0x1] ss:$0 sm:$0xff] (!%p189_p2) }
   0x7   : > { %p218_p3 = scmp.lt.s32.totalorder (!%p189_p2), %s217_s22, 5  ;;  %3309 = vmatpush3.bf16.msra.mxu0 (!%p189_p2), %v3434_v0  ;;  %v3438_v9 = vld [vmem:[%s4486_s2 + $0x20] sm:$0xff] (!%p189_p2)   ;;  %v3443_v13 = vld [vmem:[%s4486_s2 + $0x48] sm:$0xff] (!%p189_p2)   ;;  %v3440_v18 = vld [vmem:[%s4486_s2 + $0x30] sm:$0xff] (!%p189_p2)  }
   0x8   : > { %3310 = vmatprep.subr.bf16.mxu0 (!%p189_p2), %v3435_v1  ;;  %v3442_v11 = vld [vmem:[%s4486_s2 + $0x40] sm:$0xff] (!%p189_p2)   ;;  %v3439_v15 = vld [vmem:[%s4486_s2 + $0x28] sm:$0xff] (!%p189_p2)   ;;  %v3441_v19 = vld [vmem:[%s4486_s2 + $0x38] sm:$0xff] (!%p189_p2)  }
   0x9   : > { %3328 = vmatprep.subr.bf16.mxu1 (!%p189_p2), %v3442_v11  ;;  %v3444_v23 = vld [vmem:[%s4486_s2 + $0x50] sm:$0xff] (!%p189_p2)   ;;  %v3445_v24 = vld [vmem:[%s4486_s2 + $0x58] sm:$0xff] (!%p189_p2)   ;;  %v3446_v25 = vld [vmem:[%s4486_s2 + $0x60] sm:$0xff] (!%p189_p2)  }
   0xa   : > { %3329 = vmatpush3.bf16.msra.mxu1 (!%p189_p2), %v3442_v11  ;;  %v3447_v26 = vld [vmem:[%s4486_s2 + $0x68] sm:$0xff] (!%p189_p2)   ;;  %v3448_v27 = vld [vmem:[%s4486_s2 + $0x70] sm:$0xff] (!%p189_p2)   ;;  %v3449_v28 = vld [vmem:[%s4486_s2 + $0x78] sm:$0xff] (!%p189_p2)  }
   0xb   : > { %3311 = vmatpush3.bf16.msra.mxu0 (!%p189_p2), %v3435_v1  ;;  %3330 = vmatprep.subr.bf16.mxu1 (!%p189_p2), %v3443_v13  ;;  %v3450_v29 = vld [vmem:[%s4486_s2 + $0x80] sm:$0xff] (!%p189_p2)   ;;  %v3451_v30 = vld [vmem:[%s4486_s2 + $0x88] sm:$0xff] (!%p189_p2)   ;;  %v3452_v56 = vld [vmem:[%s4486_s2 + $0x90] sm:$0xff] (!%p189_p2)  }
   0xc   : > { %3312 = vmatprep.subr.bf16.mxu0 (!%p189_p2), %v3436_v2  ;;  %v2955_v31 = vld [vmem:[%s4485_s1 + $0x2] ss:$0 sm:$0xff] (!%p189_p2)  ;;  %v3453_v57 = vld [vmem:[%s4486_s2 + $0x98] sm:$0xff] (!%p189_p2)   ;;  %v3455_v59 = vld [vmem:[%s4486_s2 + $0xa8] sm:$0xff] (!%p189_p2)  }
   0xd   : > { %s4491_s22 = smov (!%p218_p3, %s217_s22), 5  ;;  %v3454_v58 = vld [vmem:[%s4486_s2 + $0xa0] sm:$0xff]   ;;  %v3456_v60 = vld [vmem:[%s4486_s2 + $0xb0] sm:$0xff]   ;;  %v3457_v61 = vld [vmem:[%s4486_s2 + $0xb8] sm:$0xff]  }
   0xe   : > { %s2951_s27 = sshll.u32 %s4491_s22, 3  ;;  %3331 = vmatpush3.bf16.msra.mxu1 %v3443_v13  ;;  %v3458_v62 = vld [vmem:[%s4486_s2 + $0xc0] sm:$0xff]   ;;  %v3459_v63 = vld [vmem:[%s4486_s2 + $0xc8] sm:$0xff]   ;;  %s3424_s21 = smul.u32 192, %s4491_s22 }
   0xf   : > { %s221_s7 = scalar_lea.vmem %s4484_s0, %s2951_s27  ;;  %3313 = vmatpush3.bf16.msra.mxu0 %v3436_v2  ;;  %3332 = vmatprep.subr.bf16.mxu1 %v3444_v23  ;;  %v2980_v0 = vld [vmem:[%s4485_s1 + $0x3] ss:$0 sm:$0xff] }
  0x10   : > { %v233_v6 = vld [vmem:[%s221_s7] sm:$0xff]  ;;  %v234_v7 = vld [vmem:[%s221_s7 + $0x8] sm:$0xff]  ;;  %3314 = vmatprep.subr.bf16.mxu0 %v3437_v3  ;;  %v235_v17 = vld [vmem:[%s221_s7 + $0x10] sm:$0xff]  ;;  %s4373_s25 = scalar_lea.vmem %s4489_s5, %s3424_s21 }
  0x11   : > { %v240_v8 = vmul.f32 %v2953_v4, %v233_v6  ;;  %v241_v10 = vmul.f32 %v2953_v4, %v234_v7  ;;  %v242_v20 = vmul.f32 %v2953_v4, %v235_v17 }
  0x12   : > { %3333 = vmatpush3.bf16.msra.mxu1 %v3444_v23 }
  0x13   : > { %v247_v12 = vadd.f32 %v2954_v5, %v240_v8  ;;  %v248_v14 = vadd.f32 %v2954_v5, %v241_v10  ;;  %3315 = vmatpush3.bf16.msra.mxu0 %v3437_v3  ;;  %v249_v21 = vadd.f32 %v2954_v5, %v242_v20  ;;  %3334 = vmatprep.subr.bf16.mxu1 %v3445_v24 }
  0x14   : > { %3316 = vmatprep.subr.bf16.mxu0 %v3438_v9 }
  0x15   : > { %v250_v16 = vpack.c.bf16 %v248_v14, %v247_v12  ;;  %v251_v22 = vpack.c.bf16 %v249_v21, %v249_v21 }
  0x16   : > { %3335 = vmatpush3.bf16.msra.mxu1 %v3445_v24 }
  0x17   : > { %3324 = vmatprep.mubr.bf16.mxu0 %v250_v16  ;;  %3317 = vmatpush3.bf16.msra.mxu0 %v3438_v9 }
  0x18   : > { %3318 = vmatprep.subr.bf16.mxu0 %v3439_v15  ;;  %3336 = vmatprep.subr.bf16.mxu1 %v3446_v25 }
  0x1a   : > { %3337 = vmatpush3.bf16.msra.mxu1 %v3446_v25  ;;  %v3460_v25 = vld [vmem:[%s4486_s2 + $0xd0] sm:$0xff]  }
  0x1b   : > { %3319 = vmatpush3.bf16.msra.mxu0 %v3439_v15  ;;  %3338 = vmatprep.subr.bf16.mxu1 %v3447_v26 }
  0x1c   : > { %3320 = vmatprep.subr.bf16.mxu0 %v3440_v18 }
  0x1e   : > { %3339 = vmatpush3.bf16.msra.mxu1 %v3447_v26  ;;  %v3461_v26 = vld [vmem:[%s4486_s2 + $0xd8] sm:$0xff]  }
  0x1f   : > { %3321 = vmatpush3.bf16.msra.mxu0 %v3440_v18  ;;  %3340 = vmatprep.subr.bf16.mxu1 %v3448_v27 }
  0x20   : > { %3322 = vmatprep.subr.bf16.mxu0 %v3441_v19 }
  0x22   : > { %3341 = vmatpush3.bf16.msra.mxu1 %v3448_v27  ;;  %v3462_v27 = vld [vmem:[%s4486_s2 + $0xe0] sm:$0xff]  }
  0x23   : > { %3323 = vmatpush3.bf16.msra.mxu0 %v3441_v19  ;;  %3342 = vmatprep.subr.bf16.mxu1 %v3449_v28 }
  0x24   : > { %3348 = vmatprep.subr.bf16.mxu0 %v3450_v29 }
  0x26   : > { %3325 = vmatmul.mubr.bf16.vlgmr.msra.gmra.mrb[0].mxu0 %v251_v22  ;;  %3343 = vmatpush3.bf16.msra.mxu1 %v3449_v28  ;;  %v3463_v28 = vld [vmem:[%s4486_s2 + $0xe8] sm:$0xff]  }
  0x27   : > { %3349 = vmatpush3.bf16.msra.mxu0 %v3450_v29  ;;  %3368 = vmatprep.subr.bf16.mxu1 %v3458_v62  ;;  %v3464_v29 = vld [vmem:[%s4486_s2 + $0xf0] sm:$0xff]  }
  0x28   : > { %3350 = vmatprep.subr.bf16.mxu0 %v3451_v30 }
  0x2b   : > { %3351 = vmatpush3.bf16.msra.mxu0 %v3451_v30  ;;  %v3465_v30 = vld [vmem:[%s4486_s2 + $0xf8] sm:$0xff]  }
  0x2c   : > { %3352 = vmatprep.subr.bf16.mxu0 %v3452_v56 }
  0x2f   : > { %3353 = vmatpush3.bf16.msra.mxu0 %v3452_v56 }
  0x30   : > { %3354 = vmatprep.subr.bf16.mxu0 %v3453_v57 }
  0x33   : > { %3355 = vmatpush3.bf16.msra.mxu0 %v3453_v57 }
  0x34   : > { %3356 = vmatprep.subr.bf16.mxu0 %v3454_v58 }
  0x37   : > { %3357 = vmatpush3.bf16.msra.mxu0 %v3454_v58  ;;  %v3468_v58 = vld [vmem:[%s4486_s2 + $0x110] sm:$0xff]  }
  0x38   : > { %3358 = vmatprep.subr.bf16.mxu0 %v3455_v59 }
  0x3b   : > { %3359 = vmatpush3.bf16.msra.mxu0 %v3455_v59  ;;  %v3469_v59 = vld [vmem:[%s4486_s2 + $0x118] sm:$0xff]  }
  0x3c   : > { %3360 = vmatprep.subr.bf16.mxu0 %v3456_v60 }
  0x3f   : > { %3361 = vmatpush3.bf16.msra.mxu0 %v3456_v60  ;;  %v3470_v60 = vld [vmem:[%s4486_s2 + $0x120] sm:$0xff]  }
  0x40   : > { %3362 = vmatprep.subr.bf16.mxu0 %v3457_v61 }
  0x43   : > { %3363 = vmatpush3.bf16.msra.mxu0 %v3457_v61  ;;  %v3471_v61 = vld [vmem:[%s4486_s2 + $0x128] sm:$0xff]  }
  0xf9   : > { %v3326_v32 = vpop.f32.mrb[0].mxu0 }
  0xfa   : > { %v364_v33 = vadd.f32 %v3326_v32, %v2955_v31  ;;  %v355_v34 = vpop.f32.mrb[1].mxu0  ;;  %v3467_v32 = vld [vmem:[%s4486_s2 + $0x108] sm:$0xff]  }
  0xfb   : > { %v356_v35 = vadd.f32 %v2955_v31, %v355_v34  ;;  %v3327_v36 = vpop.f32.mrb[2].mxu0 }
  0xfc   : > { %v374_v37 = vmul.f32 0.70710677, %v364_v33  ;;  %v358_v38 = vpop.f32.mrb[3].mxu0  ;;  %v371_v47 = vmul.f32 0.5, %v364_v33  ;;  %v3005_v33 = vld [vmem:[%s4485_s1 + $0x4] ss:$0 sm:$0xff] }
  0xfd   : > { %v372_v39 = vmul.f32 0.70710677, %v356_v35  ;;  %v359_v40 = vadd.f32 %v2955_v31, %v358_v38  ;;  %v369_v48 = vmul.f32 0.5, %v356_v35  ;;  %v3466_v31 = vld [vmem:[%s4486_s2 + $0x100] sm:$0xff]  }
  0xfe   : > { %3474 = verf.f32 %v374_v37  ;;  %3388 = vmatprep.subr.bf16.mxu0 %v3466_v31 }
  0xff   : > { %3476 = verf.f32 %v372_v39  ;;  %v373_v41 = vmul.f32 0.70710677, %v359_v40  ;;  %v370_v49 = vmul.f32 0.5, %v359_v40 }
 0x101   : > { %3478 = verf.f32 %v373_v41 }
 0x108   : > { %v3475_v42 = vpop.eup %3474 }
 0x109   : > { %v3477_v43 = vpop.eup %3476  ;;  %v380_v44 = vadd.f32 1.0, %v3475_v42 }
 0x10a   : > { %v378_v45 = vadd.f32 1.0, %v3477_v43 }
 0x10b   : > { %v3479_v46 = vpop.eup %3478  ;;  %v383_v51 = vmul.f32 %v380_v44, %v371_v47 }
 0x10c   : > { %v379_v50 = vadd.f32 1.0, %v3479_v46  ;;  %v381_v52 = vmul.f32 %v378_v45, %v369_v48 }
 0x10d   : > { %v385_v55 = vpack.c.bf16 %v383_v51, %v383_v51 }
 0x10e   : > { %v382_v53 = vmul.f32 %v379_v50, %v370_v49 }
 0x110   : > { %v384_v54 = vpack.c.bf16 %v382_v53, %v381_v52 }
 0x112   : > { %3344 = vmatprep.mubr.bf16.mxu1 %v384_v54 }
 0x113   : > { %3345 = vmatmul.mubr.bf16.vlgmr.msra.gmra.mrb[0].mxu1 %v385_v55 }
 0x114   : > { %3369 = vmatpush3.bf16.msra.mxu1 %v3458_v62  ;;  %v3472_v62 = vld [vmem:[%s4486_s2 + $0x130] sm:$0xff]  }
 0x115   : > { %3370 = vmatprep.subr.bf16.mxu1 %v3459_v63 }
 0x118   : > { %3371 = vmatpush3.bf16.msra.mxu1 %v3459_v63  ;;  %v3473_v63 = vld [vmem:[%s4486_s2 + $0x138] sm:$0xff]  }
 0x119   : > { %3372 = vmatprep.subr.bf16.mxu1 %v3460_v25 }
 0x11c   : > { %3373 = vmatpush3.bf16.msra.mxu1 %v3460_v25 }
 0x11d   : > { %3374 = vmatprep.subr.bf16.mxu1 %v3461_v26 }
 0x120   : > { %3375 = vmatpush3.bf16.msra.mxu1 %v3461_v26 }
 0x121   : > { %3376 = vmatprep.subr.bf16.mxu1 %v3462_v27 }
 0x124   : > { %3377 = vmatpush3.bf16.msra.mxu1 %v3462_v27 }
 0x125   : > { %3378 = vmatprep.subr.bf16.mxu1 %v3463_v28 }
 0x128   : > { %3379 = vmatpush3.bf16.msra.mxu1 %v3463_v28 }
 0x129   : > { %3380 = vmatprep.subr.bf16.mxu1 %v3464_v29 }
 0x12c   : > { %3381 = vmatpush3.bf16.msra.mxu1 %v3464_v29 }
 0x12d   : > { %3382 = vmatprep.subr.bf16.mxu1 %v3465_v30 }
 0x130   : > { %3383 = vmatpush3.bf16.msra.mxu1 %v3465_v30 }
 0x1e6   : > { %v3346_v1 = vpop.f32.mrb[0].mxu1 }
 0x1e7   : > { %v499_v2 = vadd.f32 %v3346_v1, %v2980_v0  ;;  %v490_v3 = vpop.f32.mrb[1].mxu1  ;;  %v938_v1 = vld [vmem:[%s4487_s3 + $0x60] sm:$0xff] }
 0x1e8   : > { %v491_v4 = vadd.f32 %v2980_v0, %v490_v3  ;;  %v3347_v5 = vpop.f32.mrb[2].mxu1 }
 0x1e9   : > { %v509_v6 = vmul.f32 0.70710677, %v499_v2  ;;  %v493_v7 = vpop.f32.mrb[3].mxu1  ;;  %v506_v16 = vmul.f32 0.5, %v499_v2  ;;  %v927_v2 = vld [vmem:[%s4487_s3 + $0x8] sm:$0xff] }
 0x1ea   : > { %v507_v8 = vmul.f32 0.70710677, %v491_v4  ;;  %v494_v9 = vadd.f32 %v2980_v0, %v493_v7  ;;  %v504_v17 = vmul.f32 0.5, %v491_v4  ;;  %v926_v0 = vld [vmem:[%s4487_s3] sm:$0xff]  ;;  %v939_v5 = vld [vmem:[%s4487_s3 + $0x68] sm:$0xff] }
 0x1eb   : > { %3480 = verf.f32 %v509_v6  ;;  %v3064_v3 = vcombine.low %v926_v0, %v938_v1  ;;  %v3065_v4 = vcombine.high %v926_v0, %v938_v1  ;;  %v950_v6 = vld [vmem:[%s4487_s3 + $0xc0] sm:$0xff] }
 0x1ec   : > { %3482 = verf.f32 %v507_v8  ;;  %v508_v10 = vmul.f32 0.70710677, %v494_v9  ;;  %v505_v18 = vmul.f32 0.5, %v494_v9  ;;  %v962_v7 = vld [vmem:[%s4487_s3 + $0x120] sm:$0xff]  ;;  %v3066_v8 = vcombine.low %v927_v2, %v939_v5 }
 0x1ed   : > { %v3067_v9 = vcombine.high %v927_v2, %v939_v5  ;;  %2204 = vmatprep.subr.bf16.mxu1 %v3065_v4  ;;  %v1046_v1 = vld [vmem:[%s4487_s3 + $0x3c0] sm:$0xff]  ;;  %v1059_v5 = vld [vmem:[%s4487_s3 + $0x428] sm:$0xff] }
 0x1ee   : > { %3484 = verf.f32 %v508_v10  ;;  %v3089_v10 = vcombine.high %v950_v6, %v962_v7  ;;  %v1058_v2 = vld [vmem:[%s4487_s3 + $0x420] sm:$0xff] }
 0x1ef   : > { %v3185_v4 = vcombine.high %v1046_v1, %v1058_v2 }
 0x1f5   : > { %v3481_v11 = vpop.eup %3480 }
 0x1f6   : > { %v3483_v12 = vpop.eup %3482  ;;  %v515_v13 = vadd.f32 1.0, %v3481_v11  ;;  %v3088_v11 = vcombine.low %v950_v6, %v962_v7  ;;  %v3184_v6 = vcombine.low %v1046_v1, %v1058_v2  ;;  %v989_v1 = vld [vmem:[%s4487_s3 + $0x1f8] sm:$0xff] }
 0x1f7   : > { %v513_v14 = vadd.f32 1.0, %v3483_v12  ;;  %v3030_v12 = vld [vmem:[%s4485_s1 + $0x5] ss:$0 sm:$0xff] }
 0x1f8   : > { %v3485_v15 = vpop.eup %3484  ;;  %v518_v20 = vmul.f32 %v515_v13, %v506_v16 }
 0x1f9   : > { %v514_v19 = vadd.f32 1.0, %v3485_v15  ;;  %v516_v21 = vmul.f32 %v513_v14, %v504_v17 }
 0x1fa   : > { %v520_v24 = vpack.c.bf16 %v518_v20, %v518_v20 }
 0x1fb   : > { %v517_v22 = vmul.f32 %v514_v19, %v505_v18 }
 0x1fd   : > { %v519_v23 = vpack.c.bf16 %v517_v22, %v516_v21 }
 0x1ff   : > { %3364 = vmatprep.mubr.bf16.mxu0 %v519_v23 }
 0x200   : > { %3365 = vmatmul.mubr.bf16.vlgmr.msra.gmra.mrb[4].mxu0 %v520_v24 }
 0x201   : > { %3389 = vmatpush3.bf16.msra.mxu0 %v3466_v31 }
 0x202   : > { %3390 = vmatprep.subr.bf16.mxu0 %v3467_v32 }
 0x205   : > { %3391 = vmatpush3.bf16.msra.mxu0 %v3467_v32 }
 0x206   : > { %3392 = vmatprep.subr.bf16.mxu0 %v3468_v58 }
 0x209   : > { %3393 = vmatpush3.bf16.msra.mxu0 %v3468_v58  ;;  %v1034_v58 = vld [vmem:[%s4487_s3 + $0x360] sm:$0xff] }
 0x20a   : > { %3394 = vmatprep.subr.bf16.mxu0 %v3469_v59 }
 0x20d   : > { %3395 = vmatpush3.bf16.msra.mxu0 %v3469_v59  ;;  %v1023_v59 = vld [vmem:[%s4487_s3 + $0x308] sm:$0xff] }
 0x20e   : > { %3396 = vmatprep.subr.bf16.mxu0 %v3470_v60 }
 0x211   : > { %3397 = vmatpush3.bf16.msra.mxu0 %v3470_v60 }
 0x212   : > { %3398 = vmatprep.subr.bf16.mxu0 %v3471_v61 }
 0x215   : > { %3399 = vmatpush3.bf16.msra.mxu0 %v3471_v61  ;;  %v1035_v61 = vld [vmem:[%s4487_s3 + $0x368] sm:$0xff] }
 0x216   : > { %3400 = vmatprep.subr.bf16.mxu0 %v3472_v62  ;;  %v3163_v0 = vcombine.high %v1023_v59, %v1035_v61 }
 0x219   : > { %3401 = vmatpush3.bf16.msra.mxu0 %v3472_v62 }
 0x21a   : > { %3402 = vmatprep.subr.bf16.mxu0 %v3473_v63 }
 0x21d   : > { %3403 = vmatpush3.bf16.msra.mxu0 %v3473_v63  ;;  %v3162_v63 = vcombine.low %v1023_v59, %v1035_v61 }
 0x21e   : > { %2255 = vmatprep.subr.bf16.mxu0 %v3067_v9  ;;  %v1070_v9 = vld [vmem:[%s4487_s3 + $0x480] sm:$0xff] }
 0x2d3   : > { %v3366_v34 = vpop.f32.mrb[4].mxu0 }
 0x2d4   : > { %v634_v35 = vadd.f32 %v3366_v34, %v3005_v33  ;;  %v625_v36 = vpop.f32.mrb[5].mxu0 }
 0x2d5   : > { %v626_v37 = vadd.f32 %v3005_v33, %v625_v36  ;;  %v3367_v38 = vpop.f32.mrb[6].mxu0  ;;  %v963_v36 = vld [vmem:[%s4487_s3 + $0x128] sm:$0xff] }
 0x2d6   : > { %v644_v39 = vmul.f32 0.70710677, %v634_v35  ;;  %v628_v40 = vpop.f32.mrb[7].mxu0  ;;  %v641_v49 = vmul.f32 0.5, %v634_v35  ;;  %v951_v35 = vld [vmem:[%s4487_s3 + $0xc8] sm:$0xff] }
 0x2d7   : > { %v642_v41 = vmul.f32 0.70710677, %v626_v37  ;;  %v629_v42 = vadd.f32 %v3005_v33, %v628_v40  ;;  %v639_v50 = vmul.f32 0.5, %v626_v37  ;;  %v3090_v40 = vcombine.low %v951_v35, %v963_v36 }
 0x2d8   : > { %3486 = verf.f32 %v644_v39  ;;  %v3091_v39 = vcombine.high %v951_v35, %v963_v36 }
 0x2d9   : > { %3488 = verf.f32 %v642_v41  ;;  %v643_v43 = vmul.f32 0.70710677, %v629_v42  ;;  %v640_v51 = vmul.f32 0.5, %v629_v42  ;;  %v974_v41 = vld [vmem:[%s4487_s3 + $0x180] sm:$0xff] }
 0x2da   : > { %v986_v42 = vld [vmem:[%s4487_s3 + $0x1e0] sm:$0xff] }
 0x2db   : > { %3490 = verf.f32 %v643_v43  ;;  %v975_v43 = vld [vmem:[%s4487_s3 + $0x188] sm:$0xff] }
 0x2e2   : > { %v3487_v44 = vpop.eup %3486 }
 0x2e3   : > { %v3489_v45 = vpop.eup %3488  ;;  %v650_v46 = vadd.f32 1.0, %v3487_v44  ;;  %v3113_v44 = vcombine.high %v974_v41, %v986_v42 }
 0x2e4   : > { %v648_v47 = vadd.f32 1.0, %v3489_v45  ;;  %v987_v45 = vld [vmem:[%s4487_s3 + $0x1e8] sm:$0xff] }
 0x2e5   : > { %v3491_v48 = vpop.eup %3490  ;;  %v653_v53 = vmul.f32 %v650_v46, %v641_v49  ;;  %v3112_v46 = vcombine.low %v974_v41, %v986_v42  ;;  %v998_v49 = vld [vmem:[%s4487_s3 + $0x240] sm:$0xff] }
 0x2e6   : > { %v649_v52 = vadd.f32 1.0, %v3491_v48  ;;  %v651_v54 = vmul.f32 %v648_v47, %v639_v50  ;;  %v3114_v47 = vcombine.low %v975_v43, %v987_v45  ;;  %v3115_v48 = vcombine.high %v975_v43, %v987_v45  ;;  %v1010_v50 = vld [vmem:[%s4487_s3 + $0x2a0] sm:$0xff] }
 0x2e7   : > { %v655_v57 = vpack.c.bf16 %v653_v53, %v653_v53  ;;  %v1011_v53 = vld [vmem:[%s4487_s3 + $0x2a8] sm:$0xff] }
 0x2e8   : > { %v652_v55 = vmul.f32 %v649_v52, %v640_v51  ;;  %v999_v51 = vld [vmem:[%s4487_s3 + $0x248] sm:$0xff]  ;;  %v3137_v52 = vcombine.high %v998_v49, %v1010_v50 }
 0x2ea   : > { %v654_v56 = vpack.c.bf16 %v652_v55, %v651_v54  ;;  %v3136_v54 = vcombine.low %v998_v49, %v1010_v50  ;;  %v3138_v55 = vcombine.low %v999_v51, %v1011_v53 }
 0x2ec   : > { %3384 = vmatprep.mubr.bf16.mxu1 %v654_v56  ;;  %v3139_v56 = vcombine.high %v999_v51, %v1011_v53  ;;  %v952_v51 = vld [vmem:[%s4487_s3 + $0xd0] sm:$0xff] }
 0x2ed   : > { %3385 = vmatmul.mubr.bf16.vlgmr.msra.gmra.mrb[4].mxu1 %v655_v57  ;;  %v1022_v57 = vld [vmem:[%s4487_s3 + $0x300] sm:$0xff]  ;;  %v964_v53 = vld [vmem:[%s4487_s3 + $0x130] sm:$0xff] }
 0x2ee   : > { %2205 = vmatpush1.bf16.msra.mxu1 %v3064_v3  ;;  %v3161_v60 = vcombine.high %v1022_v57, %v1034_v58  ;;  %v3160_v62 = vcombine.low %v1022_v57, %v1034_v58  ;;  %v1047_v3 = vld [vmem:[%s4487_s3 + $0x3c8] sm:$0xff] }
 0x2ef   : > { %2206 = vmatprep.subr.bf16.mxu1 %v3089_v10  ;;  %v3186_v7 = vcombine.low %v1047_v3, %v1059_v5  ;;  %v1082_v10 = vld [vmem:[%s4487_s3 + $0x4e0] sm:$0xff] }
 0x2f2   : > { %2207 = vmatpush1.bf16.msra.mxu1 %v3088_v11  ;;  %v1071_v11 = vld [vmem:[%s4487_s3 + $0x488] sm:$0xff] }
 0x2f3   : > { %2208 = vmatprep.subr.bf16.mxu1 %v3113_v44 }
 0x2f6   : > { %2209 = vmatpush1.bf16.msra.mxu1 %v3112_v46 }
 0x2f7   : > { %2210 = vmatprep.subr.bf16.mxu1 %v3137_v52 }
 0x2fa   : > { %2211 = vmatpush1.bf16.msra.mxu1 %v3136_v54  ;;  %v953_v54 = vld [vmem:[%s4487_s3 + $0xd8] sm:$0xff] }
 0x2fb   : > { %2212 = vmatprep.subr.bf16.mxu1 %v3161_v60  ;;  %v3093_v60 = vcombine.high %v952_v51, %v964_v53 }
 0x2fe   : > { %2213 = vmatpush1.bf16.msra.mxu1 %v3160_v62  ;;  %v976_v62 = vld [vmem:[%s4487_s3 + $0x190] sm:$0xff] }
 0x2ff   : > { %2214 = vmatprep.subr.bf16.mxu1 %v3185_v4 }
 0x302   : > { %2215 = vmatpush1.bf16.msra.mxu1 %v3184_v6 }
 0x3c0   : > { %v3386_v13 = vpop.f32.mrb[4].mxu1 }
 0x3c1   : > { %v769_v14 = vadd.f32 %v3386_v13, %v3030_v12  ;;  %v760_v15 = vpop.f32.mrb[5].mxu1  ;;  %v1083_v13 = vld [vmem:[%s4487_s3 + $0x4e8] sm:$0xff] }
 0x3c2   : > { %v761_v16 = vadd.f32 %v3030_v12, %v760_v15  ;;  %v3387_v17 = vpop.f32.mrb[6].mxu1  ;;  %v3210_v15 = vcombine.low %v1071_v11, %v1083_v13 }
 0x3c3   : > { %v779_v18 = vmul.f32 0.70710677, %v769_v14  ;;  %v763_v19 = vpop.f32.mrb[7].mxu1  ;;  %v776_v28 = vmul.f32 0.5, %v769_v14  ;;  %v3208_v14 = vcombine.low %v1070_v9, %v1082_v10  ;;  %v1094_v17 = vld [vmem:[%s4487_s3 + $0x540] sm:$0xff] }
 0x3c4   : > { %v777_v20 = vmul.f32 0.70710677, %v761_v16  ;;  %v764_v21 = vadd.f32 %v3030_v12, %v763_v19  ;;  %v774_v29 = vmul.f32 0.5, %v761_v16  ;;  %v3209_v12 = vcombine.high %v1070_v9, %v1082_v10  ;;  %v1095_v19 = vld [vmem:[%s4487_s3 + $0x548] sm:$0xff]  ;;  %v1012_v9 = vld [vmem:[%s4487_s3 + $0x2b0] sm:$0xff]  ;;  %v1001_v10 = vld [vmem:[%s4487_s3 + $0x258] sm:$0xff] }
 0x3c5   : > { %3492 = verf.f32 %v779_v18  ;;  %v3211_v16 = vcombine.high %v1071_v11, %v1083_v13  ;;  %v1106_v18 = vld [vmem:[%s4487_s3 + $0x5a0] sm:$0xff]  ;;  %v1013_v11 = vld [vmem:[%s4487_s3 + $0x2b8] sm:$0xff] }
 0x3c6   : > { %3494 = verf.f32 %v777_v20  ;;  %v778_v22 = vmul.f32 0.70710677, %v764_v21  ;;  %v775_v30 = vmul.f32 0.5, %v764_v21  ;;  %2216 = vmatprep.subr.bf16.mxu1 %v3209_v12  ;;  %v3233_v20 = vcombine.high %v1094_v17, %v1106_v18  ;;  %v1107_v21 = vld [vmem:[%s4487_s3 + $0x5a8] sm:$0xff] }
 0x3c7   : > { %2217 = vmatpush1.bf16.msra.mxu1 %v3208_v14 }
 0x3c8   : > { %3496 = verf.f32 %v778_v22  ;;  %v3232_v22 = vcombine.low %v1094_v17, %v1106_v18  ;;  %2218 = vmatprep.subr.bf16.mxu1 %v3233_v20  ;;  %v1024_v17 = vld [vmem:[%s4487_s3 + $0x310] sm:$0xff]  ;;  %v1037_v20 = vld [vmem:[%s4487_s3 + $0x378] sm:$0xff] }
 0x3c9   : > { %v1036_v18 = vld [vmem:[%s4487_s3 + $0x370] sm:$0xff] }
 0x3cb   : > { %2219 = vmatpush1.bf16.msra.mxu1 %v3232_v22  ;;  %v3142_v22 = vcombine.low %v1001_v10, %v1013_v11 }
 0x3cf   : > { %v3493_v23 = vpop.eup %3492 }
 0x3d0   : > { %v3495_v24 = vpop.eup %3494  ;;  %v785_v25 = vadd.f32 1.0, %v3493_v23  ;;  %v3234_v23 = vcombine.low %v1095_v19, %v1107_v21 }
 0x3d1   : > { %v783_v26 = vadd.f32 1.0, %v3495_v24  ;;  %v3235_v24 = vcombine.high %v1095_v19, %v1107_v21  ;;  %v1025_v19 = vld [vmem:[%s4487_s3 + $0x318] sm:$0xff] }
 0x3d2   : > { %v3497_v27 = vpop.eup %3496  ;;  %v788_v32 = vmul.f32 %v785_v25, %v776_v28  ;;  %v928_v25 = vld [vmem:[%s4487_s3 + $0x10] sm:$0xff] }
 0x3d3   : > { %v784_v31 = vadd.f32 1.0, %v3497_v27  ;;  %v786_v33 = vmul.f32 %v783_v26, %v774_v29  ;;  %v940_v26 = vld [vmem:[%s4487_s3 + $0x70] sm:$0xff]  ;;  %v929_v27 = vld [vmem:[%s4487_s3 + $0x18] sm:$0xff] }
 0x3d4   : > { %v790_v38 = vpack.c.bf16 %v788_v32, %v788_v32  ;;  %v3069_v28 = vcombine.high %v928_v25, %v940_v26  ;;  %v941_v29 = vld [vmem:[%s4487_s3 + $0x78] sm:$0xff] }
 0x3d5   : > { %v787_v34 = vmul.f32 %v784_v31, %v775_v30  ;;  %v3068_v30 = vcombine.low %v928_v25, %v940_v26  ;;  %v3070_v31 = vcombine.low %v929_v27, %v941_v29  ;;  %v3071_v32 = vcombine.high %v929_v27, %v941_v29  ;;  %v1048_v25 = vld [vmem:[%s4487_s3 + $0x3d0] sm:$0xff]  ;;  %v1049_v27 = vld [vmem:[%s4487_s3 + $0x3d8] sm:$0xff] }
 0x3d6   : > { %2306 = vmatprep.subr.bf16.mxu1 %v3069_v28  ;;  %v1060_v26 = vld [vmem:[%s4487_s3 + $0x430] sm:$0xff]  ;;  %v1061_v28 = vld [vmem:[%s4487_s3 + $0x438] sm:$0xff]  ;;  %v3164_v29 = vcombine.low %v1024_v17, %v1036_v18 }
 0x3d7   : > { %v789_v37 = vpack.c.bf16 %v787_v34, %v786_v33  ;;  %v3512_v33 = vmov 0   ;;  %v3055_v34 = vld [vmem:[%s4485_s1 + $0x6] ss:$0 sm:$0xff] }
 0x3d8   : > { %2236 = vmatprep.mubr.bf16.mxu1 %v3512_v33 }
 0x3d9   : > { %3404 = vmatprep.mubr.bf16.mxu0 %v789_v37 }
 0x3da   : > { %3405 = vmatmul.mubr.bf16.vlgmr.msra.gmra.mrb[8].mxu0 %v790_v38 }
 0x3db   : > { %2256 = vmatpush1.bf16.msra.mxu0 %v3066_v8  ;;  %v3187_v8 = vcombine.high %v1047_v3, %v1059_v5  ;;  %2287 = vmatprep.mubr.bf16.mxu0 %v3512_v33  ;;  %v3092_v3 = vcombine.low %v952_v51, %v964_v53  ;;  %v942_v51 = vld [vmem:[%s4487_s3 + $0x80] sm:$0xff]  ;;  %v943_v53 = vld [vmem:[%s4487_s3 + $0x88] sm:$0xff] }
 0x3dc   : > { %2257 = vmatprep.subr.bf16.mxu0 %v3091_v39 }
 0x3df   : > { %2258 = vmatpush1.bf16.msra.mxu0 %v3090_v40 }
 0x3e0   : > { %2259 = vmatprep.subr.bf16.mxu0 %v3115_v48 }
 0x3e3   : > { %2260 = vmatpush1.bf16.msra.mxu0 %v3114_v47 }
 0x3e4   : > { %2261 = vmatprep.subr.bf16.mxu0 %v3139_v56 }
 0x3e7   : > { %2262 = vmatpush1.bf16.msra.mxu0 %v3138_v55  ;;  %v965_v55 = vld [vmem:[%s4487_s3 + $0x138] sm:$0xff] }
 0x3e8   : > { %2263 = vmatprep.subr.bf16.mxu0 %v3163_v0  ;;  %v3095_v61 = vcombine.high %v953_v54, %v965_v55  ;;  %v977_v0 = vld [vmem:[%s4487_s3 + $0x198] sm:$0xff]  ;;  %v3094_v4 = vcombine.low %v953_v54, %v965_v55 }
 0x3e9   : > { %v3118_v13 = vcombine.low %v977_v0, %v989_v1 }
 0x3eb   : > { %2264 = vmatpush1.bf16.msra.mxu0 %v3162_v63  ;;  %v988_v63 = vld [vmem:[%s4487_s3 + $0x1f0] sm:$0xff] }
 0x3ec   : > { %2265 = vmatprep.subr.bf16.mxu0 %v3187_v8  ;;  %v3117_v6 = vcombine.high %v976_v62, %v988_v63  ;;  %v1000_v8 = vld [vmem:[%s4487_s3 + $0x250] sm:$0xff]  ;;  %v3116_v12 = vcombine.low %v976_v62, %v988_v63  ;;  %v967_v62 = vld [vmem:[%s4487_s3 + $0x148] sm:$0xff] }
 0x3ed   : > { %v3140_v21 = vcombine.low %v1000_v8, %v1012_v9 }
 0x3ef   : > { %2266 = vmatpush1.bf16.msra.mxu0 %v3186_v7  ;;  %v3119_v7 = vcombine.high %v977_v0, %v989_v1 }
 0x3f0   : > { %2267 = vmatprep.subr.bf16.mxu0 %v3211_v16  ;;  %v3143_v16 = vcombine.high %v1001_v10, %v1013_v11  ;;  %v1002_v11 = vld [vmem:[%s4487_s3 + $0x260] sm:$0xff] }
 0x3f3   : > { %2268 = vmatpush1.bf16.msra.mxu0 %v3210_v15  ;;  %v3141_v15 = vcombine.high %v1000_v8, %v1012_v9 }
 0x3f4   : > { %2269 = vmatprep.subr.bf16.mxu0 %v3235_v24  ;;  %v3167_v24 = vcombine.high %v1025_v19, %v1037_v20 }
 0x3f7   : > { %2270 = vmatpush1.bf16.msra.mxu0 %v3234_v23  ;;  %v3165_v23 = vcombine.high %v1024_v17, %v1036_v18 }
 0x3f8   : > { %2357 = vmatprep.subr.bf16.mxu0 %v3071_v32  ;;  %v3191_v32 = vcombine.high %v1049_v27, %v1061_v28 }
 0x4ad   : > { %v3406_v35 = vpop.f32.mrb[8].mxu0 }
 0x4ae   : > { %v895_v36 = vpop.f32.mrb[9].mxu0  ;;  %v904_v37 = vadd.f32 %v3406_v35, %v3055_v34  ;;  %v1084_v35 = vld [vmem:[%s4487_s3 + $0x4f0] sm:$0xff] }
 0x4af   : > { %v896_v38 = vadd.f32 %v3055_v34, %v895_v36  ;;  %v3407_v39 = vpop.f32.mrb[10].mxu0  ;;  %v1073_v36 = vld [vmem:[%s4487_s3 + $0x498] sm:$0xff] }
 0x4b0   : > { %v898_v40 = vpop.f32.mrb[11].mxu0  ;;  %v914_v43 = vmul.f32 0.70710677, %v904_v37  ;;  %v911_v2 = vmul.f32 0.5, %v904_v37  ;;  %v1085_v37 = vld [vmem:[%s4487_s3 + $0x4f8] sm:$0xff]  ;;  %v3190_v39 = vcombine.low %v1049_v27, %v1061_v28  ;;  %v1050_v28 = vld [vmem:[%s4487_s3 + $0x3e0] sm:$0xff] }
 0x4b1   : > { %v912_v41 = vmul.f32 0.70710677, %v896_v38  ;;  %v899_v42 = vadd.f32 %v3055_v34, %v898_v40  ;;  %v909_v48 = vmul.f32 0.5, %v896_v38  ;;  %v1072_v34 = vld [vmem:[%s4487_s3 + $0x490] sm:$0xff]  ;;  %v3188_v38 = vcombine.low %v1048_v25, %v1060_v26 }
 0x4b2   : > { %v3213_v40 = vcombine.high %v1072_v34, %v1084_v35 }
 0x4b3   : > { %3498 = verf.f32 %v912_v41  ;;  %v913_v44 = vmul.f32 0.70710677, %v899_v42  ;;  %v910_v49 = vmul.f32 0.5, %v899_v42  ;;  %v3215_v41 = vcombine.high %v1073_v36, %v1085_v37  ;;  %v1096_v42 = vld [vmem:[%s4487_s3 + $0x550] sm:$0xff] }
 0x4b5   : > { %3500 = verf.f32 %v913_v44  ;;  %v1097_v44 = vld [vmem:[%s4487_s3 + $0x558] sm:$0xff] }
 0x4b6   : > { %3502 = verf.f32 %v914_v43  ;;  %v1108_v43 = vld [vmem:[%s4487_s3 + $0x5b0] sm:$0xff] }
 0x4b7   : > { %v3236_v54 = vcombine.low %v1096_v42, %v1108_v43 }
 0x4bd   : > { %v3499_v45 = vpop.eup %3498 }
 0x4be   : > { %v918_v46 = vadd.f32 1.0, %v3499_v45  ;;  %v1109_v45 = vld [vmem:[%s4487_s3 + $0x5b8] sm:$0xff] }
 0x4bf   : > { %v3501_v47 = vpop.eup %3500  ;;  %v3238_v55 = vcombine.low %v1097_v44, %v1109_v45 }
 0x4c0   : > { %v919_v50 = vadd.f32 1.0, %v3501_v47  ;;  %v3503_v52 = vpop.eup %3502  ;;  %v921_v56 = vmul.f32 %v918_v46, %v909_v48  ;;  %v3212_v46 = vcombine.low %v1072_v34, %v1084_v35  ;;  %v3214_v47 = vcombine.low %v1073_v36, %v1085_v37  ;;  %v1074_v37 = vld [vmem:[%s4487_s3 + $0x4a0] sm:$0xff] }
 0x4c1   : > { %v920_v58 = vadd.f32 1.0, %v3503_v52  ;;  %v3237_v48 = vcombine.high %v1096_v42, %v1108_v43  ;;  %v931_v52 = vld [vmem:[%s4487_s3 + $0x28] sm:$0xff] }
 0x4c2   : > { %v922_v57 = vmul.f32 %v919_v50, %v910_v49  ;;  %v3239_v49 = vcombine.high %v1097_v44, %v1109_v45  ;;  %v930_v50 = vld [vmem:[%s4487_s3 + $0x20] sm:$0xff]  ;;  %v3074_v0 = vcombine.low %v931_v52, %v943_v53 }
 0x4c3   : > { %v923_v5 = vmul.f32 %v920_v58, %v911_v2  ;;  %v954_v58 = vld [vmem:[%s4487_s3 + $0xe0] sm:$0xff]  ;;  %v3072_v63 = vcombine.low %v930_v50, %v942_v51 }
 0x4c4   : > { %v3820_v59 = vpack.c.bf16 %v922_v57, %v921_v56  ;;  %v3073_v56 = vcombine.high %v930_v50, %v942_v51  ;;  %v3075_v57 = vcombine.high %v931_v52, %v943_v53  ;;  %v1098_v45 = vld [vmem:[%s4487_s3 + $0x560] sm:$0xff]  ;;  %v932_v53 = vld [vmem:[%s4487_s3 + $0x30] sm:$0xff] }
 0x4c5   : > { %v3850_v14 = vpack.c.bf16 %v923_v5, %v923_v5  ;;  %v979_v5 = vld [vmem:[%s4487_s3 + $0x1a8] sm:$0xff] }
 0x4c6   : > { %2237 = vmatmul.mubr.bf16.vlgmr.msra.gmra.mrb[8].mxu1 %v3820_v59  ;;  %2288 = vmatmul.mubr.bf16.vlgmr.msra.gmra.mrb[12].mxu0 %v3820_v59 }
 0x4c7   : > { %2307 = vmatpush1.bf16.msra.mxu1 %v3068_v30  ;;  %2358 = vmatpush1.bf16.msra.mxu0 %v3070_v31  ;;  %v3166_v30 = vcombine.low %v1025_v19, %v1037_v20  ;;  %v3189_v31 = vcombine.high %v1048_v25, %v1060_v26  ;;  %v1026_v20 = vld [vmem:[%s4487_s3 + $0x320] sm:$0xff] }
 0x4c8   : > { %2308 = vmatprep.subr.bf16.mxu1 %v3093_v60  ;;  %2359 = vmatprep.subr.bf16.mxu0 %v3095_v61  ;;  %v966_v60 = vld [vmem:[%s4487_s3 + $0x140] sm:$0xff]  ;;  %v955_v61 = vld [vmem:[%s4487_s3 + $0xe8] sm:$0xff] }
 0x4c9   : > { %2246 = vmatprep.mubr.bf16.mxu1 %v3512_v33  ;;  %2297 = vmatprep.mubr.bf16.mxu0 %v3512_v33  ;;  %v3097_v1 = vcombine.high %v954_v58, %v966_v60  ;;  %v3099_v2 = vcombine.high %v955_v61, %v967_v62  ;;  %v3098_v8 = vcombine.low %v955_v61, %v967_v62  ;;  %v956_v62 = vld [vmem:[%s4487_s3 + $0xf0] sm:$0xff] }
 0x4cb   : > { %2309 = vmatpush1.bf16.msra.mxu1 %v3092_v3  ;;  %2360 = vmatpush1.bf16.msra.mxu0 %v3094_v4  ;;  %v978_v3 = vld [vmem:[%s4487_s3 + $0x1a0] sm:$0xff] }
 0x4cc   : > { %2310 = vmatprep.subr.bf16.mxu1 %v3117_v6  ;;  %2361 = vmatprep.subr.bf16.mxu0 %v3119_v7  ;;  %v990_v4 = vld [vmem:[%s4487_s3 + $0x200] sm:$0xff]  ;;  %v991_v6 = vld [vmem:[%s4487_s3 + $0x208] sm:$0xff]  ;;  %v3096_v7 = vcombine.low %v954_v58, %v966_v60 }
 0x4cd   : > { %v3121_v9 = vcombine.high %v978_v3, %v990_v4  ;;  %v3123_v10 = vcombine.high %v979_v5, %v991_v6  ;;  %v3122_v17 = vcombine.low %v979_v5, %v991_v6  ;;  %v980_v6 = vld [vmem:[%s4487_s3 + $0x1b0] sm:$0xff] }
 0x4ce   : > { %2247 = vmatmul.mubr.bf16.gmra.mrb[12].mxu1 %v3850_v14  ;;  %2298 = vmatmul.mubr.bf16.gmra.mrb[16].mxu0 %v3850_v14 }
 0x4cf   : > { %2311 = vmatpush1.bf16.msra.mxu1 %v3116_v12  ;;  %2362 = vmatpush1.bf16.msra.mxu0 %v3118_v13  ;;  %v1014_v12 = vld [vmem:[%s4487_s3 + $0x2c0] sm:$0xff]  ;;  %v1003_v13 = vld [vmem:[%s4487_s3 + $0x268] sm:$0xff] }
 0x4d0   : > { %2312 = vmatprep.subr.bf16.mxu1 %v3141_v15  ;;  %2363 = vmatprep.subr.bf16.mxu0 %v3143_v16  ;;  %v1015_v15 = vld [vmem:[%s4487_s3 + $0x2c8] sm:$0xff]  ;;  %v3120_v16 = vcombine.low %v978_v3, %v990_v4  ;;  %v3145_v18 = vcombine.high %v1002_v11, %v1014_v12 }
 0x4d1   : > { %2338 = vmatprep.mubr.bf16.mxu1 %v3512_v33  ;;  %2389 = vmatprep.mubr.bf16.mxu0 %v3512_v33  ;;  %v3147_v19 = vcombine.high %v1003_v13, %v1015_v15  ;;  %v3146_v25 = vcombine.low %v1003_v13, %v1015_v15  ;;  %v1004_v15 = vld [vmem:[%s4487_s3 + $0x270] sm:$0xff] }
 0x4d3   : > { %2313 = vmatpush1.bf16.msra.mxu1 %v3140_v21  ;;  %2364 = vmatpush1.bf16.msra.mxu0 %v3142_v22  ;;  %v1038_v21 = vld [vmem:[%s4487_s3 + $0x380] sm:$0xff]  ;;  %v1027_v22 = vld [vmem:[%s4487_s3 + $0x328] sm:$0xff] }
 0x4d4   : > { %2314 = vmatprep.subr.bf16.mxu1 %v3165_v23  ;;  %2365 = vmatprep.subr.bf16.mxu0 %v3167_v24  ;;  %v1039_v23 = vld [vmem:[%s4487_s3 + $0x388] sm:$0xff]  ;;  %v3144_v24 = vcombine.low %v1002_v11, %v1014_v12  ;;  %v3169_v26 = vcombine.high %v1026_v20, %v1038_v21 }
 0x4d5   : > { %v3171_v27 = vcombine.high %v1027_v22, %v1039_v23  ;;  %v3170_v34 = vcombine.low %v1027_v22, %v1039_v23  ;;  %v1028_v23 = vld [vmem:[%s4487_s3 + $0x330] sm:$0xff] }
 0x4d7   : > { %2315 = vmatpush1.bf16.msra.mxu1 %v3164_v29  ;;  %2366 = vmatpush1.bf16.msra.mxu0 %v3166_v30  ;;  %v1062_v29 = vld [vmem:[%s4487_s3 + $0x440] sm:$0xff]  ;;  %v1051_v30 = vld [vmem:[%s4487_s3 + $0x3e8] sm:$0xff] }
 0x4d8   : > { %2316 = vmatprep.subr.bf16.mxu1 %v3189_v31  ;;  %2367 = vmatprep.subr.bf16.mxu0 %v3191_v32  ;;  %v1063_v31 = vld [vmem:[%s4487_s3 + $0x448] sm:$0xff]  ;;  %v3168_v32 = vcombine.low %v1026_v20, %v1038_v21  ;;  %v3193_v35 = vcombine.high %v1050_v28, %v1062_v29 }
 0x4d9   : > { %v3195_v36 = vcombine.high %v1051_v30, %v1063_v31  ;;  %v3194_v42 = vcombine.low %v1051_v30, %v1063_v31  ;;  %v1052_v31 = vld [vmem:[%s4487_s3 + $0x3f0] sm:$0xff] }
 0x4db   : > { %2317 = vmatpush1.bf16.msra.mxu1 %v3188_v38  ;;  %2368 = vmatpush1.bf16.msra.mxu0 %v3190_v39  ;;  %v1086_v38 = vld [vmem:[%s4487_s3 + $0x500] sm:$0xff]  ;;  %v1075_v39 = vld [vmem:[%s4487_s3 + $0x4a8] sm:$0xff] }
 0x4dc   : > { %2318 = vmatprep.subr.bf16.mxu1 %v3213_v40  ;;  %2369 = vmatprep.subr.bf16.mxu0 %v3215_v41  ;;  %v1087_v40 = vld [vmem:[%s4487_s3 + $0x508] sm:$0xff]  ;;  %v3192_v41 = vcombine.low %v1050_v28, %v1062_v29  ;;  %v3217_v43 = vcombine.high %v1074_v37, %v1086_v38 }
 0x4dd   : > { %v3219_v44 = vcombine.high %v1075_v39, %v1087_v40  ;;  %v3218_v50 = vcombine.low %v1075_v39, %v1087_v40  ;;  %v1076_v40 = vld [vmem:[%s4487_s3 + $0x4b0] sm:$0xff] }
 0x4df   : > { %2319 = vmatpush1.bf16.msra.mxu1 %v3212_v46  ;;  %2370 = vmatpush1.bf16.msra.mxu0 %v3214_v47  ;;  %v1110_v46 = vld [vmem:[%s4487_s3 + $0x5c0] sm:$0xff]  ;;  %v1099_v47 = vld [vmem:[%s4487_s3 + $0x568] sm:$0xff] }
 0x4e0   : > { %2320 = vmatprep.subr.bf16.mxu1 %v3237_v48  ;;  %2371 = vmatprep.subr.bf16.mxu0 %v3239_v49  ;;  %v1111_v48 = vld [vmem:[%s4487_s3 + $0x5c8] sm:$0xff]  ;;  %v3216_v49 = vcombine.low %v1074_v37, %v1086_v38  ;;  %v3241_v51 = vcombine.high %v1098_v45, %v1110_v46 }
 0x4e1   : > { %v3243_v52 = vcombine.high %v1099_v47, %v1111_v48  ;;  %v3242_v58 = vcombine.low %v1099_v47, %v1111_v48  ;;  %v1100_v48 = vld [vmem:[%s4487_s3 + $0x570] sm:$0xff] }
 0x4e3   : > { %2321 = vmatpush1.bf16.msra.mxu1 %v3236_v54  ;;  %2372 = vmatpush1.bf16.msra.mxu0 %v3238_v55  ;;  %v944_v54 = vld [vmem:[%s4487_s3 + $0x90] sm:$0xff]  ;;  %v933_v55 = vld [vmem:[%s4487_s3 + $0x38] sm:$0xff] }
 0x4e4   : > { %2408 = vmatprep.subr.bf16.mxu1 %v3073_v56  ;;  %2459 = vmatprep.subr.bf16.mxu0 %v3075_v57  ;;  %v945_v56 = vld [vmem:[%s4487_s3 + $0x98] sm:$0xff]  ;;  %v3240_v57 = vcombine.low %v1098_v45, %v1110_v46  ;;  %v3077_v60 = vcombine.high %v932_v53, %v944_v54 }
 0x4e5   : > { %v3079_v61 = vcombine.high %v933_v55, %v945_v56  ;;  %v3078_v3 = vcombine.low %v933_v55, %v945_v56  ;;  %v934_v56 = vld [vmem:[%s4487_s3 + $0x40] sm:$0xff] }
 0x4e6   : > { %2339 = vmatmul.mubr.bf16.vlgmr.msra.gmra.mrb[16].mxu1 %v3820_v59  ;;  %2390 = vmatmul.mubr.bf16.vlgmr.msra.gmra.mrb[20].mxu0 %v3820_v59 }
 0x4e7   : > { %2409 = vmatpush1.bf16.msra.mxu1 %v3072_v63  ;;  %2460 = vmatpush1.bf16.msra.mxu0 %v3074_v0  ;;  %v968_v63 = vld [vmem:[%s4487_s3 + $0x150] sm:$0xff]  ;;  %v957_v0 = vld [vmem:[%s4487_s3 + $0xf8] sm:$0xff] }
 0x4e8   : > { %2410 = vmatprep.subr.bf16.mxu1 %v3097_v1  ;;  %2461 = vmatprep.subr.bf16.mxu0 %v3099_v2  ;;  %v969_v1 = vld [vmem:[%s4487_s3 + $0x158] sm:$0xff]  ;;  %v3076_v2 = vcombine.low %v932_v53, %v944_v54  ;;  %v3101_v4 = vcombine.high %v956_v62, %v968_v63 }
 0x4e9   : > { %2348 = vmatprep.mubr.bf16.mxu1 %v3512_v33  ;;  %2399 = vmatprep.mubr.bf16.mxu0 %v3512_v33  ;;  %v3103_v5 = vcombine.high %v957_v0, %v969_v1  ;;  %v3102_v11 = vcombine.low %v957_v0, %v969_v1  ;;  %v958_v1 = vld [vmem:[%s4487_s3 + $0x100] sm:$0xff] }
 0x4eb   : > { %2411 = vmatpush1.bf16.msra.mxu1 %v3096_v7  ;;  %2462 = vmatpush1.bf16.msra.mxu0 %v3098_v8  ;;  %v992_v7 = vld [vmem:[%s4487_s3 + $0x210] sm:$0xff]  ;;  %v981_v8 = vld [vmem:[%s4487_s3 + $0x1b8] sm:$0xff] }
 0x4ec   : > { %2412 = vmatprep.subr.bf16.mxu1 %v3121_v9  ;;  %2463 = vmatprep.subr.bf16.mxu0 %v3123_v10  ;;  %v993_v9 = vld [vmem:[%s4487_s3 + $0x218] sm:$0xff]  ;;  %v3100_v10 = vcombine.low %v956_v62, %v968_v63  ;;  %v3125_v12 = vcombine.high %v980_v6, %v992_v7 }
 0x4ed   : > { %v3127_v13 = vcombine.high %v981_v8, %v993_v9  ;;  %v3126_v20 = vcombine.low %v981_v8, %v993_v9  ;;  %v982_v9 = vld [vmem:[%s4487_s3 + $0x1c0] sm:$0xff] }
 0x4ee   : > { %2349 = vmatmul.mubr.bf16.gmra.mrb[20].mxu1 %v3850_v14  ;;  %2400 = vmatmul.mubr.bf16.gmra.mrb[24].mxu0 %v3850_v14 }
 0x4ef   : > { %2413 = vmatpush1.bf16.msra.mxu1 %v3120_v16  ;;  %2464 = vmatpush1.bf16.msra.mxu0 %v3122_v17  ;;  %v1016_v16 = vld [vmem:[%s4487_s3 + $0x2d0] sm:$0xff]  ;;  %v1005_v17 = vld [vmem:[%s4487_s3 + $0x278] sm:$0xff] }
 0x4f0   : > { %2414 = vmatprep.subr.bf16.mxu1 %v3145_v18  ;;  %2465 = vmatprep.subr.bf16.mxu0 %v3147_v19  ;;  %v1017_v18 = vld [vmem:[%s4487_s3 + $0x2d8] sm:$0xff]  ;;  %v3124_v19 = vcombine.low %v980_v6, %v992_v7  ;;  %v3149_v21 = vcombine.high %v1004_v15, %v1016_v16 }
 0x4f1   : > { %2440 = vmatprep.mubr.bf16.mxu1 %v3512_v33  ;;  %2491 = vmatprep.mubr.bf16.mxu0 %v3512_v33  ;;  %v3151_v22 = vcombine.high %v1005_v17, %v1017_v18  ;;  %v3150_v28 = vcombine.low %v1005_v17, %v1017_v18  ;;  %v1006_v18 = vld [vmem:[%s4487_s3 + $0x280] sm:$0xff] }
 0x4f3   : > { %2415 = vmatpush1.bf16.msra.mxu1 %v3144_v24  ;;  %2466 = vmatpush1.bf16.msra.mxu0 %v3146_v25  ;;  %v1040_v24 = vld [vmem:[%s4487_s3 + $0x390] sm:$0xff]  ;;  %v1029_v25 = vld [vmem:[%s4487_s3 + $0x338] sm:$0xff] }
 0x4f4   : > { %2416 = vmatprep.subr.bf16.mxu1 %v3169_v26  ;;  %2467 = vmatprep.subr.bf16.mxu0 %v3171_v27  ;;  %v1041_v26 = vld [vmem:[%s4487_s3 + $0x398] sm:$0xff]  ;;  %v3148_v27 = vcombine.low %v1004_v15, %v1016_v16  ;;  %v3173_v29 = vcombine.high %v1028_v23, %v1040_v24 }
 0x4f5   : > { %v3175_v30 = vcombine.high %v1029_v25, %v1041_v26  ;;  %v3174_v37 = vcombine.low %v1029_v25, %v1041_v26  ;;  %v1030_v26 = vld [vmem:[%s4487_s3 + $0x340] sm:$0xff] }
 0x4f7   : > { %2417 = vmatpush1.bf16.msra.mxu1 %v3168_v32  ;;  %2468 = vmatpush1.bf16.msra.mxu0 %v3170_v34  ;;  %v1064_v32 = vld [vmem:[%s4487_s3 + $0x450] sm:$0xff]  ;;  %v1053_v34 = vld [vmem:[%s4487_s3 + $0x3f8] sm:$0xff] }
 0x4f8   : > { %2418 = vmatprep.subr.bf16.mxu1 %v3193_v35  ;;  %2469 = vmatprep.subr.bf16.mxu0 %v3195_v36  ;;  %v1065_v35 = vld [vmem:[%s4487_s3 + $0x458] sm:$0xff]  ;;  %v3172_v36 = vcombine.low %v1028_v23, %v1040_v24  ;;  %v3197_v38 = vcombine.high %v1052_v31, %v1064_v32 }
 0x4f9   : > { %v3199_v39 = vcombine.high %v1053_v34, %v1065_v35  ;;  %v3198_v45 = vcombine.low %v1053_v34, %v1065_v35  ;;  %v1054_v35 = vld [vmem:[%s4487_s3 + $0x400] sm:$0xff] }
 0x4fb   : > { %2419 = vmatpush1.bf16.msra.mxu1 %v3192_v41  ;;  %2470 = vmatpush1.bf16.msra.mxu0 %v3194_v42  ;;  %v1088_v41 = vld [vmem:[%s4487_s3 + $0x510] sm:$0xff]  ;;  %v1077_v42 = vld [vmem:[%s4487_s3 + $0x4b8] sm:$0xff] }
 0x4fc   : > { %2420 = vmatprep.subr.bf16.mxu1 %v3217_v43  ;;  %2471 = vmatprep.subr.bf16.mxu0 %v3219_v44  ;;  %v1089_v43 = vld [vmem:[%s4487_s3 + $0x518] sm:$0xff]  ;;  %v3196_v44 = vcombine.low %v1052_v31, %v1064_v32  ;;  %v3221_v46 = vcombine.high %v1076_v40, %v1088_v41 }
 0x4fd   : > { %v3223_v47 = vcombine.high %v1077_v42, %v1089_v43  ;;  %v3222_v53 = vcombine.low %v1077_v42, %v1089_v43  ;;  %v1078_v43 = vld [vmem:[%s4487_s3 + $0x4c0] sm:$0xff] }
 0x4ff   : > { %2421 = vmatpush1.bf16.msra.mxu1 %v3216_v49  ;;  %2472 = vmatpush1.bf16.msra.mxu0 %v3218_v50  ;;  %v1112_v49 = vld [vmem:[%s4487_s3 + $0x5d0] sm:$0xff]  ;;  %v1101_v50 = vld [vmem:[%s4487_s3 + $0x578] sm:$0xff] }
 0x500   : > { %2422 = vmatprep.subr.bf16.mxu1 %v3241_v51  ;;  %2473 = vmatprep.subr.bf16.mxu0 %v3243_v52  ;;  %v1113_v51 = vld [vmem:[%s4487_s3 + $0x5d8] sm:$0xff]  ;;  %v3220_v52 = vcombine.low %v1076_v40, %v1088_v41  ;;  %v3245_v54 = vcombine.high %v1100_v48, %v1112_v49 }
 0x501   : > { %v3247_v55 = vcombine.high %v1101_v50, %v1113_v51  ;;  %v3246_v62 = vcombine.low %v1101_v50, %v1113_v51  ;;  %v1102_v51 = vld [vmem:[%s4487_s3 + $0x580] sm:$0xff] }
 0x503   : > { %2423 = vmatpush1.bf16.msra.mxu1 %v3240_v57  ;;  %2474 = vmatpush1.bf16.msra.mxu0 %v3242_v58  ;;  %v946_v57 = vld [vmem:[%s4487_s3 + $0xa0] sm:$0xff]  ;;  %v935_v58 = vld [vmem:[%s4487_s3 + $0x48] sm:$0xff] }
 0x504   : > { %2510 = vmatprep.subr.bf16.mxu1 %v3077_v60  ;;  %2561 = vmatprep.subr.bf16.mxu0 %v3079_v61  ;;  %v947_v60 = vld [vmem:[%s4487_s3 + $0xa8] sm:$0xff]  ;;  %v3244_v61 = vcombine.low %v1100_v48, %v1112_v49  ;;  %v3081_v63 = vcombine.high %v934_v56, %v946_v57 }
 0x505   : > { %v3083_v0 = vcombine.high %v935_v58, %v947_v60  ;;  %v3082_v6 = vcombine.low %v935_v58, %v947_v60  ;;  %v936_v60 = vld [vmem:[%s4487_s3 + $0x50] sm:$0xff] }
 0x506   : > { %2441 = vmatmul.mubr.bf16.vlgmr.msra.gmra.mrb[24].mxu1 %v3820_v59  ;;  %2492 = vmatmul.mubr.bf16.vlgmr.msra.gmra.mrb[28].mxu0 %v3820_v59 }
 0x507   : > { %2511 = vmatpush1.bf16.msra.mxu1 %v3076_v2  ;;  %2562 = vmatpush1.bf16.msra.mxu0 %v3078_v3  ;;  %v970_v2 = vld [vmem:[%s4487_s3 + $0x160] sm:$0xff]  ;;  %v959_v3 = vld [vmem:[%s4487_s3 + $0x108] sm:$0xff] }
 0x508   : > { %2512 = vmatprep.subr.bf16.mxu1 %v3101_v4  ;;  %2563 = vmatprep.subr.bf16.mxu0 %v3103_v5  ;;  %v971_v4 = vld [vmem:[%s4487_s3 + $0x168] sm:$0xff]  ;;  %v3080_v5 = vcombine.low %v934_v56, %v946_v57  ;;  %v3105_v7 = vcombine.high %v958_v1, %v970_v2 }
 0x509   : > { %2450 = vmatprep.mubr.bf16.mxu1 %v3512_v33  ;;  %2501 = vmatprep.mubr.bf16.mxu0 %v3512_v33  ;;  %v3107_v8 = vcombine.high %v959_v3, %v971_v4  ;;  %v3106_v15 = vcombine.low %v959_v3, %v971_v4  ;;  %v960_v4 = vld [vmem:[%s4487_s3 + $0x110] sm:$0xff] }
 0x50b   : > { %2513 = vmatpush1.bf16.msra.mxu1 %v3100_v10  ;;  %2564 = vmatpush1.bf16.msra.mxu0 %v3102_v11  ;;  %v994_v10 = vld [vmem:[%s4487_s3 + $0x220] sm:$0xff]  ;;  %v983_v11 = vld [vmem:[%s4487_s3 + $0x1c8] sm:$0xff] }
 0x50c   : > { %2514 = vmatprep.subr.bf16.mxu1 %v3125_v12  ;;  %2565 = vmatprep.subr.bf16.mxu0 %v3127_v13  ;;  %v995_v12 = vld [vmem:[%s4487_s3 + $0x228] sm:$0xff]  ;;  %v3104_v13 = vcombine.low %v958_v1, %v970_v2  ;;  %v3129_v16 = vcombine.high %v982_v9, %v994_v10 }
 0x50d   : > { %v3131_v17 = vcombine.high %v983_v11, %v995_v12  ;;  %v3130_v23 = vcombine.low %v983_v11, %v995_v12  ;;  %v984_v12 = vld [vmem:[%s4487_s3 + $0x1d0] sm:$0xff] }
 0x50e   : > { %2451 = vmatmul.mubr.bf16.gmra.mrb[28].mxu1 %v3850_v14  ;;  %2502 = vmatmul.mubr.bf16.gmra.mrb[32].mxu0 %v3850_v14 }
 0x50f   : > { %2515 = vmatpush1.bf16.msra.mxu1 %v3124_v19  ;;  %2566 = vmatpush1.bf16.msra.mxu0 %v3126_v20  ;;  %v1018_v19 = vld [vmem:[%s4487_s3 + $0x2e0] sm:$0xff]  ;;  %v1007_v20 = vld [vmem:[%s4487_s3 + $0x288] sm:$0xff] }
 0x510   : > { %2516 = vmatprep.subr.bf16.mxu1 %v3149_v21  ;;  %2567 = vmatprep.subr.bf16.mxu0 %v3151_v22  ;;  %v1019_v21 = vld [vmem:[%s4487_s3 + $0x2e8] sm:$0xff]  ;;  %v3128_v22 = vcombine.low %v982_v9, %v994_v10  ;;  %v3153_v24 = vcombine.high %v1006_v18, %v1018_v19 }
 0x511   : > { %2542 = vmatprep.mubr.bf16.mxu1 %v3512_v33  ;;  %2593 = vmatprep.mubr.bf16.mxu0 %v3512_v33  ;;  %v3155_v25 = vcombine.high %v1007_v20, %v1019_v21  ;;  %v3154_v31 = vcombine.low %v1007_v20, %v1019_v21  ;;  %v1008_v21 = vld [vmem:[%s4487_s3 + $0x290] sm:$0xff] }
 0x513   : > { %2517 = vmatpush1.bf16.msra.mxu1 %v3148_v27  ;;  %2568 = vmatpush1.bf16.msra.mxu0 %v3150_v28  ;;  %v1042_v27 = vld [vmem:[%s4487_s3 + $0x3a0] sm:$0xff]  ;;  %v1031_v28 = vld [vmem:[%s4487_s3 + $0x348] sm:$0xff] }
 0x514   : > { %2518 = vmatprep.subr.bf16.mxu1 %v3173_v29  ;;  %2569 = vmatprep.subr.bf16.mxu0 %v3175_v30  ;;  %v1043_v29 = vld [vmem:[%s4487_s3 + $0x3a8] sm:$0xff]  ;;  %v3152_v30 = vcombine.low %v1006_v18, %v1018_v19  ;;  %v3177_v32 = vcombine.high %v1030_v26, %v1042_v27 }
 0x515   : > { %v3179_v34 = vcombine.high %v1031_v28, %v1043_v29  ;;  %v3178_v40 = vcombine.low %v1031_v28, %v1043_v29  ;;  %v1032_v29 = vld [vmem:[%s4487_s3 + $0x350] sm:$0xff] }
 0x517   : > { %2519 = vmatpush1.bf16.msra.mxu1 %v3172_v36  ;;  %2570 = vmatpush1.bf16.msra.mxu0 %v3174_v37  ;;  %v1066_v36 = vld [vmem:[%s4487_s3 + $0x460] sm:$0xff]  ;;  %v1055_v37 = vld [vmem:[%s4487_s3 + $0x408] sm:$0xff] }
 0x518   : > { %2520 = vmatprep.subr.bf16.mxu1 %v3197_v38  ;;  %2571 = vmatprep.subr.bf16.mxu0 %v3199_v39  ;;  %v1067_v38 = vld [vmem:[%s4487_s3 + $0x468] sm:$0xff]  ;;  %v3176_v39 = vcombine.low %v1030_v26, %v1042_v27  ;;  %v3201_v41 = vcombine.high %v1054_v35, %v1066_v36 }
 0x519   : > { %v3203_v42 = vcombine.high %v1055_v37, %v1067_v38  ;;  %v3202_v48 = vcombine.low %v1055_v37, %v1067_v38  ;;  %v1056_v38 = vld [vmem:[%s4487_s3 + $0x410] sm:$0xff] }
 0x51b   : > { %2521 = vmatpush1.bf16.msra.mxu1 %v3196_v44  ;;  %2572 = vmatpush1.bf16.msra.mxu0 %v3198_v45  ;;  %v1090_v44 = vld [vmem:[%s4487_s3 + $0x520] sm:$0xff]  ;;  %v1079_v45 = vld [vmem:[%s4487_s3 + $0x4c8] sm:$0xff] }
 0x51c   : > { %2522 = vmatprep.subr.bf16.mxu1 %v3221_v46  ;;  %2573 = vmatprep.subr.bf16.mxu0 %v3223_v47  ;;  %v1091_v46 = vld [vmem:[%s4487_s3 + $0x528] sm:$0xff]  ;;  %v3200_v47 = vcombine.low %v1054_v35, %v1066_v36  ;;  %v3225_v49 = vcombine.high %v1078_v43, %v1090_v44 }
 0x51d   : > { %v3227_v50 = vcombine.high %v1079_v45, %v1091_v46  ;;  %v3226_v56 = vcombine.low %v1079_v45, %v1091_v46  ;;  %v1080_v46 = vld [vmem:[%s4487_s3 + $0x4d0] sm:$0xff] }
 0x51f   : > { %2523 = vmatpush1.bf16.msra.mxu1 %v3220_v52  ;;  %2574 = vmatpush1.bf16.msra.mxu0 %v3222_v53  ;;  %v1114_v52 = vld [vmem:[%s4487_s3 + $0x5e0] sm:$0xff]  ;;  %v1103_v53 = vld [vmem:[%s4487_s3 + $0x588] sm:$0xff] }
 0x520   : > { %2524 = vmatprep.subr.bf16.mxu1 %v3245_v54  ;;  %2575 = vmatprep.subr.bf16.mxu0 %v3247_v55  ;;  %v1115_v54 = vld [vmem:[%s4487_s3 + $0x5e8] sm:$0xff]  ;;  %v3224_v55 = vcombine.low %v1078_v43, %v1090_v44  ;;  %v3249_v57 = vcombine.high %v1102_v51, %v1114_v52 }
 0x521   : > { %v3251_v58 = vcombine.high %v1103_v53, %v1115_v54  ;;  %v3250_v1 = vcombine.low %v1103_v53, %v1115_v54  ;;  %v1104_v54 = vld [vmem:[%s4487_s3 + $0x590] sm:$0xff] }
 0x523   : > { %2525 = vmatpush1.bf16.msra.mxu1 %v3244_v61  ;;  %2576 = vmatpush1.bf16.msra.mxu0 %v3246_v62  ;;  %v948_v61 = vld [vmem:[%s4487_s3 + $0xb0] sm:$0xff]  ;;  %v937_v62 = vld [vmem:[%s4487_s3 + $0x58] sm:$0xff] }
 0x524   : > { %2612 = vmatprep.subr.bf16.mxu1 %v3081_v63  ;;  %2663 = vmatprep.subr.bf16.mxu0 %v3083_v0  ;;  %v949_v63 = vld [vmem:[%s4487_s3 + $0xb8] sm:$0xff]  ;;  %v3248_v0 = vcombine.low %v1102_v51, %v1114_v52  ;;  %v3085_v2 = vcombine.high %v936_v60, %v948_v61 }
 0x525   : > { %v4228_v3 = vcombine.high %v937_v62, %v949_v63  ;;  %v4242_v9 = vcombine.low %v937_v62, %v949_v63 }
 0x526   : > { %2543 = vmatmul.mubr.bf16.vlgmr.msra.gmra.mrb[32].mxu1 %v3820_v59  ;;  %2594 = vmatmul.mubr.bf16.vlgmr.msra.gmra.mrb[36].mxu0 %v3820_v59 }
 0x527   : > { %2613 = vmatpush1.bf16.msra.mxu1 %v3080_v5  ;;  %2664 = vmatpush1.bf16.msra.mxu0 %v3082_v6  ;;  %v972_v5 = vld [vmem:[%s4487_s3 + $0x170] sm:$0xff]  ;;  %v961_v6 = vld [vmem:[%s4487_s3 + $0x118] sm:$0xff] }
 0x528   : > { %2614 = vmatprep.subr.bf16.mxu1 %v3105_v7  ;;  %2665 = vmatprep.subr.bf16.mxu0 %v3107_v8  ;;  %v973_v7 = vld [vmem:[%s4487_s3 + $0x178] sm:$0xff]  ;;  %v3084_v8 = vcombine.low %v936_v60, %v948_v61  ;;  %v3109_v10 = vcombine.high %v960_v4, %v972_v5 }
 0x529   : > { %2552 = vmatprep.mubr.bf16.mxu1 %v3512_v33  ;;  %2603 = vmatprep.mubr.bf16.mxu0 %v3512_v33  ;;  %v4245_v11 = vcombine.high %v961_v6, %v973_v7  ;;  %v4262_v18 = vcombine.low %v961_v6, %v973_v7 }
 0x52b   : > { %2615 = vmatpush1.bf16.msra.mxu1 %v3104_v13  ;;  %2666 = vmatpush1.bf16.msra.mxu0 %v3106_v15  ;;  %v996_v13 = vld [vmem:[%s4487_s3 + $0x230] sm:$0xff]  ;;  %v985_v15 = vld [vmem:[%s4487_s3 + $0x1d8] sm:$0xff] }
 0x52c   : > { %2616 = vmatprep.subr.bf16.mxu1 %v3129_v16  ;;  %2667 = vmatprep.subr.bf16.mxu0 %v3131_v17  ;;  %v997_v16 = vld [vmem:[%s4487_s3 + $0x238] sm:$0xff]  ;;  %v3108_v17 = vcombine.low %v960_v4, %v972_v5  ;;  %v3133_v19 = vcombine.high %v984_v12, %v996_v13 }
 0x52d   : > { %v4265_v20 = vcombine.high %v985_v15, %v997_v16  ;;  %v4282_v26 = vcombine.low %v985_v15, %v997_v16 }
 0x52e   : > { %2553 = vmatmul.mubr.bf16.gmra.mrb[36].mxu1 %v3850_v14  ;;  %2604 = vmatmul.mubr.bf16.gmra.mrb[40].mxu0 %v3850_v14 }
 0x52f   : > { %2617 = vmatpush1.bf16.msra.mxu1 %v3128_v22  ;;  %2668 = vmatpush1.bf16.msra.mxu0 %v3130_v23  ;;  %v1020_v22 = vld [vmem:[%s4487_s3 + $0x2f0] sm:$0xff]  ;;  %v1009_v23 = vld [vmem:[%s4487_s3 + $0x298] sm:$0xff] }
 0x530   : > { %2618 = vmatprep.subr.bf16.mxu1 %v3153_v24  ;;  %2669 = vmatprep.subr.bf16.mxu0 %v3155_v25  ;;  %v1021_v24 = vld [vmem:[%s4487_s3 + $0x2f8] sm:$0xff]  ;;  %v3132_v25 = vcombine.low %v984_v12, %v996_v13  ;;  %v3157_v27 = vcombine.high %v1008_v21, %v1020_v22 }
 0x531   : > { %2644 = vmatprep.mubr.bf16.mxu1 %v3512_v33  ;;  %2695 = vmatprep.mubr.bf16.mxu0 %v3512_v33  ;;  %v4285_v28 = vcombine.high %v1009_v23, %v1021_v24  ;;  %v3158_v35 = vcombine.low %v1009_v23, %v1021_v24 }
 0x533   : > { %2619 = vmatpush1.bf16.msra.mxu1 %v3152_v30  ;;  %2670 = vmatpush1.bf16.msra.mxu0 %v3154_v31  ;;  %v1044_v30 = vld [vmem:[%s4487_s3 + $0x3b0] sm:$0xff]  ;;  %v1033_v31 = vld [vmem:[%s4487_s3 + $0x358] sm:$0xff] }
 0x534   : > { %2620 = vmatprep.subr.bf16.mxu1 %v3177_v32  ;;  %2671 = vmatprep.subr.bf16.mxu0 %v3179_v34  ;;  %v1045_v32 = vld [vmem:[%s4487_s3 + $0x3b8] sm:$0xff]  ;;  %v3156_v34 = vcombine.low %v1008_v21, %v1020_v22  ;;  %v3181_v36 = vcombine.high %v1032_v29, %v1044_v30 }
 0x535   : > { %v3183_v37 = vcombine.high %v1033_v31, %v1045_v32  ;;  %v3182_v43 = vcombine.low %v1033_v31, %v1045_v32 }
 0x537   : > { %2621 = vmatpush1.bf16.msra.mxu1 %v3176_v39  ;;  %2672 = vmatpush1.bf16.msra.mxu0 %v3178_v40  ;;  %v1068_v39 = vld [vmem:[%s4487_s3 + $0x470] sm:$0xff]  ;;  %v1057_v40 = vld [vmem:[%s4487_s3 + $0x418] sm:$0xff] }
 0x538   : > { %2622 = vmatprep.subr.bf16.mxu1 %v3201_v41  ;;  %2673 = vmatprep.subr.bf16.mxu0 %v3203_v42  ;;  %v1069_v41 = vld [vmem:[%s4487_s3 + $0x478] sm:$0xff]  ;;  %v3180_v42 = vcombine.low %v1032_v29, %v1044_v30  ;;  %v3205_v44 = vcombine.high %v1056_v38, %v1068_v39 }
 0x539   : > { %v3207_v45 = vcombine.high %v1057_v40, %v1069_v41  ;;  %v3206_v51 = vcombine.low %v1057_v40, %v1069_v41 }
 0x53b   : > { %2623 = vmatpush1.bf16.msra.mxu1 %v3200_v47  ;;  %2674 = vmatpush1.bf16.msra.mxu0 %v3202_v48  ;;  %v1092_v47 = vld [vmem:[%s4487_s3 + $0x530] sm:$0xff]  ;;  %v1081_v48 = vld [vmem:[%s4487_s3 + $0x4d8] sm:$0xff] }
 0x53c   : > { %2624 = vmatprep.subr.bf16.mxu1 %v3225_v49  ;;  %2675 = vmatprep.subr.bf16.mxu0 %v3227_v50  ;;  %v1093_v49 = vld [vmem:[%s4487_s3 + $0x538] sm:$0xff]  ;;  %v3204_v50 = vcombine.low %v1056_v38, %v1068_v39  ;;  %v3229_v52 = vcombine.high %v1080_v46, %v1092_v47 }
 0x53d   : > { %v3231_v53 = vcombine.high %v1081_v48, %v1093_v49  ;;  %v3230_v60 = vcombine.low %v1081_v48, %v1093_v49 }
 0x53f   : > { %2625 = vmatpush1.bf16.msra.mxu1 %v3224_v55  ;;  %2676 = vmatpush1.bf16.msra.mxu0 %v3226_v56  ;;  %v1116_v55 = vld [vmem:[%s4487_s3 + $0x5f0] sm:$0xff]  ;;  %v1105_v56 = vld [vmem:[%s4487_s3 + $0x598] sm:$0xff] }
 0x540   : > { %2626 = vmatprep.subr.bf16.mxu1 %v3249_v57  ;;  %2677 = vmatprep.subr.bf16.mxu0 %v3251_v58  ;;  %v1117_v57 = vld [vmem:[%s4487_s3 + $0x5f8] sm:$0xff]  ;;  %v3228_v58 = vcombine.low %v1080_v46, %v1092_v47  ;;  %v3253_v61 = vcombine.high %v1104_v54, %v1116_v55  ;;  %v3252_v63 = vcombine.low %v1104_v54, %v1116_v55 }
 0x541   : > { %v3255_v62 = vcombine.high %v1105_v56, %v1117_v57 }
 0x543   : > { %2627 = vmatpush1.bf16.msra.mxu1 %v3248_v0  ;;  %2678 = vmatpush1.bf16.msra.mxu0 %v3250_v1  ;;  %v3254_v0 = vcombine.low %v1105_v56, %v1117_v57 }
 0x544   : > { %2714 = vmatprep.subr.bf16.mxu1 %v3085_v2  ;;  %2765 = vmatprep.subr.bf16.mxu0 %v4228_v3 }
 0x546   : > { %2645 = vmatmul.mubr.bf16.vlgmr.msra.gmra.mrb[40].mxu1 %v3820_v59  ;;  %2696 = vmatmul.mubr.bf16.vlgmr.msra.gmra.mrb[44].mxu0 %v3820_v59 }
 0x547   : > { %2715 = vmatpush1.bf16.msra.mxu1 %v3084_v8  ;;  %2766 = vmatpush1.bf16.msra.mxu0 %v4242_v9 }
 0x548   : > { %2716 = vmatprep.subr.bf16.mxu1 %v3109_v10  ;;  %2767 = vmatprep.subr.bf16.mxu0 %v4245_v11 }
 0x549   : > { %2654 = vmatprep.mubr.bf16.mxu1 %v3512_v33  ;;  %2705 = vmatprep.mubr.bf16.mxu0 %v3512_v33 }
 0x54b   : > { %2717 = vmatpush1.bf16.msra.mxu1 %v3108_v17  ;;  %2768 = vmatpush1.bf16.msra.mxu0 %v4262_v18 }
 0x54c   : > { %2718 = vmatprep.subr.bf16.mxu1 %v3133_v19  ;;  %2769 = vmatprep.subr.bf16.mxu0 %v4265_v20 }
 0x54e   : > { %2655 = vmatmul.mubr.bf16.gmra.mrb[44].mxu1 %v3850_v14  ;;  %2706 = vmatmul.mubr.bf16.gmra.mrb[48].mxu0 %v3850_v14 }
 0x54f   : > { %2719 = vmatpush1.bf16.msra.mxu1 %v3132_v25  ;;  %2770 = vmatpush1.bf16.msra.mxu0 %v4282_v26 }
 0x550   : > { %2720 = vmatprep.subr.bf16.mxu1 %v3157_v27  ;;  %2771 = vmatprep.subr.bf16.mxu0 %v4285_v28 }
 0x551   : > { %2746 = vmatprep.mubr.bf16.mxu1 %v3512_v33  ;;  %2797 = vmatprep.mubr.bf16.mxu0 %v3512_v33 }
 0x553   : > { %2721 = vmatpush1.bf16.msra.mxu1 %v3156_v34  ;;  %2772 = vmatpush1.bf16.msra.mxu0 %v3158_v35 }
 0x554   : > { %2722 = vmatprep.subr.bf16.mxu1 %v3181_v36  ;;  %2773 = vmatprep.subr.bf16.mxu0 %v3183_v37 }
 0x557   : > { %2723 = vmatpush1.bf16.msra.mxu1 %v3180_v42  ;;  %2774 = vmatpush1.bf16.msra.mxu0 %v3182_v43 }
 0x558   : > { %2724 = vmatprep.subr.bf16.mxu1 %v3205_v44  ;;  %2775 = vmatprep.subr.bf16.mxu0 %v3207_v45 }
 0x55b   : > { %2725 = vmatpush1.bf16.msra.mxu1 %v3204_v50  ;;  %2776 = vmatpush1.bf16.msra.mxu0 %v3206_v51 }
 0x55c   : > { %2726 = vmatprep.subr.bf16.mxu1 %v3229_v52  ;;  %2777 = vmatprep.subr.bf16.mxu0 %v3231_v53 }
 0x55f   : > { %2727 = vmatpush1.bf16.msra.mxu1 %v3228_v58  ;;  %2778 = vmatpush1.bf16.msra.mxu0 %v3230_v60 }
 0x560   : > { %2728 = vmatprep.subr.bf16.mxu1 %v3253_v61  ;;  %2779 = vmatprep.subr.bf16.mxu0 %v3255_v62 }
 0x563   : > { %2729 = vmatpush1.bf16.msra.mxu1 %v3252_v63  ;;  %2780 = vmatpush1.bf16.msra.mxu0 %v3254_v0 }
 0x564   : > { %3408 = vmatprep.subr.bf16.mxu1 %v4228_v3 }
 0x566   : > { %2747 = vmatmul.mubr.bf16.vlgmr.msra.gmra.mrb[48].mxu1 %v3820_v59  ;;  %2798 = vmatmul.mubr.bf16.vlgmr.msra.gmra.mrb[52].mxu0 %v3820_v59  ;;  %v1124_v59 = vlaneseq }
 0x567   : > { %3416 = vmatpush1.bf16.msra.mxu1 %v4242_v9  ;;  %2756 = vmatprep.mubr.bf16.mxu1 %v3512_v33 }
 0x568   : > { %3409 = vmatprep.subr.bf16.mxu1 %v4245_v11  ;;  %v1125_v1 = vshrl.u32 %v1124_v59, 7 }
 0x56a   : > { %v4354_v2 = vsub.s32 0, %v1125_v1  ;;  %v4356_v3 = vsub.s32 2, %v1125_v1  ;;  %v4361_v4 = vsub.s32 1, %v1125_v1  ;;  %v4363_v5 = vsub.s32 3, %v1125_v1 }
 0x56b   : > { %3417 = vmatpush1.bf16.msra.mxu1 %v4262_v18  ;;  %v4387_v39 = vsub.s32 4, %v1125_v1  ;;  %v4389_v40 = vsub.s32 6, %v1125_v1  ;;  %v4391_v41 = vsub.s32 5, %v1125_v1  ;;  %v4393_v42 = vsub.s32 7, %v1125_v1 }
 0x56c   : > { %3410 = vmatprep.subr.bf16.mxu1 %v4265_v20 }
 0x56e   : > { %2757 = vmatmul.mubr.bf16.gmra.mrb[52].mxu1 %v3850_v14 }
 0x56f   : > { %3418 = vmatpush1.bf16.msra.mxu1 %v4282_v26  ;;  %2807 = vmatprep.mubr.bf16.mxu1 %v3512_v33  ;;  %v1118_v33 = vld [vmem:[%s4488_s4] sm:$0xff] }
 0x570   : > { %3411 = vmatprep.subr.bf16.mxu1 %v4285_v28  ;;  %v1127_v6 = vrot.slane %v1118_v33, %v4354_v2  ;;  %v1135_v7 = vrot.slane %v1118_v33, %v4356_v3  ;;  %v1139_v8 = vrot.slane %v1118_v33, %v4363_v5  ;;  %v1151_v44 = vrot.slane %v1118_v33, %v4389_v40 }
 0x571   : > { %v1155_v46 = vrot.slane %v1118_v33, %v4393_v42 }
 0x573   : > { %3419 = vmatpush1.bf16.msra.mxu1 %v3158_v35 }
 0x574   : > { %3412 = vmatprep.subr.bf16.mxu1 %v3183_v37 }
 0x577   : > { %3420 = vmatpush1.bf16.msra.mxu1 %v3182_v43  ;;  %v1143_v43 = vrot.slane %v1118_v33, %v4387_v39 }
 0x578   : > { %3413 = vmatprep.subr.bf16.mxu1 %v3207_v45  ;;  %v1147_v45 = vrot.slane %v1118_v33, %v4391_v41 }
 0x57b   : > { %3421 = vmatpush1.bf16.msra.mxu1 %v3206_v51 }
 0x57c   : > { %3414 = vmatprep.subr.bf16.mxu1 %v3231_v53 }
 0x57f   : > { %3422 = vmatpush1.bf16.msra.mxu1 %v3230_v60 }
 0x580   : > { %3415 = vmatprep.subr.bf16.mxu1 %v3255_v62 }
 0x583   : > { %3423 = vmatpush1.bf16.msra.mxu1 %v3254_v0 }
 0x586   : > { %2808 = vmatmul.mubr.bf16.vlgmr.msra.gmra.mrb[56].mxu1 %v3850_v14  ;;  %v1131_v14 = vrot.slane %v1118_v33, %v4361_v4 }
 0x599   : > { %v2238_v9 = vpop.f32.mrb[8].mxu1  ;;  %v2289_v10 = vpop.f32.mrb[12].mxu0 }
 0x59a   : > { %v2239_v11 = vadd.f32 %v2238_v9, %v1127_v6  ;;  %v2290_v12 = vadd.f32 %v2289_v10, %v1135_v7  ;;  %v2240_v13 = vpop.f32.mrb[9].mxu1  ;;  %v2291_v15 = vpop.f32.mrb[13].mxu0 }
 0x59b   : > { %v2241_v16 = vadd.f32 %v2240_v13, %v1131_v14  ;;  %v2292_v17 = vadd.f32 %v2291_v15, %v1139_v8  ;;  %v2242_v18 = vpop.f32.mrb[10].mxu1  ;;  %v2293_v19 = vpop.f32.mrb[14].mxu0  ;;  %v1119_v13 = vld [vmem:[%s4488_s4 + $0x8] sm:$0xff] }
 0x59c   : > { %2816 = vst [vmem:[%s4373_s25] sm:$0xff] %v2239_v11  ;;  %2818 = vst [vmem:[%s4373_s25 + $0x10] sm:$0xff] %v2290_v12  ;;  %v2243_v20 = vadd.f32 %v2242_v18, %v1127_v6  ;;  %v2294_v21 = vadd.f32 %v2293_v19, %v1135_v7  ;;  %v2244_v22 = vpop.f32.mrb[11].mxu1  ;;  %v2295_v23 = vpop.f32.mrb[15].mxu0  ;;  %v1159_v15 = vrot.slane %v1119_v13, %v4354_v2 }
 0x59d   : > { %2817 = vst [vmem:[%s4373_s25 + $0x8] sm:$0xff] %v2241_v16  ;;  %2819 = vst [vmem:[%s4373_s25 + $0x18] sm:$0xff] %v2292_v17  ;;  %v2245_v24 = vadd.f32 %v2244_v22, %v1131_v14  ;;  %v2296_v25 = vadd.f32 %v2295_v23, %v1139_v8  ;;  %v1167_v16 = vrot.slane %v1119_v13, %v4356_v3 }
 0x59e   : > { %2840 = vst [vmem:[%s4373_s25 + $0xc0] sm:$0xff] %v2243_v20  ;;  %2842 = vst [vmem:[%s4373_s25 + $0xd0] sm:$0xff] %v2294_v21  ;;  %v1163_v17 = vrot.slane %v1119_v13, %v4361_v4  ;;  %v1171_v18 = vrot.slane %v1119_v13, %v4363_v5 }
 0x59f   : > { %2841 = vst [vmem:[%s4373_s25 + $0xc8] sm:$0xff] %v2245_v24  ;;  %2843 = vst [vmem:[%s4373_s25 + $0xd8] sm:$0xff] %v2296_v25 }
 0x5a1   : > { %v2248_v26 = vpop.f32.mrb[12].mxu1  ;;  %v2299_v27 = vpop.f32.mrb[16].mxu0 }
 0x5a2   : > { %v2249_v28 = vadd.f32 %v2248_v26, %v1127_v6  ;;  %v2300_v29 = vadd.f32 %v2299_v27, %v1135_v7  ;;  %v2250_v30 = vpop.f32.mrb[13].mxu1  ;;  %v2301_v31 = vpop.f32.mrb[17].mxu0 }
 0x5a3   : > { %v2251_v32 = vadd.f32 %v2250_v30, %v1131_v14  ;;  %v2302_v34 = vadd.f32 %v2301_v31, %v1139_v8  ;;  %v2252_v35 = vpop.f32.mrb[14].mxu1  ;;  %v2303_v36 = vpop.f32.mrb[18].mxu0 }
 0x5a4   : > { %2864 = vst [vmem:[%s4373_s25 + $0x180] sm:$0xff] %v2249_v28  ;;  %2866 = vst [vmem:[%s4373_s25 + $0x190] sm:$0xff] %v2300_v29  ;;  %v2253_v37 = vpop.f32.mrb[15].mxu1  ;;  %v2304_v38 = vpop.f32.mrb[19].mxu0 }
 0x5a5   : > { %2865 = vst [vmem:[%s4373_s25 + $0x188] sm:$0xff] %v2251_v32  ;;  %2867 = vst [vmem:[%s4373_s25 + $0x198] sm:$0xff] %v2302_v34 }
 0x5b9   : > { %v2340_v47 = vpop.f32.mrb[16].mxu1  ;;  %v2391_v48 = vpop.f32.mrb[20].mxu0 }
 0x5ba   : > { %v2341_v49 = vadd.f32 %v2340_v47, %v1143_v43  ;;  %v2392_v50 = vadd.f32 %v2391_v48, %v1151_v44  ;;  %v2342_v51 = vpop.f32.mrb[17].mxu1  ;;  %v2393_v52 = vpop.f32.mrb[21].mxu0 }
 0x5bb   : > { %v2343_v53 = vadd.f32 %v2342_v51, %v1147_v45  ;;  %v2394_v54 = vadd.f32 %v2393_v52, %v1155_v46  ;;  %v2344_v55 = vpop.f32.mrb[18].mxu1  ;;  %v2395_v56 = vpop.f32.mrb[22].mxu0  ;;  %v1175_v52 = vrot.slane %v1119_v13, %v4387_v39 }
 0x5bc   : > { %2820 = vst [vmem:[%s4373_s25 + $0x20] sm:$0xff] %v2341_v49  ;;  %2822 = vst [vmem:[%s4373_s25 + $0x30] sm:$0xff] %v2392_v50  ;;  %v2345_v57 = vadd.f32 %v2344_v55, %v1143_v43  ;;  %v2396_v58 = vadd.f32 %v2395_v56, %v1151_v44  ;;  %v2346_v60 = vpop.f32.mrb[19].mxu1  ;;  %v2397_v61 = vpop.f32.mrb[23].mxu0  ;;  %v1187_v55 = vrot.slane %v1119_v13, %v4393_v42 }
 0x5bd   : > { %2821 = vst [vmem:[%s4373_s25 + $0x28] sm:$0xff] %v2343_v53  ;;  %2823 = vst [vmem:[%s4373_s25 + $0x38] sm:$0xff] %v2394_v54  ;;  %v2347_v62 = vadd.f32 %v2346_v60, %v1147_v45  ;;  %v2398_v63 = vadd.f32 %v2397_v61, %v1155_v46  ;;  %v1183_v53 = vrot.slane %v1119_v13, %v4389_v40 }
 0x5be   : > { %2844 = vst [vmem:[%s4373_s25 + $0xe0] sm:$0xff] %v2345_v57  ;;  %2846 = vst [vmem:[%s4373_s25 + $0xf0] sm:$0xff] %v2396_v58  ;;  %v1179_v54 = vrot.slane %v1119_v13, %v4391_v41 }
 0x5bf   : > { %2845 = vst [vmem:[%s4373_s25 + $0xe8] sm:$0xff] %v2347_v62  ;;  %2847 = vst [vmem:[%s4373_s25 + $0xf8] sm:$0xff] %v2398_v63 }
 0x5c1   : > { %v2350_v0 = vpop.f32.mrb[20].mxu1  ;;  %v2401_v59 = vpop.f32.mrb[24].mxu0 }
 0x5c2   : > { %v2351_v1 = vadd.f32 %v2350_v0, %v1143_v43  ;;  %v2402_v33 = vadd.f32 %v2401_v59, %v1151_v44  ;;  %v2352_v6 = vpop.f32.mrb[21].mxu1  ;;  %v2403_v7 = vpop.f32.mrb[25].mxu0 }
 0x5c3   : > { %v2353_v14 = vadd.f32 %v2352_v6, %v1147_v45  ;;  %v2404_v8 = vadd.f32 %v2403_v7, %v1155_v46  ;;  %v2354_v9 = vpop.f32.mrb[22].mxu1  ;;  %v2405_v10 = vpop.f32.mrb[26].mxu0 }
 0x5c4   : > { %2868 = vst [vmem:[%s4373_s25 + $0x1a0] sm:$0xff] %v2351_v1  ;;  %2870 = vst [vmem:[%s4373_s25 + $0x1b0] sm:$0xff] %v2402_v33  ;;  %v2355_v11 = vpop.f32.mrb[23].mxu1  ;;  %v2406_v12 = vpop.f32.mrb[27].mxu0 }
 0x5c5   : > { %2869 = vst [vmem:[%s4373_s25 + $0x1a8] sm:$0xff] %v2353_v14  ;;  %2871 = vst [vmem:[%s4373_s25 + $0x1b8] sm:$0xff] %v2404_v8 }
 0x5d9   : > { %v2442_v19 = vpop.f32.mrb[24].mxu1  ;;  %v2493_v20 = vpop.f32.mrb[28].mxu0 }
 0x5da   : > { %v2443_v21 = vadd.f32 %v2442_v19, %v1159_v15  ;;  %v2494_v22 = vadd.f32 %v2493_v20, %v1167_v16  ;;  %v2444_v23 = vpop.f32.mrb[25].mxu1  ;;  %v2495_v24 = vpop.f32.mrb[29].mxu0 }
 0x5db   : > { %v2445_v25 = vadd.f32 %v2444_v23, %v1163_v17  ;;  %v2496_v26 = vadd.f32 %v2495_v24, %v1171_v18  ;;  %v2446_v27 = vpop.f32.mrb[26].mxu1  ;;  %v2497_v28 = vpop.f32.mrb[30].mxu0  ;;  %v1120_v23 = vld [vmem:[%s4488_s4 + $0x10] sm:$0xff] }
 0x5dc   : > { %2824 = vst [vmem:[%s4373_s25 + $0x40] sm:$0xff] %v2443_v21  ;;  %2826 = vst [vmem:[%s4373_s25 + $0x50] sm:$0xff] %v2494_v22  ;;  %v2447_v29 = vadd.f32 %v2446_v27, %v1159_v15  ;;  %v2498_v30 = vadd.f32 %v2497_v28, %v1167_v16  ;;  %v2448_v31 = vpop.f32.mrb[27].mxu1  ;;  %v2499_v32 = vpop.f32.mrb[31].mxu0  ;;  %v1191_v24 = vrot.slane %v1120_v23, %v4354_v2 }
 0x5dd   : > { %2825 = vst [vmem:[%s4373_s25 + $0x48] sm:$0xff] %v2445_v25  ;;  %2827 = vst [vmem:[%s4373_s25 + $0x58] sm:$0xff] %v2496_v26  ;;  %v2449_v34 = vadd.f32 %v2448_v31, %v1163_v17  ;;  %v2500_v35 = vadd.f32 %v2499_v32, %v1171_v18  ;;  %v1199_v25 = vrot.slane %v1120_v23, %v4356_v3 }
 0x5de   : > { %2848 = vst [vmem:[%s4373_s25 + $0x100] sm:$0xff] %v2447_v29  ;;  %2850 = vst [vmem:[%s4373_s25 + $0x110] sm:$0xff] %v2498_v30  ;;  %v1195_v26 = vrot.slane %v1120_v23, %v4361_v4  ;;  %v1203_v27 = vrot.slane %v1120_v23, %v4363_v5 }
 0x5df   : > { %2849 = vst [vmem:[%s4373_s25 + $0x108] sm:$0xff] %v2449_v34  ;;  %2851 = vst [vmem:[%s4373_s25 + $0x118] sm:$0xff] %v2500_v35 }
 0x5e1   : > { %v2452_v36 = vpop.f32.mrb[28].mxu1  ;;  %v2503_v37 = vpop.f32.mrb[32].mxu0 }
 0x5e2   : > { %v2453_v38 = vadd.f32 %v2452_v36, %v1159_v15  ;;  %v2504_v43 = vadd.f32 %v2503_v37, %v1167_v16  ;;  %v2454_v44 = vpop.f32.mrb[29].mxu1  ;;  %v2505_v45 = vpop.f32.mrb[33].mxu0 }
 0x5e3   : > { %v2455_v46 = vadd.f32 %v2454_v44, %v1163_v17  ;;  %v2506_v47 = vadd.f32 %v2505_v45, %v1171_v18  ;;  %v2456_v48 = vpop.f32.mrb[30].mxu1  ;;  %v2507_v49 = vpop.f32.mrb[34].mxu0 }
 0x5e4   : > { %2872 = vst [vmem:[%s4373_s25 + $0x1c0] sm:$0xff] %v2453_v38  ;;  %2874 = vst [vmem:[%s4373_s25 + $0x1d0] sm:$0xff] %v2504_v43  ;;  %v2457_v50 = vpop.f32.mrb[31].mxu1  ;;  %v2508_v51 = vpop.f32.mrb[35].mxu0 }
 0x5e5   : > { %2873 = vst [vmem:[%s4373_s25 + $0x1c8] sm:$0xff] %v2455_v46  ;;  %2875 = vst [vmem:[%s4373_s25 + $0x1d8] sm:$0xff] %v2506_v47 }
 0x5f9   : > { %v2544_v56 = vpop.f32.mrb[32].mxu1  ;;  %v2595_v57 = vpop.f32.mrb[36].mxu0 }
 0x5fa   : > { %v2545_v58 = vadd.f32 %v2544_v56, %v1175_v52  ;;  %v2596_v60 = vadd.f32 %v2595_v57, %v1183_v53  ;;  %v2546_v61 = vpop.f32.mrb[33].mxu1  ;;  %v2597_v62 = vpop.f32.mrb[37].mxu0  ;;  %v1207_v57 = vrot.slane %v1120_v23, %v4387_v39 }
 0x5fb   : > { %v2547_v63 = vadd.f32 %v2546_v61, %v1179_v54  ;;  %v2598_v0 = vadd.f32 %v2597_v62, %v1187_v55  ;;  %v2548_v59 = vpop.f32.mrb[34].mxu1  ;;  %v2599_v1 = vpop.f32.mrb[38].mxu0  ;;  %v1219_v61 = vrot.slane %v1120_v23, %v4393_v42 }
 0x5fc   : > { %2828 = vst [vmem:[%s4373_s25 + $0x60] sm:$0xff] %v2545_v58  ;;  %2830 = vst [vmem:[%s4373_s25 + $0x70] sm:$0xff] %v2596_v60  ;;  %v2549_v33 = vadd.f32 %v2548_v59, %v1175_v52  ;;  %v2600_v6 = vadd.f32 %v2599_v1, %v1183_v53  ;;  %v2550_v7 = vpop.f32.mrb[35].mxu1  ;;  %v2601_v14 = vpop.f32.mrb[39].mxu0  ;;  %v1215_v58 = vrot.slane %v1120_v23, %v4389_v40 }
 0x5fd   : > { %2829 = vst [vmem:[%s4373_s25 + $0x68] sm:$0xff] %v2547_v63  ;;  %2831 = vst [vmem:[%s4373_s25 + $0x78] sm:$0xff] %v2598_v0  ;;  %v2551_v8 = vadd.f32 %v2550_v7, %v1179_v54  ;;  %v2602_v9 = vadd.f32 %v2601_v14, %v1187_v55  ;;  %v1211_v60 = vrot.slane %v1120_v23, %v4391_v41 }
 0x5fe   : > { %2852 = vst [vmem:[%s4373_s25 + $0x120] sm:$0xff] %v2549_v33  ;;  %2854 = vst [vmem:[%s4373_s25 + $0x130] sm:$0xff] %v2600_v6 }
 0x5ff   : > { %2853 = vst [vmem:[%s4373_s25 + $0x128] sm:$0xff] %v2551_v8  ;;  %2855 = vst [vmem:[%s4373_s25 + $0x138] sm:$0xff] %v2602_v9 }
 0x601   : > { %v2554_v10 = vpop.f32.mrb[36].mxu1  ;;  %v2605_v11 = vpop.f32.mrb[40].mxu0 }
 0x602   : > { %v2555_v12 = vadd.f32 %v2554_v10, %v1175_v52  ;;  %v2606_v13 = vadd.f32 %v2605_v11, %v1183_v53  ;;  %v2556_v15 = vpop.f32.mrb[37].mxu1  ;;  %v2607_v16 = vpop.f32.mrb[41].mxu0 }
 0x603   : > { %v2557_v17 = vadd.f32 %v2556_v15, %v1179_v54  ;;  %v2608_v18 = vadd.f32 %v2607_v16, %v1187_v55  ;;  %v2558_v19 = vpop.f32.mrb[38].mxu1  ;;  %v2609_v20 = vpop.f32.mrb[42].mxu0 }
 0x604   : > { %2876 = vst [vmem:[%s4373_s25 + $0x1e0] sm:$0xff] %v2555_v12  ;;  %2878 = vst [vmem:[%s4373_s25 + $0x1f0] sm:$0xff] %v2606_v13  ;;  %v2559_v21 = vpop.f32.mrb[39].mxu1  ;;  %v2610_v22 = vpop.f32.mrb[43].mxu0 }
 0x605   : > { %2877 = vst [vmem:[%s4373_s25 + $0x1e8] sm:$0xff] %v2557_v17  ;;  %2879 = vst [vmem:[%s4373_s25 + $0x1f8] sm:$0xff] %v2608_v18 }
 0x619   : > { %v2646_v28 = vpop.f32.mrb[40].mxu1  ;;  %v2697_v29 = vpop.f32.mrb[44].mxu0 }
 0x61a   : > { %v2647_v30 = vadd.f32 %v2646_v28, %v1191_v24  ;;  %v2698_v31 = vadd.f32 %v2697_v29, %v1199_v25  ;;  %v2648_v32 = vpop.f32.mrb[41].mxu1  ;;  %v2699_v34 = vpop.f32.mrb[45].mxu0 }
 0x61b   : > { %v2649_v35 = vadd.f32 %v2648_v32, %v1195_v26  ;;  %v2700_v36 = vadd.f32 %v2699_v34, %v1203_v27  ;;  %v2650_v2 = vpop.f32.mrb[42].mxu1  ;;  %v2701_v3 = vpop.f32.mrb[46].mxu0 }
 0x61c   : > { %2832 = vst [vmem:[%s4373_s25 + $0x80] sm:$0xff] %v2647_v30  ;;  %2834 = vst [vmem:[%s4373_s25 + $0x90] sm:$0xff] %v2698_v31  ;;  %v2651_v4 = vadd.f32 %v2650_v2, %v1191_v24  ;;  %v2702_v5 = vadd.f32 %v2701_v3, %v1199_v25  ;;  %v2652_v37 = vpop.f32.mrb[43].mxu1  ;;  %v2703_v38 = vpop.f32.mrb[47].mxu0 }
 0x61d   : > { %2833 = vst [vmem:[%s4373_s25 + $0x88] sm:$0xff] %v2649_v35  ;;  %2835 = vst [vmem:[%s4373_s25 + $0x98] sm:$0xff] %v2700_v36  ;;  %v2653_v43 = vadd.f32 %v2652_v37, %v1195_v26  ;;  %v2704_v44 = vadd.f32 %v2703_v38, %v1203_v27 }
 0x61e   : > { %2856 = vst [vmem:[%s4373_s25 + $0x140] sm:$0xff] %v2651_v4  ;;  %2858 = vst [vmem:[%s4373_s25 + $0x150] sm:$0xff] %v2702_v5 }
 0x61f   : > { %2857 = vst [vmem:[%s4373_s25 + $0x148] sm:$0xff] %v2653_v43  ;;  %2859 = vst [vmem:[%s4373_s25 + $0x158] sm:$0xff] %v2704_v44 }
 0x621   : > { %v2656_v45 = vpop.f32.mrb[44].mxu1  ;;  %v2707_v46 = vpop.f32.mrb[48].mxu0 }
 0x622   : > { %v2657_v47 = vadd.f32 %v2656_v45, %v1191_v24  ;;  %v2708_v48 = vadd.f32 %v2707_v46, %v1199_v25  ;;  %v2658_v49 = vpop.f32.mrb[45].mxu1  ;;  %v2709_v50 = vpop.f32.mrb[49].mxu0 }
 0x623   : > { %v2659_v51 = vadd.f32 %v2658_v49, %v1195_v26  ;;  %v2710_v52 = vadd.f32 %v2709_v50, %v1203_v27  ;;  %v2660_v53 = vpop.f32.mrb[46].mxu1  ;;  %v2711_v54 = vpop.f32.mrb[50].mxu0 }
 0x624   : > { %2880 = vst [vmem:[%s4373_s25 + $0x200] sm:$0xff] %v2657_v47  ;;  %2882 = vst [vmem:[%s4373_s25 + $0x210] sm:$0xff] %v2708_v48  ;;  %v2661_v55 = vpop.f32.mrb[47].mxu1  ;;  %v2712_v56 = vpop.f32.mrb[51].mxu0 }
 0x625   : > { %2881 = vst [vmem:[%s4373_s25 + $0x208] sm:$0xff] %v2659_v51  ;;  %2883 = vst [vmem:[%s4373_s25 + $0x218] sm:$0xff] %v2710_v52 }
 0x639   : > { %v2748_v62 = vpop.f32.mrb[48].mxu1  ;;  %v2799_v63 = vpop.f32.mrb[52].mxu0 }
 0x63a   : > { %v2749_v0 = vadd.f32 %v2748_v62, %v1207_v57  ;;  %v2800_v59 = vadd.f32 %v2799_v63, %v1215_v58  ;;  %v2750_v1 = vpop.f32.mrb[49].mxu1  ;;  %v2801_v33 = vpop.f32.mrb[53].mxu0 }
 0x63b   : > { %v2751_v6 = vadd.f32 %v2750_v1, %v1211_v60  ;;  %v2802_v7 = vadd.f32 %v2801_v33, %v1219_v61  ;;  %v2752_v39 = vpop.f32.mrb[50].mxu1  ;;  %v2803_v40 = vpop.f32.mrb[54].mxu0 }
 0x63c   : > { %2836 = vst [vmem:[%s4373_s25 + $0xa0] sm:$0xff] %v2749_v0  ;;  %2838 = vst [vmem:[%s4373_s25 + $0xb0] sm:$0xff] %v2800_v59  ;;  %v2753_v41 = vadd.f32 %v2752_v39, %v1207_v57  ;;  %v2804_v42 = vadd.f32 %v2803_v40, %v1215_v58  ;;  %v2754_v14 = vpop.f32.mrb[51].mxu1  ;;  %v2805_v8 = vpop.f32.mrb[55].mxu0 }
 0x63d   : > { %2837 = vst [vmem:[%s4373_s25 + $0xa8] sm:$0xff] %v2751_v6  ;;  %2839 = vst [vmem:[%s4373_s25 + $0xb8] sm:$0xff] %v2802_v7  ;;  %v2755_v9 = vadd.f32 %v2754_v14, %v1211_v60  ;;  %v2806_v10 = vadd.f32 %v2805_v8, %v1219_v61 }
 0x63e   : > { %2860 = vst [vmem:[%s4373_s25 + $0x160] sm:$0xff] %v2753_v41  ;;  %2862 = vst [vmem:[%s4373_s25 + $0x170] sm:$0xff] %v2804_v42 }
 0x63f   : > { %2861 = vst [vmem:[%s4373_s25 + $0x168] sm:$0xff] %v2755_v9  ;;  %2863 = vst [vmem:[%s4373_s25 + $0x178] sm:$0xff] %v2806_v10 }
 0x641   : > { %v2758_v11 = vpop.f32.mrb[52].mxu1 }
 0x642   : > { %v2759_v12 = vadd.f32 %v2758_v11, %v1207_v57  ;;  %v2760_v13 = vpop.f32.mrb[53].mxu1 }
 0x643   : > { %v2761_v15 = vadd.f32 %v2760_v13, %v1211_v60  ;;  %v2762_v16 = vpop.f32.mrb[54].mxu1 }
 0x644   : > { %2884 = vst [vmem:[%s4373_s25 + $0x220] sm:$0xff] %v2759_v12  ;;  %v2763_v17 = vpop.f32.mrb[55].mxu1 }
 0x645   : > { %2885 = vst [vmem:[%s4373_s25 + $0x228] sm:$0xff] %v2761_v15 }
 0x659   : > { %v2809_v18 = vpop.f32.mrb[56].mxu1 }
 0x65a   : > { %v2810_v19 = vadd.f32 %v2809_v18, %v1215_v58  ;;  %v2811_v20 = vpop.f32.mrb[57].mxu1 }
 0x65b   : > { %v2812_v21 = vadd.f32 %v2811_v20, %v1219_v61  ;;  %v2813_v22 = vpop.f32.mrb[58].mxu1 }
 0x65c   : > { %2886 = vst [vmem:[%s4373_s25 + $0x230] sm:$0xff] %v2810_v19  ;;  %v2814_v23 = vpop.f32.mrb[59].mxu1 }
 0x65d   : > { %2887 = vst [vmem:[%s4373_s25 + $0x238] sm:$0xff] %v2812_v21 }
 0x65e PF: > { %s15_s18 = sadd.s32 1, %s3510_s18  }
 0x65f   : > { %p12_p4 = scmp.ge.s32.totalorder %s15_s18, 4  }
 0x661   :  { %14 = sbr.rel (!%p12_p4) target bundleno = 1 (0x1), region = 74 }

</bundles_post_ra>
